<compile_context>
chip_gen: v7x
topology: tpu7x:2x2x1
jax: 0.10.0
libtpu: 0.0.40
codegen_flags: <defaults>
</compile_context>

<pallas_src>
import functools

import jax
import jax.numpy as jnp
from jax.experimental import pallas as pl
from jax.experimental.pallas import tpu as pltpu

_SQRT_2_OVER_PI = 0.7978845608028654


def _fast_gelu(x):
    # AITemplate's 'fast_gelu' specialization == tanh-approximation GELU.
    return 0.5 * x * (1.0 + jnp.tanh(_SQRT_2_OVER_PI * (x + 0.044715 * x * x * x)))


def _layernorm(y, gamma, beta, eps):
    mean = jnp.mean(y, axis=-1, keepdims=True)
    centered = y - mean
    var = jnp.mean(centered * centered, axis=-1, keepdims=True)
    return centered * jax.lax.rsqrt(var + eps) * gamma + beta


def ffn_ln_kernel(x_ref, w1_ref, b1_ref, w2_ref, b2_ref, g_ref, beta_ref,
                  o_ref, *scratch, eps, num_k):
    # Grid: (row tile i, 4H chunk k). Per step:
    #   x_ref:  (tm, H)  f32 activations (resident over k)
    #   w1_ref: (H, cn)  bf16 dense1 weight chunk (columns of 4H)
    #   b1_ref: (1, cn)  f32 dense1 bias chunk
    #   w2_ref: (cn, H)  bf16 dense2 weight chunk (rows of 4H)
    #   b2_ref, g_ref, beta_ref: (1, H) f32
    #   o_ref:  (tm, H)  output tile (written on last k)
    if num_k == 1:
        # Fast path: whole 4H in one chunk — no accumulator scratch at all.
        x_f32 = x_ref[...]
        h = jnp.dot(x_f32.astype(jnp.bfloat16), w1_ref[...],
                    preferred_element_type=jnp.float32)
        h = _fast_gelu(h + b1_ref[...])
        y = jnp.dot(h.astype(jnp.bfloat16), w2_ref[...],
                    preferred_element_type=jnp.float32)
        y = y + b2_ref[...] + x_f32
        o_ref[...] = _layernorm(y, g_ref[...], beta_ref[...], eps).astype(o_ref.dtype)
        return

    acc_ref, xb_ref = scratch
    k = pl.program_id(1)

    @pl.when(k == 0)
    def _():
        acc_ref[...] = jnp.zeros_like(acc_ref)
        # Cast the resident x row tile to bf16 once per row tile, not per k step.
        xb_ref[...] = x_ref[...].astype(jnp.bfloat16)

    # dense1 chunk + fast_gelu: bf16 MXU matmul, f32 accumulation.
    h = jnp.dot(xb_ref[...], w1_ref[...], preferred_element_type=jnp.float32)
    h = _fast_gelu(h + b1_ref[...])

    # dense2 chunk: (tm, H) partial in f32.
    partial = jnp.dot(h.astype(jnp.bfloat16), w2_ref[...],
                      preferred_element_type=jnp.float32)

    @pl.when(k < num_k - 1)
    def _():
        acc_ref[...] += partial

    # Last chunk: consume the partial directly (no acc store+reload), then fuse
    # bias + residual + LayerNorm in f32.
    @pl.when(k == num_k - 1)
    def _():
        y = acc_ref[...] + partial + b2_ref[...] + x_ref[...]
        o_ref[...] = _layernorm(y, g_ref[...], beta_ref[...], eps).astype(o_ref.dtype)


def _vmem_budget_bytes():
    """~75% of physical VMEM: 96 MiB on 128-MiB parts (v5e/v6e), 48 MiB on v7x."""
    try:
        cap = int(pltpu.get_tpu_info().vmem_capacity_bytes)
    except Exception:
        cap = 64 << 20  # conservative fallback (v7x-sized)
    return min(int(0.75 * cap), cap - (8 << 20))


def _tile_vmem_bytes(tm, cn, H, num_k):
    b = 2 * tm * H * 4        # x row tile (f32), double-buffered
    b += 2 * tm * H * 4       # output tile (f32), double-buffered
    b += 2 * H * cn * 2       # w1 chunk (bf16), double-buffered
    b += 2 * cn * H * 2       # w2 chunk (bf16), double-buffered
    b += 2 * cn * 4           # b1 chunk (f32, (1, cn)), double-buffered
    b += 2 * 3 * H * 4        # b2 / gamma / beta (f32), double-buffered
    if num_k > 1:
        b += tm * H * 4       # f32 accumulator scratch
        b += tm * H * 2       # bf16 x scratch
    return b


def _pick_tiles(M, H, H4, budget, tm_max=1024):
    """Largest tm (cuts weight re-streaming), then largest cn (cuts k-step count)
    that fits the VMEM budget, subject to TPU (8, 128) layout constraints."""
    tm_cands = [t for t in range(min(M, tm_max), 7, -8) if M % t == 0]
    if not tm_cands:
        tm_cands = [M]  # whole array as one tile (block == full dim is layout-legal)
    cn_cands = sorted({c for c in range(128, H4, 128) if H4 % c == 0} | {H4},
                      reverse=True)

    tm, cn = tm_cands[-1], cn_cands[-1]
    for t in tm_cands:
        found = False
        for c in cn_cands:
            if _tile_vmem_bytes(t, c, H, H4 // c) <= budget:
                tm, cn, found = t, c, True
                break
        if found:
            break

    # Feed both v7x TensorCores when the problem is big enough to be compute-bound
    # (the "parallel" row axis needs extent >= 2); toy sizes stay a single tile.
    if M // tm == 1 and M >= 512 and M % 2 == 0 and (M // 2) % 8 == 0:
        tm = M // 2
    return tm, cn


def ait_simple_model(x, w1, b1, w2, b2, gamma, beta, *, eps=1e-5):
    """x: (M, H) float32. w1: (H, 4H), w2: (4H, H) (pre-transposed, in->out).

    Returns (M, H) float32.
    """
    M, H = x.shape
    H4 = w1.shape[1]

    vmem_budget = _vmem_budget_bytes()
    tm, cn = _pick_tiles(M, H, H4, vmem_budget)
    num_k = H4 // cn
    grid = (M // tm, num_k)

    # bf16 matmul operands (f32 accumulation happens on the MXU).
    w1_bf16 = w1.astype(jnp.bfloat16)
    w2_bf16 = w2.astype(jnp.bfloat16)
    # Biases / LN params stay f32 and 2-D so they tile cleanly on TPU.
    b1_2d = b1.reshape(1, H4).astype(jnp.float32)
    b2_2d = b2.reshape(1, H).astype(jnp.float32)
    g_2d = gamma.reshape(1, H).astype(jnp.float32)
    beta_2d = beta.reshape(1, H).astype(jnp.float32)

    kernel = functools.partial(ffn_ln_kernel, eps=eps, num_k=num_k)

    scratch_shapes = []
    if num_k > 1:
        scratch_shapes = [pltpu.VMEM((tm, H), jnp.float32),   # f32 accumulator
                          pltpu.VMEM((tm, H), jnp.bfloat16)]  # bf16 x tile

    num_row_tiles = M // tm
    cost = pl.CostEstimate(
        flops=4 * M * H * H4,                          # two matmuls (2*M*H*4H each)
        transcendentals=M * H4,                        # tanh in fast_gelu
        bytes_accessed=(2 * M * H * 4                  # x in + out
                        + num_row_tiles * 2 * H * H4 * 2       # w1 + w2 re-streamed / row tile
                        + num_row_tiles * (H4 + 3 * H) * 4),   # biases / LN params / row tile
    )

    return pl.pallas_call(
        kernel,
        out_shape=jax.ShapeDtypeStruct((M, H), x.dtype),
        grid_spec=pltpu.PrefetchScalarGridSpec(
            num_scalar_prefetch=0,
            grid=grid,
            in_specs=[
                pl.BlockSpec((tm, H), lambda i, k: (i, 0)),   # x row tile (resident over k)
                pl.BlockSpec((H, cn), lambda i, k: (0, k)),   # w1 chunk (cols of 4H)
                pl.BlockSpec((1, cn), lambda i, k: (0, k)),   # b1 chunk
                pl.BlockSpec((cn, H), lambda i, k: (k, 0)),   # w2 chunk (rows of 4H)
                pl.BlockSpec((1, H), lambda i, k: (0, 0)),    # b2
                pl.BlockSpec((1, H), lambda i, k: (0, 0)),    # gamma
                pl.BlockSpec((1, H), lambda i, k: (0, 0)),    # beta
            ],
            out_specs=pl.BlockSpec((tm, H), lambda i, k: (i, 0)),
            scratch_shapes=scratch_shapes,
        ),
        compiler_params=pltpu.CompilerParams(
            dimension_semantics=("parallel", "arbitrary"),
            vmem_limit_bytes=int(vmem_budget),
        ),
        cost_estimate=cost,
    )(x, w1_bf16, b1_2d, w2_bf16, b2_2d, g_2d, beta_2d)


def reference(x, w1, b1, w2, b2, gamma, beta, eps=1e-5):
    # Same mixed precision as the kernel: bf16 matmul operands, f32 accumulation,
    # f32 gelu, residual and LayerNorm.
    xb = x.astype(jnp.bfloat16)
    h = jnp.dot(xb, w1.astype(jnp.bfloat16),
                preferred_element_type=jnp.float32) + b1
    h = _fast_gelu(h)
    y = jnp.dot(h.astype(jnp.bfloat16), w2.astype(jnp.bfloat16),
                preferred_element_type=jnp.float32) + b2 + x
    mean = jnp.mean(y, axis=-1, keepdims=True)
    var = jnp.mean((y - mean) ** 2, axis=-1, keepdims=True)
    return (y - mean) * jax.lax.rsqrt(var + eps) * gamma + beta


if __name__ == "__main__":
    # Module spec fixes hidden=512; small batch=2, seq=8 -> M=16 rows.
    hidden = 512
    batch, seq = 2, 8
    M = batch * seq

    key = jax.random.PRNGKey(0)
    kx, kw1, kb1, kw2, kb2 = jax.random.split(key, 5)

    x = jax.random.normal(kx, (M, hidden), dtype=jnp.float32)

    # PyTorch Linear weight is (out, in); kernel uses the transposed (in, out) layout.
    w1 = jax.random.normal(kw1, (hidden, 4 * hidden), dtype=jnp.float32) * 0.02
    b1 = jax.random.normal(kb1, (4 * hidden,), dtype=jnp.float32) * 0.02
    w2 = jax.random.normal(kw2, (4 * hidden, hidden), dtype=jnp.float32) * 0.02
    b2 = jax.random.normal(kb2, (hidden,), dtype=jnp.float32) * 0.02
    gamma = jnp.ones((hidden,), dtype=jnp.float32)
    beta = jnp.zeros((hidden,), dtype=jnp.float32)

    out = ait_simple_model(x, w1, b1, w2, b2, gamma, beta)
    out = jax.block_until_ready(out)

    ref = reference(x, w1, b1, w2, b2, gamma, beta)
    assert out.shape == (M, hidden)
    # Tolerance accounts for bf16 matmul operands / f32 accumulation order.
    assert jnp.allclose(out, ref, atol=1e-2, rtol=1e-2), "mismatch vs reference"

    print("KERNEL_OK")
</pallas_src>

<mosaic_0001>
module attributes {stable_mosaic.version = 11 : i64} {
  func.func @ffn_ln_kernel(%arg0: i32, %arg1: i32, %arg2: memref<16x512xf32, #tpu.memory_space<vmem>>, %arg3: memref<512x2048xbf16, #tpu.memory_space<vmem>>, %arg4: memref<1x2048xf32, #tpu.memory_space<vmem>>, %arg5: memref<2048x512xbf16, #tpu.memory_space<vmem>>, %arg6: memref<1x512xf32, #tpu.memory_space<vmem>>, %arg7: memref<1x512xf32, #tpu.memory_space<vmem>>, %arg8: memref<1x512xf32, #tpu.memory_space<vmem>>, %arg9: memref<16x512xf32, #tpu.memory_space<vmem>>) attributes {dimension_semantics = [#tpu.dimension_semantics<parallel>, #tpu.dimension_semantics<arbitrary>], iteration_bounds = array<i64: 1, 1>, scalar_prefetch = 0 : i64, scratch_operands = 0 : i64, tpu.core_type = #tpu.core_type<tc>, window_params = [{transform_indices = @transform_0, window_bounds = array<i64: 16, 512>}, {transform_indices = @transform_1, window_bounds = array<i64: 512, 2048>}, {transform_indices = @transform_2, window_bounds = array<i64: 1, 2048>}, {transform_indices = @transform_3, window_bounds = array<i64: 2048, 512>}, {pipeline_mode = #tpu.pipeline_mode<synchronous>, transform_indices = @transform_4, window_bounds = array<i64: 1, 512>}, {pipeline_mode = #tpu.pipeline_mode<synchronous>, transform_indices = @transform_5, window_bounds = array<i64: 1, 512>}, {pipeline_mode = #tpu.pipeline_mode<synchronous>, transform_indices = @transform_6, window_bounds = array<i64: 1, 512>}, {transform_indices = @transform_7, window_bounds = array<i64: 16, 512>}]} {
    %c0 = arith.constant 0 : index
    %c0_0 = arith.constant 0 : index
    %0 = vector.load %arg2[%c0, %c0_0] : memref<16x512xf32, #tpu.memory_space<vmem>>, vector<16x512xf32>
    %1 = arith.truncf %0 : vector<16x512xf32> to vector<16x512xbf16>
    %c0_1 = arith.constant 0 : index
    %c0_2 = arith.constant 0 : index
    %2 = vector.load %arg3[%c0_1, %c0_2] : memref<512x2048xbf16, #tpu.memory_space<vmem>>, vector<512x2048xbf16>
    %cst = arith.constant dense<0.000000e+00> : vector<16x2048xf32>
    %3 = tpu.matmul %1, %2, %cst {dimension_numbers = #tpu.dot_dimension_numbers<[1], [0], [0], [1], [0, 0, 1, 1], [], []>} : vector<16x512xbf16>, vector<512x2048xbf16>, vector<16x2048xf32> -> vector<16x2048xf32>
    %c0_3 = arith.constant 0 : index
    %c0_4 = arith.constant 0 : index
    %4 = vector.load %arg4[%c0_3, %c0_4] : memref<1x2048xf32, #tpu.memory_space<vmem>>, vector<1x2048xf32>
    %5 = vector.broadcast %4 : vector<1x2048xf32> to vector<16x2048xf32>
    %6 = arith.addf %3, %5 : vector<16x2048xf32>
    %cst_5 = arith.constant 5.000000e-01 : f32
    %7 = vector.broadcast %cst_5 : f32 to vector<16x2048xf32>
    %8 = arith.mulf %7, %6 : vector<16x2048xf32>
    %cst_6 = arith.constant 4.471500e-02 : f32
    %9 = vector.broadcast %cst_6 : f32 to vector<16x2048xf32>
    %10 = arith.mulf %9, %6 : vector<16x2048xf32>
    %11 = arith.mulf %10, %6 : vector<16x2048xf32>
    %12 = arith.mulf %11, %6 : vector<16x2048xf32>
    %13 = arith.addf %6, %12 : vector<16x2048xf32>
    %cst_7 = arith.constant 0.797884583 : f32
    %14 = vector.broadcast %cst_7 : f32 to vector<16x2048xf32>
    %15 = arith.mulf %14, %13 : vector<16x2048xf32>
    %16 = math.tanh %15 : vector<16x2048xf32>
    %cst_8 = arith.constant 1.000000e+00 : f32
    %17 = vector.broadcast %cst_8 : f32 to vector<16x2048xf32>
    %18 = arith.addf %17, %16 : vector<16x2048xf32>
    %19 = arith.mulf %8, %18 : vector<16x2048xf32>
    %20 = arith.truncf %19 : vector<16x2048xf32> to vector<16x2048xbf16>
    %c0_9 = arith.constant 0 : index
    %c0_10 = arith.constant 0 : index
    %21 = vector.load %arg5[%c0_9, %c0_10] : memref<2048x512xbf16, #tpu.memory_space<vmem>>, vector<2048x512xbf16>
    %cst_11 = arith.constant dense<0.000000e+00> : vector<16x512xf32>
    %22 = tpu.matmul %20, %21, %cst_11 {dimension_numbers = #tpu.dot_dimension_numbers<[1], [0], [0], [1], [0, 0, 1, 1], [], []>} : vector<16x2048xbf16>, vector<2048x512xbf16>, vector<16x512xf32> -> vector<16x512xf32>
    %c0_12 = arith.constant 0 : index
    %c0_13 = arith.constant 0 : index
    %23 = vector.load %arg6[%c0_12, %c0_13] : memref<1x512xf32, #tpu.memory_space<vmem>>, vector<1x512xf32>
    %24 = vector.broadcast %23 : vector<1x512xf32> to vector<16x512xf32>
    %25 = arith.addf %22, %24 : vector<16x512xf32>
    %26 = arith.addf %25, %0 : vector<16x512xf32>
    %c0_14 = arith.constant 0 : index
    %c0_15 = arith.constant 0 : index
    %27 = vector.load %arg7[%c0_14, %c0_15] : memref<1x512xf32, #tpu.memory_space<vmem>>, vector<1x512xf32>
    %c0_16 = arith.constant 0 : index
    %c0_17 = arith.constant 0 : index
    %28 = vector.load %arg8[%c0_16, %c0_17] : memref<1x512xf32, #tpu.memory_space<vmem>>, vector<1x512xf32>
    %cst_18 = arith.constant dense<0.000000e+00> : vector<16xf32>
    %29 = vector.multi_reduction <add>, %26, %cst_18 [1] : vector<16x512xf32> to vector<16xf32>
    %30 = vector.shape_cast %29 : vector<16xf32> to vector<16x1xf32>
    %cst_19 = arith.constant 5.120000e+02 : f32
    %31 = vector.broadcast %cst_19 : f32 to vector<16x1xf32>
    %32 = arith.divf %30, %31 : vector<16x1xf32>
    %33 = vector.broadcast %32 : vector<16x1xf32> to vector<16x512xf32>
    %34 = arith.subf %26, %33 : vector<16x512xf32>
    %35 = arith.mulf %34, %34 : vector<16x512xf32>
    %cst_20 = arith.constant dense<0.000000e+00> : vector<16xf32>
    %36 = vector.multi_reduction <add>, %35, %cst_20 [1] : vector<16x512xf32> to vector<16xf32>
    %37 = vector.shape_cast %36 : vector<16xf32> to vector<16x1xf32>
    %cst_21 = arith.constant 5.120000e+02 : f32
    %38 = vector.broadcast %cst_21 : f32 to vector<16x1xf32>
    %39 = arith.divf %37, %38 : vector<16x1xf32>
    %cst_22 = arith.constant 9.99999974E-6 : f32
    %40 = vector.broadcast %cst_22 : f32 to vector<16x1xf32>
    %41 = arith.addf %39, %40 : vector<16x1xf32>
    %42 = math.rsqrt %41 : vector<16x1xf32>
    %43 = vector.broadcast %42 : vector<16x1xf32> to vector<16x512xf32>
    %44 = arith.mulf %34, %43 : vector<16x512xf32>
    %45 = vector.broadcast %27 : vector<1x512xf32> to vector<16x512xf32>
    %46 = arith.mulf %44, %45 : vector<16x512xf32>
    %47 = vector.broadcast %28 : vector<1x512xf32> to vector<16x512xf32>
    %48 = arith.addf %46, %47 : vector<16x512xf32>
    %c0_23 = arith.constant 0 : index
    %c0_24 = arith.constant 0 : index
    %49 = vector.load %arg9[%c0_23, %c0_24] : memref<16x512xf32, #tpu.memory_space<vmem>>, vector<16x512xf32>
    tpu.vector_store %arg9[%c0_23, %c0_24], %48 {strides = array<i32>} : memref<16x512xf32, #tpu.memory_space<vmem>>, vector<16x512xf32>,
    return
  }
  func.func @transform_0(%arg0: i32, %arg1: i32) -> (i32, i32) {
    %c0_i32 = arith.constant 0 : i32
    %c0_i32_0 = arith.constant 0 : i32
    return %arg0, %c0_i32 : i32, i32
  }
  func.func @transform_1(%arg0: i32, %arg1: i32) -> (i32, i32) {
    %c0_i32 = arith.constant 0 : i32
    %c0_i32_0 = arith.constant 0 : i32
    return %c0_i32, %arg1 : i32, i32
  }
  func.func @transform_2(%arg0: i32, %arg1: i32) -> (i32, i32) {
    %c0_i32 = arith.constant 0 : i32
    %c0_i32_0 = arith.constant 0 : i32
    return %c0_i32, %arg1 : i32, i32
  }
  func.func @transform_3(%arg0: i32, %arg1: i32) -> (i32, i32) {
    %c0_i32 = arith.constant 0 : i32
    %c0_i32_0 = arith.constant 0 : i32
    return %arg1, %c0_i32 : i32, i32
  }
  func.func @transform_4(%arg0: i32, %arg1: i32) -> (i32, i32) {
    %c0_i32 = arith.constant 0 : i32
    %c0_i32_0 = arith.constant 0 : i32
    %c0_i32_1 = arith.constant 0 : i32
    return %c0_i32, %c0_i32_0 : i32, i32
  }
  func.func @transform_5(%arg0: i32, %arg1: i32) -> (i32, i32) {
    %c0_i32 = arith.constant 0 : i32
    %c0_i32_0 = arith.constant 0 : i32
    %c0_i32_1 = arith.constant 0 : i32
    return %c0_i32, %c0_i32_0 : i32, i32
  }
  func.func @transform_6(%arg0: i32, %arg1: i32) -> (i32, i32) {
    %c0_i32 = arith.constant 0 : i32
    %c0_i32_0 = arith.constant 0 : i32
    %c0_i32_1 = arith.constant 0 : i32
    return %c0_i32, %c0_i32_0 : i32, i32
  }
  func.func @transform_7(%arg0: i32, %arg1: i32) -> (i32, i32) {
    %c0_i32 = arith.constant 0 : i32
    %c0_i32_0 = arith.constant 0 : i32
    return %arg0, %c0_i32 : i32, i32
  }
}

</mosaic_0001>

<bundles_post_ra>
// kernel: tpu_custom_call.1
= control target key start
LH: loop header
LB: loop body
LE: loop exit
PB: predicated region body
PF: predicated region fallthrough
CT: control target
= control target key end

     0   :  { %12 = vsyncpa [#allocation3], 0  ;;  %s11013_s0 = inlined_call_operand.hbm [shape: f32[16,512], index: 0, kind: input, shape index: {}]   ;;  %s11014_s1 = inlined_call_operand.hbm [shape: bf16[512,2048], index: 1, kind: input, shape index: {}]   ;;  %s11015_s2 = inlined_call_operand.hbm [shape: f32[1,2048], index: 2, kind: input, shape index: {}]   ;;  %s11016_s3 = inlined_call_operand.hbm [shape: bf16[2048,512], index: 3, kind: input, shape index: {}]   ;;  %s11017_s4 = inlined_call_operand.hbm [shape: f32[1,512], index: 4, kind: input, shape index: {}]   ;;  %s11018_s5 = inlined_call_operand.hbm [shape: f32[1,512], index: 5, kind: input, shape index: {}]   ;;  %s11019_s6 = inlined_call_operand.hbm [shape: f32[1,512], index: 6, kind: input, shape index: {}]   ;;  %s11020_s7 = inlined_call_operand.hbm [shape: f32[16,512], index: 7, kind: output, shape index: {}]  }
   0x1   :  { %13 = vsyncpa [#allocation6], 0 }
   0x2   :  { %14 = vsyncpa [#allocation9], 0 }
   0x3   :  { %15 = vsyncpa [#allocation12], 0 }
   0x4   :  { %16 = vsyncpa [#allocation4], 0  ;;  %s10402_s24 = smov [#allocation5]   ;;  %s10216_s28 = scalar_lea.hbm %s11014_s1, 65536 }
   0x5   :  { %s34_s25 = sshll.u32 %s10402_s24, 4  ;;  %p10217_p0 = scmp.ne.s32.totalorder %s11014_s1, %s10216_s28  ;;  %s35_s25 = int_to_ptr.vmem [resolvable:$true] %s34_s25 }
   0x6   :  { %p10220_p1 = scmp.lt.u32.totalorder %s10216_s28, %s11014_s1 }
   0x8   :  { %p10222_p2 = pnand %p10220_p1, %p10217_p0 }
   0xa   :  { %10225 = shalt.err (!%p10222_p2)
}
   0xb   :  { %s10226_s10 = scalar_lea.vmem %s35_s25, 65536  ;;  %p10231_p4 = scmp.lt.s32.totalorder %s35_s25, %s35_s25 }
   0xc   :  { %p10227_p3 = scmp.ne.s32.totalorder %s35_s25, %s10226_s10  ;;  %p10232_p5 = scmp.lt.s32.totalorder %s10226_s10, %s10226_s10 }
   0xe   :  { %p10233_p6 = por %p10232_p5, %p10231_p4 }
  0x10   :  { %p10234_p7 = pnand %p10233_p6, %p10227_p3 }
  0x12   :  { %10237 = shalt.err (!%p10234_p7)
}
  0x13   :  { %s10403_s11 = smov 1024   ;;  %s10404_s12 = smov 64  }
  0x14   :  { %40 = dma.hbm_to_vmem [thread:$0]  %s11014_s1, 65536, %s35_s25, [#allocation6], %s10403_s11, %s10403_s11, %s10404_s12  }
  0x15   :  { %s10405_s15 = smov [#allocation8]   ;;  %s10238_s19 = scalar_lea.hbm %s11016_s3, 65536 }
  0x16   :  { %s56_s16 = sshll.u32 %s10405_s15, 4  ;;  %p10239_p8 = scmp.ne.s32.totalorder %s11016_s3, %s10238_s19  ;;  %s57_s16 = int_to_ptr.vmem [resolvable:$true] %s56_s16 }
  0x17   :  { %p10242_p9 = scmp.lt.u32.totalorder %s10238_s19, %s11016_s3 }
  0x19   :  { %p10244_p10 = pnand %p10242_p9, %p10239_p8 }
  0x1b   :  { %10247 = shalt.err (!%p10244_p10)
}
  0x1c   :  { %s10248_s24 = scalar_lea.vmem %s57_s16, 65536  ;;  %p10253_p12 = scmp.lt.s32.totalorder %s57_s16, %s57_s16 }
  0x1d   :  { %p10249_p11 = scmp.ne.s32.totalorder %s57_s16, %s10248_s24  ;;  %p10254_p13 = scmp.lt.s32.totalorder %s10248_s24, %s10248_s24 }
  0x1f   :  { %p10255_p0 = por %p10254_p13, %p10253_p12 }
  0x21   :  { %p10256_p1 = pnand %p10255_p0, %p10249_p11 }
  0x23   :  { %10259 = shalt.err (!%p10256_p1)
}
  0x24   :  { %s10406_s1 = smov 256   ;;  %s10407_s25 = smov 16  }
  0x25   :  { %62 = dma.hbm_to_vmem [thread:$0]  %s11016_s3, 65536, %s57_s16, [#allocation9], %s10406_s1, %s10406_s1, %s10407_s25  }
  0x26   :  { %s10408_s28 = smov [#allocation11]   ;;  %s10409_s30 = smov [#allocation2]  }
  0x27   :  { %s79_s29 = sshll.u32 %s10408_s28, 4  ;;  %s22_s8 = sshll.u32 %s10409_s30, 4  ;;  %s80_s29 = int_to_ptr.vmem [resolvable:$true] %s79_s29  ;;  %s10480_s8 = int_to_ptr.vmem [resolvable:$true] %s22_s8 }
  0x28   :  { %s10260_s11 = scalar_lea.hbm %s11018_s5, 64 }
  0x29   :  { %p10261_p2 = scmp.ne.s32.totalorder %s11018_s5, %s10260_s11  ;;  %p10264_p3 = scmp.lt.u32.totalorder %s10260_s11, %s11018_s5 }
  0x2b   :  { %p10266_p4 = pnand %p10264_p3, %p10261_p2 }
  0x2d   :  { %10269 = shalt.err (!%p10266_p4)
}
  0x2e   :  { %s10270_s3 = scalar_lea.vmem %s80_s29, 64  ;;  %p10275_p6 = scmp.lt.s32.totalorder %s80_s29, %s80_s29 }
  0x2f   :  { %p10271_p5 = scmp.ne.s32.totalorder %s80_s29, %s10270_s3  ;;  %p10276_p7 = scmp.lt.s32.totalorder %s10270_s3, %s10270_s3 }
  0x31   :  { %p10277_p8 = por %p10276_p7, %p10275_p6 }
  0x33   :  { %p10278_p9 = pnand %p10277_p8, %p10271_p5 }
  0x35   :  { %10281 = shalt.err (!%p10278_p9)
}
  0x36   :  { %82 = dma.hbm_to_vmem [thread:$0]  %s11018_s5, 64, %s80_s29, [#allocation12]  }
  0x37   :  { %s10282_s20 = scalar_lea.hbm %s11013_s0, 1024 }
  0x38   :  { %p10283_p10 = scmp.ne.s32.totalorder %s11013_s0, %s10282_s20  ;;  %p10286_p11 = scmp.lt.u32.totalorder %s10282_s20, %s11013_s0 }
  0x3a   :  { %p10288_p12 = pnand %p10286_p11, %p10283_p10 }
  0x3c   :  { %10291 = shalt.err (!%p10288_p12)
}
  0x3d   :  { %s10292_s1 = scalar_lea.vmem %s10480_s8, 1024  ;;  %p10297_p0 = scmp.lt.s32.totalorder %s10480_s8, %s10480_s8 }
  0x3e   :  { %p10293_p13 = scmp.ne.s32.totalorder %s10480_s8, %s10292_s1  ;;  %p10298_p1 = scmp.lt.s32.totalorder %s10292_s1, %s10292_s1 }
  0x40   :  { %p10299_p2 = por %p10298_p1, %p10297_p0 }
  0x42   :  { %p10300_p3 = pnand %p10299_p2, %p10293_p13 }
  0x44   :  { %10303 = shalt.err (!%p10300_p3)
}
  0x45   :  { %s10410_s5 = smov 512   ;;  %s10411_s25 = smov 32  }
  0x46   :  { %28 = dma.hbm_to_vmem [thread:$0]  %s11013_s0, 1024, %s10480_s8, [#allocation3], %s10410_s5, %s10410_s5, %s10411_s25  }
  0x47   :  { %s10412_s28 = smov [#allocation7]   ;;  %s10413_s30 = smov [#allocation10]  }
  0x48   :  { %s47_s29 = sshll.u32 %s10412_s28, 4  ;;  %s69_s9 = sshll.u32 %s10413_s30, 4  ;;  %s48_s29 = int_to_ptr.vmem [resolvable:$true] %s47_s29  ;;  %s70_s9 = int_to_ptr.vmem [resolvable:$true] %s69_s9 }
  0x49   :  { %s10304_s12 = scalar_lea.hbm %s11015_s2, 256 }
  0x4a   :  { %p10305_p4 = scmp.ne.s32.totalorder %s11015_s2, %s10304_s12  ;;  %p10308_p5 = scmp.lt.u32.totalorder %s10304_s12, %s11015_s2 }
  0x4c   :  { %p10310_p6 = pnand %p10308_p5, %p10305_p4 }
  0x4e   :  { %10313 = shalt.err (!%p10310_p6)
}
  0x4f   :  { %s10314_s0 = scalar_lea.vmem %s48_s29, 256  ;;  %p10319_p8 = scmp.lt.s32.totalorder %s48_s29, %s48_s29 }
  0x50   :  { %p10315_p7 = scmp.ne.s32.totalorder %s48_s29, %s10314_s0  ;;  %p10320_p9 = scmp.lt.s32.totalorder %s10314_s0, %s10314_s0 }
  0x52   :  { %p10321_p10 = por %p10320_p9, %p10319_p8 }
  0x54   :  { %p10322_p11 = pnand %p10321_p10, %p10315_p7 }
  0x56   :  { %10325 = shalt.err (!%p10322_p11)
}
  0x57   :  { %50 = dma.hbm_to_vmem [thread:$0]  %s11015_s2, 256, %s48_s29, [#allocation6]  }
  0x58   :  { %s10326_s19 = scalar_lea.hbm %s11017_s4, 64 }
  0x59   :  { %p10327_p12 = scmp.ne.s32.totalorder %s11017_s4, %s10326_s19  ;;  %p10330_p13 = scmp.lt.u32.totalorder %s10326_s19, %s11017_s4 }
  0x5b   :  { %p10332_p0 = pnand %p10330_p13, %p10327_p12 }
  0x5d   :  { %10335 = shalt.err (!%p10332_p0)
}
  0x5e   :  { %s10336_s24 = scalar_lea.vmem %s70_s9, 64  ;;  %p10341_p2 = scmp.lt.s32.totalorder %s70_s9, %s70_s9 }
  0x5f   :  { %p10337_p1 = scmp.ne.s32.totalorder %s70_s9, %s10336_s24  ;;  %p10342_p3 = scmp.lt.s32.totalorder %s10336_s24, %s10336_s24 }
  0x61   :  { %p10343_p4 = por %p10342_p3, %p10341_p2 }
  0x63   :  { %p10344_p5 = pnand %p10343_p4, %p10337_p1 }
  0x65   :  { %10347 = shalt.err (!%p10344_p5)
}
  0x66   :  { %72 = dma.hbm_to_vmem [thread:$0]  %s11017_s4, 64, %s70_s9, [#allocation9]  }
  0x67   :  { %s10414_s26 = smov [#allocation13]   ;;  %s10348_s30 = scalar_lea.hbm %s11019_s6, 64 }
  0x68   :  { %s89_s27 = sshll.u32 %s10414_s26, 4  ;;  %p10349_p6 = scmp.ne.s32.totalorder %s11019_s6, %s10348_s30  ;;  %s90_s27 = int_to_ptr.vmem [resolvable:$true] %s89_s27 }
  0x69   :  { %p10352_p7 = scmp.lt.u32.totalorder %s10348_s30, %s11019_s6 }
  0x6b   :  { %p10354_p8 = pnand %p10352_p7, %p10349_p6 }
  0x6d   :  { %10357 = shalt.err (!%p10354_p8)
}
  0x6e   :  { %s10358_s14 = scalar_lea.vmem %s90_s27, 64  ;;  %p10363_p10 = scmp.lt.s32.totalorder %s90_s27, %s90_s27 }
  0x6f   :  { %p10359_p9 = scmp.ne.s32.totalorder %s90_s27, %s10358_s14  ;;  %p10364_p11 = scmp.lt.s32.totalorder %s10358_s14, %s10358_s14 }
  0x71   :  { %p10365_p12 = por %p10364_p11, %p10363_p10 }
  0x73   :  { %p10366_p13 = pnand %p10365_p12, %p10359_p9 }
  0x75   :  { %10369 = shalt.err (!%p10366_p13)
}
  0x76   :  { %92 = dma.hbm_to_vmem [thread:$0]  %s11019_s6, 64, %s90_s27, [#allocation12]  }
  0x77   :  { %10392 = dma.done.wait [#allocation3], 1024  }
  0x78   :  { %10393 = vsyncadd [#allocation3], 4294966272 }
  0x79   :  { %10394 = dma.done.wait [#allocation6], 65792  }
  0x7a   :  { %10395 = vsyncadd [#allocation6], 4294901504 }
  0x7b   :  { %10396 = dma.done.wait [#allocation9], 65600  }
  0x7c   :  { %10397 = vsyncadd [#allocation9], 4294901696 }
  0x7d   :  { %10398 = dma.done.wait [#allocation12], 128  }
  0x7e   :  { %10399 = vsyncadd [#allocation12], 4294967168  ;;  %v126_v0 = vld [vmem:[#allocation5] sm:$0xff]  ;;  %v127_v2 = vld [vmem:[#allocation5 + $0x8] sm:$0xff]  ;;  %s10415_s6 = smov [#allocation14]  }
  0x7f   :  { %v134_v1 = vld [vmem:[#allocation5 + $0x40] sm:$0xff]  ;;  %v135_v4 = vld [vmem:[#allocation5 + $0x48] sm:$0xff]  ;;  %s8190_s15 = sshll.u32 %s10415_s6, 4  ;;  %s8191_s15 = int_to_ptr.vmem [resolvable:$true] %s8190_s15 }
  0x80   :  { %v8206_v3 = vcombine.high %v126_v0, %v134_v1  ;;  %v8205_v5 = vcombine.low %v126_v0, %v134_v1  ;;  %v142_v6 = vld [vmem:[#allocation5 + $0x80] sm:$0xff]  ;;  %v8208_v8 = vcombine.high %v127_v2, %v135_v4  ;;  %v8207_v9 = vcombine.low %v127_v2, %v135_v4  ;;  %v143_v11 = vld [vmem:[#allocation5 + $0x88] sm:$0xff]  ;;  %s10370_s3 = scalar_lea.vmem %s8191_s15, 1024  ;;  %p10375_p1 = scmp.lt.s32.totalorder %s8191_s15, %s8191_s15 }
  0x81   :  { %v150_v7 = vld [vmem:[#allocation5 + $0xc0] sm:$0xff]  ;;  %v151_v12 = vld [vmem:[#allocation5 + $0xc8] sm:$0xff]  ;;  %p10371_p0 = scmp.ne.s32.totalorder %s8191_s15, %s10370_s3  ;;  %p10376_p2 = scmp.lt.s32.totalorder %s10370_s3, %s10370_s3 }
  0x82   :  { %v8222_v10 = vcombine.high %v142_v6, %v150_v7  ;;  %v158_v13 = vld [vmem:[#allocation5 + $0x100] sm:$0xff]  ;;  %3282 = vmatprep.subr.bf16.mxu0 %v8206_v3  ;;  %v8224_v14 = vcombine.high %v143_v11, %v151_v12  ;;  %v159_v16 = vld [vmem:[#allocation5 + $0x108] sm:$0xff]  ;;  %3368 = vmatprep.subr.bf16.mxu1 %v8208_v8  ;;  %v8221_v18 = vcombine.low %v142_v6, %v150_v7 }
  0x83   :  { %v166_v15 = vld [vmem:[#allocation5 + $0x140] sm:$0xff]  ;;  %v167_v17 = vld [vmem:[#allocation5 + $0x148] sm:$0xff]  ;;  %3283 = vmatpush1.bf16.msra.mxu0 %v8205_v5  ;;  %3369 = vmatpush1.bf16.msra.mxu1 %v8207_v9  ;;  %v8223_v19 = vcombine.low %v143_v11, %v151_v12  ;;  %p10377_p3 = por %p10376_p2, %p10375_p1 }
  0x84   :  { %3284 = vmatprep.subr.bf16.mxu0 %v8222_v10  ;;  %v8238_v20 = vcombine.high %v158_v13, %v166_v15  ;;  %3370 = vmatprep.subr.bf16.mxu1 %v8224_v14  ;;  %v8240_v21 = vcombine.high %v159_v16, %v167_v17  ;;  %v174_v22 = vld [vmem:[#allocation5 + $0x180] sm:$0xff]  ;;  %v175_v24 = vld [vmem:[#allocation5 + $0x188] sm:$0xff]  ;;  %v8237_v26 = vcombine.low %v158_v13, %v166_v15 }
  0x85   :  { %v182_v23 = vld [vmem:[#allocation5 + $0x1c0] sm:$0xff]  ;;  %v183_v25 = vld [vmem:[#allocation5 + $0x1c8] sm:$0xff]  ;;  %v8239_v27 = vcombine.low %v159_v16, %v167_v17  ;;  %p10378_p4 = pnand %p10377_p3, %p10371_p0 }
  0x86   :  { %v8254_v28 = vcombine.high %v174_v22, %v182_v23  ;;  %v8256_v29 = vcombine.high %v175_v24, %v183_v25  ;;  %v190_v30 = vld [vmem:[#allocation5 + $0x200] sm:$0xff]  ;;  %v191_v32 = vld [vmem:[#allocation5 + $0x208] sm:$0xff]  ;;  %v8253_v34 = vcombine.low %v174_v22, %v182_v23  ;;  %v8255_v35 = vcombine.low %v175_v24, %v183_v25 }
  0x87   :  { %3285 = vmatpush1.bf16.msra.mxu0 %v8221_v18  ;;  %3371 = vmatpush1.bf16.msra.mxu1 %v8223_v19  ;;  %v198_v31 = vld [vmem:[#allocation5 + $0x240] sm:$0xff]  ;;  %v199_v33 = vld [vmem:[#allocation5 + $0x248] sm:$0xff] }
  0x88   :  { %3286 = vmatprep.subr.bf16.mxu0 %v8238_v20  ;;  %3372 = vmatprep.subr.bf16.mxu1 %v8240_v21  ;;  %v8270_v36 = vcombine.high %v190_v30, %v198_v31  ;;  %v8272_v37 = vcombine.high %v191_v32, %v199_v33  ;;  %v206_v38 = vld [vmem:[#allocation5 + $0x280] sm:$0xff]  ;;  %v207_v40 = vld [vmem:[#allocation5 + $0x288] sm:$0xff]  ;;  %v8269_v42 = vcombine.low %v190_v30, %v198_v31 }
  0x89   :  { %v214_v39 = vld [vmem:[#allocation5 + $0x2c0] sm:$0xff]  ;;  %v215_v41 = vld [vmem:[#allocation5 + $0x2c8] sm:$0xff]  ;;  %v8271_v43 = vcombine.low %v191_v32, %v199_v33 }
  0x8a   :  { %v8286_v44 = vcombine.high %v206_v38, %v214_v39  ;;  %v8288_v45 = vcombine.high %v207_v40, %v215_v41  ;;  %v222_v46 = vld [vmem:[#allocation5 + $0x300] sm:$0xff]  ;;  %v223_v48 = vld [vmem:[#allocation5 + $0x308] sm:$0xff]  ;;  %v8285_v50 = vcombine.low %v206_v38, %v214_v39  ;;  %v8287_v51 = vcombine.low %v207_v40, %v215_v41 }
  0x8b   :  { %3287 = vmatpush1.bf16.msra.mxu0 %v8237_v26  ;;  %3373 = vmatpush1.bf16.msra.mxu1 %v8239_v27  ;;  %v230_v47 = vld [vmem:[#allocation5 + $0x340] sm:$0xff]  ;;  %v231_v49 = vld [vmem:[#allocation5 + $0x348] sm:$0xff] }
  0x8c   :  { %3288 = vmatprep.subr.bf16.mxu0 %v8254_v28  ;;  %3374 = vmatprep.subr.bf16.mxu1 %v8256_v29  ;;  %v8302_v52 = vcombine.high %v222_v46, %v230_v47  ;;  %v115_v53 = vld [vmem:[#allocation2 + $0x8] sm:$0xff]  ;;  %v8304_v55 = vcombine.high %v223_v48, %v231_v49  ;;  %v238_v56 = vld [vmem:[#allocation5 + $0x380] sm:$0xff]  ;;  %v8301_v61 = vcombine.low %v222_v46, %v230_v47 }
  0x8d   :  { %v119_v54 = vld [vmem:[#allocation2 + $0x28] sm:$0xff]  ;;  %v246_v57 = vld [vmem:[#allocation5 + $0x3c0] sm:$0xff]  ;;  %v8303_v62 = vcombine.low %v223_v48, %v231_v49 }
  0x8e   :  { %v10550_v58 = vpack.c.bf16 %v119_v54, %v115_v53  ;;  %v239_v59 = vld [vmem:[#allocation5 + $0x388] sm:$0xff]  ;;  %v8318_v63 = vcombine.high %v238_v56, %v246_v57  ;;  %v254_v1 = vld [vmem:[#allocation5 + $0x400] sm:$0xff]  ;;  %v8317_v5 = vcombine.low %v238_v56, %v246_v57 }
  0x8f   :  { %3289 = vmatpush1.bf16.msra.mxu0 %v8253_v34  ;;  %3375 = vmatpush1.bf16.msra.mxu1 %v8255_v35  ;;  %v247_v60 = vld [vmem:[#allocation5 + $0x3c8] sm:$0xff]  ;;  %v262_v2 = vld [vmem:[#allocation5 + $0x440] sm:$0xff] }
  0x90   :  { %3290 = vmatprep.subr.bf16.mxu0 %v8270_v36  ;;  %3376 = vmatprep.subr.bf16.mxu1 %v8272_v37  ;;  %v8320_v0 = vcombine.high %v239_v59, %v247_v60  ;;  %v255_v3 = vld [vmem:[#allocation5 + $0x408] sm:$0xff]  ;;  %v8319_v6 = vcombine.low %v239_v59, %v247_v60  ;;  %v8334_v7 = vcombine.high %v254_v1, %v262_v2  ;;  %v270_v9 = vld [vmem:[#allocation5 + $0x480] sm:$0xff] }
  0x91   :  { %3314 = vmatprep.mubr.bf16.mxu0 %v10550_v58  ;;  %3400 = vmatprep.mubr.bf16.mxu1 %v10550_v58  ;;  %v263_v4 = vld [vmem:[#allocation5 + $0x448] sm:$0xff]  ;;  %v278_v10 = vld [vmem:[#allocation5 + $0x4c0] sm:$0xff]  ;;  %v8333_v13 = vcombine.low %v254_v1, %v262_v2 }
  0x92   :  { %v8336_v8 = vcombine.high %v255_v3, %v263_v4  ;;  %v271_v11 = vld [vmem:[#allocation5 + $0x488] sm:$0xff]  ;;  %v8335_v14 = vcombine.low %v255_v3, %v263_v4  ;;  %v8350_v15 = vcombine.high %v270_v9, %v278_v10  ;;  %v286_v17 = vld [vmem:[#allocation5 + $0x500] sm:$0xff]  ;;  %v8349_v21 = vcombine.low %v270_v9, %v278_v10 }
  0x93   :  { %3291 = vmatpush1.bf16.msra.mxu0 %v8269_v42  ;;  %3377 = vmatpush1.bf16.msra.mxu1 %v8271_v43  ;;  %v279_v12 = vld [vmem:[#allocation5 + $0x4c8] sm:$0xff]  ;;  %v294_v18 = vld [vmem:[#allocation5 + $0x540] sm:$0xff] }
  0x94   :  { %3292 = vmatprep.subr.bf16.mxu0 %v8286_v44  ;;  %3378 = vmatprep.subr.bf16.mxu1 %v8288_v45  ;;  %v8352_v16 = vcombine.high %v271_v11, %v279_v12  ;;  %v287_v19 = vld [vmem:[#allocation5 + $0x508] sm:$0xff]  ;;  %v8351_v22 = vcombine.low %v271_v11, %v279_v12  ;;  %v8366_v23 = vcombine.high %v286_v17, %v294_v18  ;;  %v302_v25 = vld [vmem:[#allocation5 + $0x580] sm:$0xff] }
  0x95   :  { %v295_v20 = vld [vmem:[#allocation5 + $0x548] sm:$0xff]  ;;  %v310_v26 = vld [vmem:[#allocation5 + $0x5c0] sm:$0xff]  ;;  %v8365_v29 = vcombine.low %v286_v17, %v294_v18  ;;  %v117_v17 = vld [vmem:[#allocation2 + $0x18] sm:$0xff] }
  0x96   :  { %v8368_v24 = vcombine.high %v287_v19, %v295_v20  ;;  %v303_v27 = vld [vmem:[#allocation5 + $0x588] sm:$0xff]  ;;  %v8367_v30 = vcombine.low %v287_v19, %v295_v20  ;;  %v8382_v31 = vcombine.high %v302_v25, %v310_v26  ;;  %v318_v33 = vld [vmem:[#allocation5 + $0x600] sm:$0xff]  ;;  %v8381_v37 = vcombine.low %v302_v25, %v310_v26  ;;  %v121_v18 = vld [vmem:[#allocation2 + $0x38] sm:$0xff] }
  0x97   :  { %3293 = vmatpush1.bf16.msra.mxu0 %v8285_v50  ;;  %3379 = vmatpush1.bf16.msra.mxu1 %v8287_v51  ;;  %v311_v28 = vld [vmem:[#allocation5 + $0x5c8] sm:$0xff]  ;;  %v326_v34 = vld [vmem:[#allocation5 + $0x640] sm:$0xff]  ;;  %v10556_v25 = vpack.c.bf16 %v121_v18, %v117_v17 }
  0x98   :  { %3294 = vmatprep.subr.bf16.mxu0 %v8302_v52  ;;  %3380 = vmatprep.subr.bf16.mxu1 %v8304_v55  ;;  %v8384_v32 = vcombine.high %v303_v27, %v311_v28  ;;  %v319_v35 = vld [vmem:[#allocation5 + $0x608] sm:$0xff]  ;;  %v8383_v38 = vcombine.low %v303_v27, %v311_v28  ;;  %v8398_v39 = vcombine.high %v318_v33, %v326_v34  ;;  %v334_v41 = vld [vmem:[#allocation5 + $0x680] sm:$0xff] }
  0x99   :  { %v327_v36 = vld [vmem:[#allocation5 + $0x648] sm:$0xff]  ;;  %v342_v42 = vld [vmem:[#allocation5 + $0x6c0] sm:$0xff]  ;;  %v8397_v45 = vcombine.low %v318_v33, %v326_v34 }
  0x9a   :  { %v8400_v40 = vcombine.high %v319_v35, %v327_v36  ;;  %v335_v43 = vld [vmem:[#allocation5 + $0x688] sm:$0xff]  ;;  %v8399_v46 = vcombine.low %v319_v35, %v327_v36  ;;  %v8414_v47 = vcombine.high %v334_v41, %v342_v42  ;;  %v350_v49 = vld [vmem:[#allocation5 + $0x700] sm:$0xff]  ;;  %v8413_v53 = vcombine.low %v334_v41, %v342_v42 }
  0x9b   :  { %3295 = vmatpush1.bf16.msra.mxu0 %v8301_v61  ;;  %3381 = vmatpush1.bf16.msra.mxu1 %v8303_v62  ;;  %v343_v44 = vld [vmem:[#allocation5 + $0x6c8] sm:$0xff]  ;;  %v358_v50 = vld [vmem:[#allocation5 + $0x740] sm:$0xff] }
  0x9c   :  { %3296 = vmatprep.subr.bf16.mxu0 %v8318_v63  ;;  %3382 = vmatprep.subr.bf16.mxu1 %v8320_v0  ;;  %v8416_v48 = vcombine.high %v335_v43, %v343_v44  ;;  %v351_v51 = vld [vmem:[#allocation5 + $0x708] sm:$0xff]  ;;  %v8415_v54 = vcombine.low %v335_v43, %v343_v44  ;;  %v8430_v55 = vcombine.high %v350_v49, %v358_v50  ;;  %v366_v57 = vld [vmem:[#allocation5 + $0x780] sm:$0xff] }
  0x9d   :  { %v359_v52 = vld [vmem:[#allocation5 + $0x748] sm:$0xff]  ;;  %v374_v59 = vld [vmem:[#allocation5 + $0x7c0] sm:$0xff]  ;;  %v8429_v62 = vcombine.low %v350_v49, %v358_v50 }
  0x9e   :  { %v8432_v56 = vcombine.high %v351_v51, %v359_v52  ;;  %v367_v60 = vld [vmem:[#allocation5 + $0x788] sm:$0xff]  ;;  %v8431_v63 = vcombine.low %v351_v51, %v359_v52  ;;  %v8446_v0 = vcombine.high %v366_v57, %v374_v59  ;;  %v382_v2 = vld [vmem:[#allocation5 + $0x800] sm:$0xff] }
  0x9f   :  { %3297 = vmatpush1.bf16.msra.mxu0 %v8317_v5  ;;  %3383 = vmatpush1.bf16.msra.mxu1 %v8319_v6  ;;  %v375_v61 = vld [vmem:[#allocation5 + $0x7c8] sm:$0xff]  ;;  %v390_v3 = vld [vmem:[#allocation5 + $0x840] sm:$0xff]  ;;  %v8445_v6 = vcombine.low %v366_v57, %v374_v59 }
  0xa0   :  { %3298 = vmatprep.subr.bf16.mxu0 %v8334_v7  ;;  %3384 = vmatprep.subr.bf16.mxu1 %v8336_v8  ;;  %v8448_v1 = vcombine.high %v367_v60, %v375_v61  ;;  %v383_v4 = vld [vmem:[#allocation5 + $0x808] sm:$0xff]  ;;  %v114_v7 = vld [vmem:[#allocation2] sm:$0xff]  ;;  %v8447_v9 = vcombine.low %v367_v60, %v375_v61  ;;  %v8462_v10 = vcombine.high %v382_v2, %v390_v3 }
  0xa1   :  { %v391_v5 = vld [vmem:[#allocation5 + $0x848] sm:$0xff]  ;;  %v118_v8 = vld [vmem:[#allocation2 + $0x20] sm:$0xff]  ;;  %v8461_v19 = vcombine.low %v382_v2, %v390_v3 }
  0xa2   :  { %v8464_v11 = vcombine.high %v383_v4, %v391_v5  ;;  %v398_v12 = vld [vmem:[#allocation5 + $0x880] sm:$0xff]  ;;  %v8463_v20 = vcombine.low %v383_v4, %v391_v5  ;;  %v415_v26 = vld [vmem:[#allocation5 + $0x908] sm:$0xff] }
  0xa3   :  { %3299 = vmatpush1.bf16.msra.mxu0 %v8333_v13  ;;  %3385 = vmatpush1.bf16.msra.mxu1 %v8335_v14  ;;  %v406_v13 = vld [vmem:[#allocation5 + $0x8c0] sm:$0xff]  ;;  %v399_v14 = vld [vmem:[#allocation5 + $0x888] sm:$0xff] }
  0xa4   :  { %3300 = vmatprep.subr.bf16.mxu0 %v8350_v15  ;;  %3386 = vmatprep.subr.bf16.mxu1 %v8352_v16  ;;  %v10554_v15 = vpack.c.bf16 %v118_v8, %v114_v7  ;;  %v407_v16 = vld [vmem:[#allocation5 + $0x8c8] sm:$0xff]  ;;  %v8477_v28 = vcombine.low %v398_v12, %v406_v13  ;;  %v510_v8 = vld [vmem:[#allocation5 + $0xc00] sm:$0xff] }
  0xa5   :  { %v423_v27 = vld [vmem:[#allocation5 + $0x948] sm:$0xff]  ;;  %v526_v17 = vld [vmem:[#allocation5 + $0xc80] sm:$0xff] }
  0xa6   :  { %v431_v33 = vld [vmem:[#allocation5 + $0x988] sm:$0xff]  ;;  %v8496_v34 = vcombine.high %v415_v26, %v423_v27  ;;  %v534_v18 = vld [vmem:[#allocation5 + $0xcc0] sm:$0xff] }
  0xa7   :  { %3301 = vmatpush1.bf16.msra.mxu0 %v8349_v21  ;;  %3387 = vmatpush1.bf16.msra.mxu1 %v8351_v22  ;;  %v8478_v21 = vcombine.high %v398_v12, %v406_v13  ;;  %v8480_v22 = vcombine.high %v399_v14, %v407_v16  ;;  %v439_v35 = vld [vmem:[#allocation5 + $0x9c8] sm:$0xff] }
  0xa8   :  { %3302 = vmatprep.subr.bf16.mxu0 %v8366_v23  ;;  %3388 = vmatprep.subr.bf16.mxu1 %v8368_v24  ;;  %v414_v23 = vld [vmem:[#allocation5 + $0x900] sm:$0xff]  ;;  %v447_v41 = vld [vmem:[#allocation5 + $0xa08] sm:$0xff]  ;;  %v8512_v42 = vcombine.high %v431_v33, %v439_v35 }
  0xa9   :  { %v422_v24 = vld [vmem:[#allocation5 + $0x940] sm:$0xff]  ;;  %v455_v43 = vld [vmem:[#allocation5 + $0xa48] sm:$0xff] }
  0xaa   :  { %v8493_v36 = vcombine.low %v414_v23, %v422_v24  ;;  %v463_v49 = vld [vmem:[#allocation5 + $0xa88] sm:$0xff]  ;;  %v8528_v50 = vcombine.high %v447_v41, %v455_v43 }
  0xab   :  { %3303 = vmatpush1.bf16.msra.mxu0 %v8365_v29  ;;  %3389 = vmatpush1.bf16.msra.mxu1 %v8367_v30  ;;  %v8479_v29 = vcombine.low %v399_v14, %v407_v16  ;;  %v8494_v30 = vcombine.high %v414_v23, %v422_v24  ;;  %v471_v51 = vld [vmem:[#allocation5 + $0xac8] sm:$0xff]  ;;  %v8606_v24 = vcombine.high %v526_v17, %v534_v18 }
  0xac   :  { %3304 = vmatprep.subr.bf16.mxu0 %v8382_v31  ;;  %3390 = vmatprep.subr.bf16.mxu1 %v8384_v32  ;;  %v430_v31 = vld [vmem:[#allocation5 + $0x980] sm:$0xff]  ;;  %v479_v57 = vld [vmem:[#allocation5 + $0xb08] sm:$0xff]  ;;  %v8544_v59 = vcombine.high %v463_v49, %v471_v51 }
  0xad   :  { %v438_v32 = vld [vmem:[#allocation5 + $0x9c0] sm:$0xff]  ;;  %v487_v60 = vld [vmem:[#allocation5 + $0xb48] sm:$0xff] }
  0xae   :  { %v8509_v44 = vcombine.low %v430_v31, %v438_v32  ;;  %v495_v2 = vld [vmem:[#allocation5 + $0xb88] sm:$0xff]  ;;  %v8560_v3 = vcombine.high %v479_v57, %v487_v60 }
  0xaf   :  { %3305 = vmatpush1.bf16.msra.mxu0 %v8381_v37  ;;  %3391 = vmatpush1.bf16.msra.mxu1 %v8383_v38  ;;  %v8495_v37 = vcombine.low %v415_v26, %v423_v27  ;;  %v8510_v38 = vcombine.high %v430_v31, %v438_v32  ;;  %v503_v4 = vld [vmem:[#allocation5 + $0xbc8] sm:$0xff]  ;;  %v542_v26 = vld [vmem:[#allocation5 + $0xd00] sm:$0xff]  ;;  %v8605_v31 = vcombine.low %v526_v17, %v534_v18  ;;  %v120_v17 = vld [vmem:[#allocation2 + $0x30] sm:$0xff] }
  0xb0   :  { %3306 = vmatprep.subr.bf16.mxu0 %v8398_v39  ;;  %3392 = vmatprep.subr.bf16.mxu1 %v8400_v40  ;;  %v446_v39 = vld [vmem:[#allocation5 + $0xa00] sm:$0xff]  ;;  %v519_v12 = vld [vmem:[#allocation5 + $0xc48] sm:$0xff]  ;;  %v8575_v14 = vcombine.low %v495_v2, %v503_v4  ;;  %v137_v18 = vld [vmem:[#allocation5 + $0x58] sm:$0xff] }
  0xb1   :  { %v454_v40 = vld [vmem:[#allocation5 + $0xa40] sm:$0xff] }
  0xb2   :  { %v8525_v52 = vcombine.low %v446_v39, %v454_v40  ;;  %v550_v27 = vld [vmem:[#allocation5 + $0xd40] sm:$0xff] }
  0xb3   :  { %3307 = vmatpush1.bf16.msra.mxu0 %v8397_v45  ;;  %3393 = vmatpush1.bf16.msra.mxu1 %v8399_v46  ;;  %v8511_v45 = vcombine.low %v431_v33, %v439_v35  ;;  %v8526_v46 = vcombine.high %v446_v39, %v454_v40  ;;  %v8622_v33 = vcombine.high %v542_v26, %v550_v27  ;;  %v566_v35 = vld [vmem:[#allocation5 + $0xdc0] sm:$0xff] }
  0xb4   :  { %3308 = vmatprep.subr.bf16.mxu0 %v8414_v47  ;;  %3394 = vmatprep.subr.bf16.mxu1 %v8416_v48  ;;  %v462_v47 = vld [vmem:[#allocation5 + $0xa80] sm:$0xff]  ;;  %v8621_v39 = vcombine.low %v542_v26, %v550_v27  ;;  %v153_v27 = vld [vmem:[#allocation5 + $0xd8] sm:$0xff] }
  0xb5   :  { %v470_v48 = vld [vmem:[#allocation5 + $0xac0] sm:$0xff] }
  0xb6   :  { %v8541_v61 = vcombine.low %v462_v47, %v470_v48 }
  0xb7   :  { %3309 = vmatpush1.bf16.msra.mxu0 %v8413_v53  ;;  %3395 = vmatpush1.bf16.msra.mxu1 %v8415_v54  ;;  %v8527_v53 = vcombine.low %v447_v41, %v455_v43  ;;  %v8542_v54 = vcombine.high %v462_v47, %v470_v48  ;;  %v582_v43 = vld [vmem:[#allocation5 + $0xe40] sm:$0xff] }
  0xb8   :  { %3310 = vmatprep.subr.bf16.mxu0 %v8430_v55  ;;  %3396 = vmatprep.subr.bf16.mxu1 %v8432_v56  ;;  %v478_v55 = vld [vmem:[#allocation5 + $0xb00] sm:$0xff] }
  0xb9   :  { %v486_v56 = vld [vmem:[#allocation5 + $0xb40] sm:$0xff] }
  0xba   :  { %v8557_v5 = vcombine.low %v478_v55, %v486_v56 }
  0xbb   :  { %3311 = vmatpush1.bf16.msra.mxu0 %v8429_v62  ;;  %3397 = vmatpush1.bf16.msra.mxu1 %v8431_v63  ;;  %v8543_v62 = vcombine.low %v463_v49, %v471_v51  ;;  %v8558_v63 = vcombine.high %v478_v55, %v486_v56  ;;  %v598_v51 = vld [vmem:[#allocation5 + $0xec0] sm:$0xff] }
  0xbc   :  { %3312 = vmatprep.subr.bf16.mxu0 %v8446_v0  ;;  %3398 = vmatprep.subr.bf16.mxu1 %v8448_v1  ;;  %v494_v0 = vld [vmem:[#allocation5 + $0xb80] sm:$0xff] }
  0xbd   :  { %v502_v1 = vld [vmem:[#allocation5 + $0xbc0] sm:$0xff] }
  0xbe   :  { %v8574_v7 = vcombine.high %v494_v0, %v502_v1  ;;  %v8573_v13 = vcombine.low %v494_v0, %v502_v1 }
  0xbf   :  { %3313 = vmatpush1.bf16.msra.mxu0 %v8445_v6  ;;  %3399 = vmatpush1.bf16.msra.mxu1 %v8447_v9  ;;  %v8559_v6 = vcombine.low %v479_v57, %v487_v60  ;;  %v518_v9 = vld [vmem:[#allocation5 + $0xc40] sm:$0xff] }
  0xc0   :  { %3325 = vmatprep.subr.bf16.mxu0 %v8462_v10  ;;  %3411 = vmatprep.subr.bf16.mxu1 %v8464_v11  ;;  %v511_v10 = vld [vmem:[#allocation5 + $0xc08] sm:$0xff]  ;;  %v8576_v11 = vcombine.high %v495_v2, %v503_v4  ;;  %v8590_v16 = vcombine.high %v510_v8, %v518_v9  ;;  %v614_v60 = vld [vmem:[#allocation5 + $0xf40] sm:$0xff] }
  0xc1   :  { %v8591_v23 = vcombine.low %v511_v10, %v519_v12  ;;  %v630_v4 = vld [vmem:[#allocation5 + $0xfc0] sm:$0xff] }
  0xc2   :  { %3315 = vmatmul.mubr.bf16.vlgmr.msra.gmra.mrb[0].mxu0 %v10554_v15  ;;  %3401 = vmatmul.mubr.bf16.vlgmr.msra.gmra.mrb[0].mxu1 %v10554_v15 }
  0xc3   :  { %3326 = vmatpush1.bf16.msra.mxu0 %v8461_v19  ;;  %3412 = vmatpush1.bf16.msra.mxu1 %v8463_v20  ;;  %v527_v19 = vld [vmem:[#allocation5 + $0xc88] sm:$0xff]  ;;  %v8592_v20 = vcombine.high %v511_v10, %v519_v12  ;;  %v136_v12 = vld [vmem:[#allocation5 + $0x50] sm:$0xff] }
  0xc4   :  { %3327 = vmatprep.subr.bf16.mxu0 %v8478_v21  ;;  %3413 = vmatprep.subr.bf16.mxu1 %v8480_v22  ;;  %v535_v21 = vld [vmem:[#allocation5 + $0xcc8] sm:$0xff]  ;;  %v8589_v22 = vcombine.low %v510_v8, %v518_v9 }
  0xc5   :  { %3357 = vmatprep.mubr.bf16.mxu0 %v10556_v25  ;;  %3443 = vmatprep.mubr.bf16.mxu1 %v10556_v25  ;;  %v8607_v32 = vcombine.low %v527_v19, %v535_v21 }
  0xc7   :  { %3328 = vmatpush1.bf16.msra.mxu0 %v8477_v28  ;;  %3414 = vmatpush1.bf16.msra.mxu1 %v8479_v29  ;;  %v543_v28 = vld [vmem:[#allocation5 + $0xd08] sm:$0xff]  ;;  %v8608_v29 = vcombine.high %v527_v19, %v535_v21 }
  0xc8   :  { %3329 = vmatprep.subr.bf16.mxu0 %v8494_v30  ;;  %3415 = vmatprep.subr.bf16.mxu1 %v8496_v34  ;;  %v551_v30 = vld [vmem:[#allocation5 + $0xd48] sm:$0xff]  ;;  %v558_v34 = vld [vmem:[#allocation5 + $0xd80] sm:$0xff] }
  0xc9   :  { %v8623_v40 = vcombine.low %v543_v28, %v551_v30  ;;  %v8638_v41 = vcombine.high %v558_v34, %v566_v35  ;;  %v8637_v47 = vcombine.low %v558_v34, %v566_v35  ;;  %v161_v34 = vld [vmem:[#allocation5 + $0x118] sm:$0xff] }
  0xcb   :  { %3330 = vmatpush1.bf16.msra.mxu0 %v8493_v36  ;;  %3416 = vmatpush1.bf16.msra.mxu1 %v8495_v37  ;;  %v559_v36 = vld [vmem:[#allocation5 + $0xd88] sm:$0xff]  ;;  %v8624_v37 = vcombine.high %v543_v28, %v551_v30 }
  0xcc   :  { %3331 = vmatprep.subr.bf16.mxu0 %v8510_v38  ;;  %3417 = vmatprep.subr.bf16.mxu1 %v8512_v42  ;;  %v567_v38 = vld [vmem:[#allocation5 + $0xdc8] sm:$0xff]  ;;  %v574_v42 = vld [vmem:[#allocation5 + $0xe00] sm:$0xff] }
  0xcd   :  { %v8639_v48 = vcombine.low %v559_v36, %v567_v38  ;;  %v8654_v49 = vcombine.high %v574_v42, %v582_v43  ;;  %v8653_v55 = vcombine.low %v574_v42, %v582_v43  ;;  %v177_v42 = vld [vmem:[#allocation5 + $0x198] sm:$0xff] }
  0xcf   :  { %3332 = vmatpush1.bf16.msra.mxu0 %v8509_v44  ;;  %3418 = vmatpush1.bf16.msra.mxu1 %v8511_v45  ;;  %v575_v44 = vld [vmem:[#allocation5 + $0xe08] sm:$0xff]  ;;  %v8640_v45 = vcombine.high %v559_v36, %v567_v38  ;;  %v169_v36 = vld [vmem:[#allocation5 + $0x158] sm:$0xff] }
  0xd0   :  { %3333 = vmatprep.subr.bf16.mxu0 %v8526_v46  ;;  %3419 = vmatprep.subr.bf16.mxu1 %v8528_v50  ;;  %v583_v46 = vld [vmem:[#allocation5 + $0xe48] sm:$0xff]  ;;  %v590_v50 = vld [vmem:[#allocation5 + $0xe80] sm:$0xff]  ;;  %v8244_v43 = vcombine.high %v161_v34, %v169_v36 }
  0xd1   :  { %v8655_v56 = vcombine.low %v575_v44, %v583_v46  ;;  %v8670_v57 = vcombine.high %v590_v50, %v598_v51  ;;  %v8669_v0 = vcombine.low %v590_v50, %v598_v51  ;;  %v193_v50 = vld [vmem:[#allocation5 + $0x218] sm:$0xff] }
  0xd3   :  { %3334 = vmatpush1.bf16.msra.mxu0 %v8525_v52  ;;  %3420 = vmatpush1.bf16.msra.mxu1 %v8527_v53  ;;  %v591_v52 = vld [vmem:[#allocation5 + $0xe88] sm:$0xff]  ;;  %v8656_v53 = vcombine.high %v575_v44, %v583_v46  ;;  %v185_v44 = vld [vmem:[#allocation5 + $0x1d8] sm:$0xff]  ;;  %v8243_v46 = vcombine.low %v161_v34, %v169_v36  ;;  %v288_v36 = vld [vmem:[#allocation5 + $0x510] sm:$0xff] }
  0xd4   :  { %3335 = vmatprep.subr.bf16.mxu0 %v8542_v54  ;;  %3421 = vmatprep.subr.bf16.mxu1 %v8544_v59  ;;  %v599_v54 = vld [vmem:[#allocation5 + $0xec8] sm:$0xff]  ;;  %v606_v59 = vld [vmem:[#allocation5 + $0xf00] sm:$0xff]  ;;  %v8260_v51 = vcombine.high %v177_v42, %v185_v44 }
  0xd5   :  { %v8671_v1 = vcombine.low %v591_v52, %v599_v54  ;;  %v8686_v2 = vcombine.high %v606_v59, %v614_v60  ;;  %v8685_v8 = vcombine.low %v606_v59, %v614_v60  ;;  %v209_v59 = vld [vmem:[#allocation5 + $0x298] sm:$0xff] }
  0xd7   :  { %3336 = vmatpush1.bf16.msra.mxu0 %v8541_v61  ;;  %3422 = vmatpush1.bf16.msra.mxu1 %v8543_v62  ;;  %v607_v61 = vld [vmem:[#allocation5 + $0xf08] sm:$0xff]  ;;  %v8672_v62 = vcombine.high %v591_v52, %v599_v54  ;;  %v201_v52 = vld [vmem:[#allocation5 + $0x258] sm:$0xff]  ;;  %v8259_v54 = vcombine.low %v177_v42, %v185_v44  ;;  %v304_v44 = vld [vmem:[#allocation5 + $0x590] sm:$0xff] }
  0xd8   :  { %3337 = vmatprep.subr.bf16.mxu0 %v8558_v63  ;;  %3423 = vmatprep.subr.bf16.mxu1 %v8560_v3  ;;  %v615_v63 = vld [vmem:[#allocation5 + $0xf48] sm:$0xff]  ;;  %v622_v3 = vld [vmem:[#allocation5 + $0xf80] sm:$0xff]  ;;  %v8276_v60 = vcombine.high %v193_v50, %v201_v52 }
  0xd9   :  { %v8687_v9 = vcombine.low %v607_v61, %v615_v63  ;;  %v8702_v10 = vcombine.high %v622_v3, %v630_v4  ;;  %v8701_v19 = vcombine.low %v622_v3, %v630_v4  ;;  %v225_v3 = vld [vmem:[#allocation5 + $0x318] sm:$0xff] }
  0xdb   :  { %3338 = vmatpush1.bf16.msra.mxu0 %v8557_v5  ;;  %3424 = vmatpush1.bf16.msra.mxu1 %v8559_v6  ;;  %v623_v5 = vld [vmem:[#allocation5 + $0xf88] sm:$0xff]  ;;  %v8688_v6 = vcombine.high %v607_v61, %v615_v63  ;;  %v217_v61 = vld [vmem:[#allocation5 + $0x2d8] sm:$0xff]  ;;  %v8275_v63 = vcombine.low %v193_v50, %v201_v52  ;;  %v320_v52 = vld [vmem:[#allocation5 + $0x610] sm:$0xff] }
  0xdc   :  { %3339 = vmatprep.subr.bf16.mxu0 %v8574_v7  ;;  %3425 = vmatprep.subr.bf16.mxu1 %v8576_v11  ;;  %v631_v7 = vld [vmem:[#allocation5 + $0xfc8] sm:$0xff]  ;;  %v128_v11 = vld [vmem:[#allocation5 + $0x10] sm:$0xff]  ;;  %v8292_v4 = vcombine.high %v209_v59, %v217_v61 }
  0xdd   :  { %v8210_v21 = vcombine.high %v128_v11, %v136_v12 }
  0xdf   :  { %3340 = vmatpush1.bf16.msra.mxu0 %v8573_v13  ;;  %3426 = vmatpush1.bf16.msra.mxu1 %v8575_v14  ;;  %v129_v13 = vld [vmem:[#allocation5 + $0x18] sm:$0xff]  ;;  %v8704_v14 = vcombine.high %v623_v5, %v631_v7 }
  0xe0   :  { %3341 = vmatprep.subr.bf16.mxu0 %v8590_v16  ;;  %3427 = vmatprep.subr.bf16.mxu1 %v8592_v20  ;;  %v116_v16 = vld [vmem:[#allocation2 + $0x10] sm:$0xff]  ;;  %v8703_v20 = vcombine.low %v623_v5, %v631_v7  ;;  %v8212_v26 = vcombine.high %v129_v13, %v137_v18  ;;  %v8211_v30 = vcombine.low %v129_v13, %v137_v18  ;;  %v233_v5 = vld [vmem:[#allocation5 + $0x358] sm:$0xff] }
  0xe1   :  { %v10562_v28 = vpack.c.bf16 %v120_v17, %v116_v16  ;;  %v8291_v7 = vcombine.low %v209_v59, %v217_v61  ;;  %v249_v13 = vld [vmem:[#allocation5 + $0x3d8] sm:$0xff]  ;;  %v8307_v16 = vcombine.low %v225_v3, %v233_v5  ;;  %v256_v18 = vld [vmem:[#allocation5 + $0x410] sm:$0xff] }
  0xe2   :  { %v336_v61 = vld [vmem:[#allocation5 + $0x690] sm:$0xff] }
  0xe3   :  { %3342 = vmatpush1.bf16.msra.mxu0 %v8589_v22  ;;  %3428 = vmatpush1.bf16.msra.mxu1 %v8591_v23  ;;  %v144_v22 = vld [vmem:[#allocation5 + $0x90] sm:$0xff] }
  0xe4   :  { %3343 = vmatprep.subr.bf16.mxu0 %v8606_v24  ;;  %3429 = vmatprep.subr.bf16.mxu1 %v8608_v29  ;;  %v152_v23 = vld [vmem:[#allocation5 + $0xd0] sm:$0xff]  ;;  %v145_v24 = vld [vmem:[#allocation5 + $0x98] sm:$0xff]  ;;  %v8209_v29 = vcombine.low %v128_v11, %v136_v12  ;;  %v8308_v12 = vcombine.high %v225_v3, %v233_v5 }
  0xe5   :  { %v8228_v35 = vcombine.high %v145_v24, %v153_v27  ;;  %v8227_v38 = vcombine.low %v145_v24, %v153_v27  ;;  %v241_v11 = vld [vmem:[#allocation5 + $0x398] sm:$0xff]  ;;  %v272_v27 = vld [vmem:[#allocation5 + $0x490] sm:$0xff] }
  0xe6   :  { %v8323_v24 = vcombine.low %v241_v11, %v249_v13  ;;  %v352_v5 = vld [vmem:[#allocation5 + $0x710] sm:$0xff] }
  0xe7   :  { %3344 = vmatpush1.bf16.msra.mxu0 %v8605_v31  ;;  %3430 = vmatpush1.bf16.msra.mxu1 %v8607_v32  ;;  %v8226_v31 = vcombine.high %v144_v22, %v152_v23  ;;  %v160_v32 = vld [vmem:[#allocation5 + $0x110] sm:$0xff] }
  0xe8   :  { %3345 = vmatprep.subr.bf16.mxu0 %v8622_v33  ;;  %3431 = vmatprep.subr.bf16.mxu1 %v8624_v37  ;;  %v168_v33 = vld [vmem:[#allocation5 + $0x150] sm:$0xff]  ;;  %v8225_v37 = vcombine.low %v144_v22, %v152_v23  ;;  %v265_v22 = vld [vmem:[#allocation5 + $0x458] sm:$0xff] }
  0xeb   :  { %3346 = vmatpush1.bf16.msra.mxu0 %v8621_v39  ;;  %3432 = vmatpush1.bf16.msra.mxu1 %v8623_v40  ;;  %v8242_v39 = vcombine.high %v160_v32, %v168_v33  ;;  %v176_v40 = vld [vmem:[#allocation5 + $0x190] sm:$0xff] }
  0xec   :  { %3347 = vmatprep.subr.bf16.mxu0 %v8638_v41  ;;  %3433 = vmatprep.subr.bf16.mxu1 %v8640_v45  ;;  %v184_v41 = vld [vmem:[#allocation5 + $0x1d0] sm:$0xff]  ;;  %v8241_v45 = vcombine.low %v160_v32, %v168_v33  ;;  %v281_v32 = vld [vmem:[#allocation5 + $0x4d8] sm:$0xff] }
  0xef   :  { %3348 = vmatpush1.bf16.msra.mxu0 %v8637_v47  ;;  %3434 = vmatpush1.bf16.msra.mxu1 %v8639_v48  ;;  %v8258_v47 = vcombine.high %v176_v40, %v184_v41  ;;  %v192_v48 = vld [vmem:[#allocation5 + $0x210] sm:$0xff] }
  0xf0   :  { %3349 = vmatprep.subr.bf16.mxu0 %v8654_v49  ;;  %3435 = vmatprep.subr.bf16.mxu1 %v8656_v53  ;;  %v200_v49 = vld [vmem:[#allocation5 + $0x250] sm:$0xff]  ;;  %v8257_v53 = vcombine.low %v176_v40, %v184_v41  ;;  %v297_v40 = vld [vmem:[#allocation5 + $0x558] sm:$0xff] }
  0xf3   :  { %3350 = vmatpush1.bf16.msra.mxu0 %v8653_v55  ;;  %3436 = vmatpush1.bf16.msra.mxu1 %v8655_v56  ;;  %v8274_v55 = vcombine.high %v192_v48, %v200_v49  ;;  %v208_v56 = vld [vmem:[#allocation5 + $0x290] sm:$0xff] }
  0xf4   :  { %3351 = vmatprep.subr.bf16.mxu0 %v8670_v57  ;;  %3437 = vmatprep.subr.bf16.mxu1 %v8672_v62  ;;  %v216_v57 = vld [vmem:[#allocation5 + $0x2d0] sm:$0xff]  ;;  %v8273_v62 = vcombine.low %v192_v48, %v200_v49  ;;  %v313_v48 = vld [vmem:[#allocation5 + $0x5d8] sm:$0xff] }
  0xf7   :  { %3352 = vmatpush1.bf16.msra.mxu0 %v8669_v0  ;;  %3438 = vmatpush1.bf16.msra.mxu1 %v8671_v1  ;;  %v8290_v0 = vcombine.high %v208_v56, %v216_v57  ;;  %v224_v1 = vld [vmem:[#allocation5 + $0x310] sm:$0xff] }
  0xf8   :  { %3353 = vmatprep.subr.bf16.mxu0 %v8686_v2  ;;  %3439 = vmatprep.subr.bf16.mxu1 %v8688_v6  ;;  %v232_v2 = vld [vmem:[#allocation5 + $0x350] sm:$0xff]  ;;  %v8289_v6 = vcombine.low %v208_v56, %v216_v57  ;;  %v329_v56 = vld [vmem:[#allocation5 + $0x658] sm:$0xff] }
  0xfb   :  { %3354 = vmatpush1.bf16.msra.mxu0 %v8685_v8  ;;  %3440 = vmatpush1.bf16.msra.mxu1 %v8687_v9  ;;  %v8306_v8 = vcombine.high %v224_v1, %v232_v2  ;;  %v240_v9 = vld [vmem:[#allocation5 + $0x390] sm:$0xff] }
  0xfc   :  { %3355 = vmatprep.subr.bf16.mxu0 %v8702_v10  ;;  %3441 = vmatprep.subr.bf16.mxu1 %v8704_v14  ;;  %v248_v10 = vld [vmem:[#allocation5 + $0x3d0] sm:$0xff]  ;;  %v8305_v14 = vcombine.low %v224_v1, %v232_v2  ;;  %v345_v1 = vld [vmem:[#allocation5 + $0x6d8] sm:$0xff] }
  0xfd   :  { %v8322_v17 = vcombine.high %v240_v9, %v248_v10  ;;  %v8321_v23 = vcombine.low %v240_v9, %v248_v10  ;;  %v361_v9 = vld [vmem:[#allocation5 + $0x758] sm:$0xff] }
  0xff   :  { %3356 = vmatpush1.bf16.msra.mxu0 %v8701_v19  ;;  %3442 = vmatpush1.bf16.msra.mxu1 %v8703_v20  ;;  %v264_v19 = vld [vmem:[#allocation5 + $0x450] sm:$0xff]  ;;  %v257_v20 = vld [vmem:[#allocation5 + $0x418] sm:$0xff] }
 0x100   :  { %3454 = vmatprep.subr.bf16.mxu0 %v8210_v21  ;;  %3540 = vmatprep.subr.bf16.mxu1 %v8212_v26  ;;  %v8324_v21 = vcombine.high %v241_v11, %v249_v13  ;;  %v8338_v26 = vcombine.high %v256_v18, %v264_v19  ;;  %v8337_v33 = vcombine.low %v256_v18, %v264_v19  ;;  %v368_v13 = vld [vmem:[#allocation5 + $0x790] sm:$0xff]  ;;  %v377_v18 = vld [vmem:[#allocation5 + $0x7d8] sm:$0xff] }
 0x101   :  { %v8339_v34 = vcombine.low %v257_v20, %v265_v22 }
 0x102   :  { %3358 = vmatmul.mubr.bf16.vlgmr.msra.gmra.mrb[0].mxu0 %v10562_v28  ;;  %3444 = vmatmul.mubr.bf16.vlgmr.msra.gmra.mrb[0].mxu1 %v10562_v28 }
 0x103   :  { %3455 = vmatpush1.bf16.msra.mxu0 %v8209_v29  ;;  %3541 = vmatpush1.bf16.msra.mxu1 %v8211_v30  ;;  %v280_v29 = vld [vmem:[#allocation5 + $0x4d0] sm:$0xff]  ;;  %v273_v30 = vld [vmem:[#allocation5 + $0x498] sm:$0xff] }
 0x104   :  { %3456 = vmatprep.subr.bf16.mxu0 %v8226_v31  ;;  %3542 = vmatprep.subr.bf16.mxu1 %v8228_v35  ;;  %v8340_v31 = vcombine.high %v257_v20, %v265_v22  ;;  %v8354_v35 = vcombine.high %v272_v27, %v280_v29  ;;  %v8353_v41 = vcombine.low %v272_v27, %v280_v29  ;;  %v384_v22 = vld [vmem:[#allocation5 + $0x810] sm:$0xff]  ;;  %v393_v27 = vld [vmem:[#allocation5 + $0x858] sm:$0xff] }
 0x105   :  { %3486 = vmatprep.mubr.bf16.mxu0 %v10550_v58  ;;  %3572 = vmatprep.mubr.bf16.mxu1 %v10550_v58  ;;  %v8355_v42 = vcombine.low %v273_v30, %v281_v32 }
 0x107   :  { %3457 = vmatpush1.bf16.msra.mxu0 %v8225_v37  ;;  %3543 = vmatpush1.bf16.msra.mxu1 %v8227_v38  ;;  %v296_v37 = vld [vmem:[#allocation5 + $0x550] sm:$0xff]  ;;  %v289_v38 = vld [vmem:[#allocation5 + $0x518] sm:$0xff] }
 0x108   :  { %3458 = vmatprep.subr.bf16.mxu0 %v8242_v39  ;;  %3544 = vmatprep.subr.bf16.mxu1 %v8244_v43  ;;  %v8356_v39 = vcombine.high %v273_v30, %v281_v32  ;;  %v8370_v43 = vcombine.high %v288_v36, %v296_v37  ;;  %v8369_v49 = vcombine.low %v288_v36, %v296_v37  ;;  %v400_v32 = vld [vmem:[#allocation5 + $0x890] sm:$0xff]  ;;  %v409_v36 = vld [vmem:[#allocation5 + $0x8d8] sm:$0xff] }
 0x109   :  { %v8371_v50 = vcombine.low %v289_v38, %v297_v40 }
 0x10b   :  { %3459 = vmatpush1.bf16.msra.mxu0 %v8241_v45  ;;  %3545 = vmatpush1.bf16.msra.mxu1 %v8243_v46  ;;  %v312_v45 = vld [vmem:[#allocation5 + $0x5d0] sm:$0xff]  ;;  %v305_v46 = vld [vmem:[#allocation5 + $0x598] sm:$0xff] }
 0x10c   :  { %3460 = vmatprep.subr.bf16.mxu0 %v8258_v47  ;;  %3546 = vmatprep.subr.bf16.mxu1 %v8260_v51  ;;  %v8372_v47 = vcombine.high %v289_v38, %v297_v40  ;;  %v8386_v51 = vcombine.high %v304_v44, %v312_v45  ;;  %v8385_v57 = vcombine.low %v304_v44, %v312_v45  ;;  %v416_v40 = vld [vmem:[#allocation5 + $0x910] sm:$0xff]  ;;  %v425_v44 = vld [vmem:[#allocation5 + $0x958] sm:$0xff] }
 0x10d   :  { %v8387_v59 = vcombine.low %v305_v46, %v313_v48 }
 0x10f   :  { %3461 = vmatpush1.bf16.msra.mxu0 %v8257_v53  ;;  %3547 = vmatpush1.bf16.msra.mxu1 %v8259_v54  ;;  %v328_v53 = vld [vmem:[#allocation5 + $0x650] sm:$0xff]  ;;  %v321_v54 = vld [vmem:[#allocation5 + $0x618] sm:$0xff] }
 0x110   :  { %3462 = vmatprep.subr.bf16.mxu0 %v8274_v55  ;;  %3548 = vmatprep.subr.bf16.mxu1 %v8276_v60  ;;  %v8388_v55 = vcombine.high %v305_v46, %v313_v48  ;;  %v8402_v60 = vcombine.high %v320_v52, %v328_v53  ;;  %v8401_v2 = vcombine.low %v320_v52, %v328_v53  ;;  %v432_v48 = vld [vmem:[#allocation5 + $0x990] sm:$0xff]  ;;  %v441_v52 = vld [vmem:[#allocation5 + $0x9d8] sm:$0xff] }
 0x111   :  { %v8403_v3 = vcombine.low %v321_v54, %v329_v56 }
 0x113   :  { %3463 = vmatpush1.bf16.msra.mxu0 %v8273_v62  ;;  %3549 = vmatpush1.bf16.msra.mxu1 %v8275_v63  ;;  %v344_v62 = vld [vmem:[#allocation5 + $0x6d0] sm:$0xff]  ;;  %v337_v63 = vld [vmem:[#allocation5 + $0x698] sm:$0xff] }
 0x114   :  { %3464 = vmatprep.subr.bf16.mxu0 %v8290_v0  ;;  %3550 = vmatprep.subr.bf16.mxu1 %v8292_v4  ;;  %v8404_v0 = vcombine.high %v321_v54, %v329_v56  ;;  %v8418_v4 = vcombine.high %v336_v61, %v344_v62  ;;  %v8417_v10 = vcombine.low %v336_v61, %v344_v62  ;;  %v448_v56 = vld [vmem:[#allocation5 + $0xa10] sm:$0xff]  ;;  %v457_v61 = vld [vmem:[#allocation5 + $0xa58] sm:$0xff] }
 0x115   :  { %v8419_v11 = vcombine.low %v337_v63, %v345_v1 }
 0x117   :  { %3465 = vmatpush1.bf16.msra.mxu0 %v8289_v6  ;;  %3551 = vmatpush1.bf16.msra.mxu1 %v8291_v7  ;;  %v360_v6 = vld [vmem:[#allocation5 + $0x750] sm:$0xff]  ;;  %v353_v7 = vld [vmem:[#allocation5 + $0x718] sm:$0xff] }
 0x118   :  { %3466 = vmatprep.subr.bf16.mxu0 %v8306_v8  ;;  %3552 = vmatprep.subr.bf16.mxu1 %v8308_v12  ;;  %v8420_v8 = vcombine.high %v337_v63, %v345_v1  ;;  %v8434_v12 = vcombine.high %v352_v5, %v360_v6  ;;  %v8433_v19 = vcombine.low %v352_v5, %v360_v6  ;;  %v464_v1 = vld [vmem:[#allocation5 + $0xa90] sm:$0xff]  ;;  %v473_v5 = vld [vmem:[#allocation5 + $0xad8] sm:$0xff] }
 0x119   :  { %v8435_v20 = vcombine.low %v353_v7, %v361_v9 }
 0x11b   :  { %3467 = vmatpush1.bf16.msra.mxu0 %v8305_v14  ;;  %3553 = vmatpush1.bf16.msra.mxu1 %v8307_v16  ;;  %v376_v14 = vld [vmem:[#allocation5 + $0x7d0] sm:$0xff]  ;;  %v369_v16 = vld [vmem:[#allocation5 + $0x798] sm:$0xff] }
 0x11c   :  { %3468 = vmatprep.subr.bf16.mxu0 %v8322_v17  ;;  %3554 = vmatprep.subr.bf16.mxu1 %v8324_v21  ;;  %v8436_v17 = vcombine.high %v353_v7, %v361_v9  ;;  %v8450_v21 = vcombine.high %v368_v13, %v376_v14  ;;  %v8449_v29 = vcombine.low %v368_v13, %v376_v14  ;;  %v480_v9 = vld [vmem:[#allocation5 + $0xb10] sm:$0xff]  ;;  %v489_v13 = vld [vmem:[#allocation5 + $0xb58] sm:$0xff] }
 0x11d   :  { %v8451_v30 = vcombine.low %v369_v16, %v377_v18 }
 0x11f   :  { %3469 = vmatpush1.bf16.msra.mxu0 %v8321_v23  ;;  %3555 = vmatpush1.bf16.msra.mxu1 %v8323_v24  ;;  %v392_v23 = vld [vmem:[#allocation5 + $0x850] sm:$0xff]  ;;  %v385_v24 = vld [vmem:[#allocation5 + $0x818] sm:$0xff] }
 0x120   :  { %3470 = vmatprep.subr.bf16.mxu0 %v8338_v26  ;;  %3556 = vmatprep.subr.bf16.mxu1 %v8340_v31  ;;  %v8452_v26 = vcombine.high %v369_v16, %v377_v18  ;;  %v8466_v31 = vcombine.high %v384_v22, %v392_v23  ;;  %v8465_v37 = vcombine.low %v384_v22, %v392_v23  ;;  %v496_v18 = vld [vmem:[#allocation5 + $0xb90] sm:$0xff]  ;;  %v505_v22 = vld [vmem:[#allocation5 + $0xbd8] sm:$0xff] }
 0x121   :  { %v8467_v38 = vcombine.low %v385_v24, %v393_v27 }
 0x123   :  { %3471 = vmatpush1.bf16.msra.mxu0 %v8337_v33  ;;  %3557 = vmatpush1.bf16.msra.mxu1 %v8339_v34  ;;  %v408_v33 = vld [vmem:[#allocation5 + $0x8d0] sm:$0xff]  ;;  %v401_v34 = vld [vmem:[#allocation5 + $0x898] sm:$0xff] }
 0x124   :  { %3472 = vmatprep.subr.bf16.mxu0 %v8354_v35  ;;  %3558 = vmatprep.subr.bf16.mxu1 %v8356_v39  ;;  %v8468_v35 = vcombine.high %v385_v24, %v393_v27  ;;  %v8482_v39 = vcombine.high %v400_v32, %v408_v33  ;;  %v8481_v45 = vcombine.low %v400_v32, %v408_v33  ;;  %v512_v27 = vld [vmem:[#allocation5 + $0xc10] sm:$0xff]  ;;  %v521_v32 = vld [vmem:[#allocation5 + $0xc58] sm:$0xff] }
 0x125   :  { %v8483_v46 = vcombine.low %v401_v34, %v409_v36 }
 0x127   :  { %3473 = vmatpush1.bf16.msra.mxu0 %v8353_v41  ;;  %3559 = vmatpush1.bf16.msra.mxu1 %v8355_v42  ;;  %v424_v41 = vld [vmem:[#allocation5 + $0x950] sm:$0xff]  ;;  %v417_v42 = vld [vmem:[#allocation5 + $0x918] sm:$0xff] }
 0x128   :  { %3474 = vmatprep.subr.bf16.mxu0 %v8370_v43  ;;  %3560 = vmatprep.subr.bf16.mxu1 %v8372_v47  ;;  %v8484_v43 = vcombine.high %v401_v34, %v409_v36  ;;  %v8498_v47 = vcombine.high %v416_v40, %v424_v41  ;;  %v8497_v53 = vcombine.low %v416_v40, %v424_v41  ;;  %v528_v36 = vld [vmem:[#allocation5 + $0xc90] sm:$0xff]  ;;  %v537_v40 = vld [vmem:[#allocation5 + $0xcd8] sm:$0xff] }
 0x129   :  { %v8499_v54 = vcombine.low %v417_v42, %v425_v44 }
 0x12b   :  { %3475 = vmatpush1.bf16.msra.mxu0 %v8369_v49  ;;  %3561 = vmatpush1.bf16.msra.mxu1 %v8371_v50  ;;  %v440_v49 = vld [vmem:[#allocation5 + $0x9d0] sm:$0xff]  ;;  %v433_v50 = vld [vmem:[#allocation5 + $0x998] sm:$0xff] }
 0x12c   :  { %3476 = vmatprep.subr.bf16.mxu0 %v8386_v51  ;;  %3562 = vmatprep.subr.bf16.mxu1 %v8388_v55  ;;  %v8500_v51 = vcombine.high %v417_v42, %v425_v44  ;;  %v8514_v55 = vcombine.high %v432_v48, %v440_v49  ;;  %v8513_v62 = vcombine.low %v432_v48, %v440_v49  ;;  %v544_v44 = vld [vmem:[#allocation5 + $0xd10] sm:$0xff]  ;;  %v553_v48 = vld [vmem:[#allocation5 + $0xd58] sm:$0xff] }
 0x12d   :  { %v8515_v63 = vcombine.low %v433_v50, %v441_v52 }
 0x12f   :  { %3477 = vmatpush1.bf16.msra.mxu0 %v8385_v57  ;;  %3563 = vmatpush1.bf16.msra.mxu1 %v8387_v59  ;;  %v456_v57 = vld [vmem:[#allocation5 + $0xa50] sm:$0xff]  ;;  %v449_v59 = vld [vmem:[#allocation5 + $0xa18] sm:$0xff] }
 0x130   :  { %3478 = vmatprep.subr.bf16.mxu0 %v8402_v60  ;;  %3564 = vmatprep.subr.bf16.mxu1 %v8404_v0  ;;  %v8516_v60 = vcombine.high %v433_v50, %v441_v52  ;;  %v8530_v0 = vcombine.high %v448_v56, %v456_v57  ;;  %v8529_v6 = vcombine.low %v448_v56, %v456_v57  ;;  %v560_v52 = vld [vmem:[#allocation5 + $0xd90] sm:$0xff]  ;;  %v569_v56 = vld [vmem:[#allocation5 + $0xdd8] sm:$0xff] }
 0x131   :  { %v8531_v7 = vcombine.low %v449_v59, %v457_v61 }
 0x133   :  { %3479 = vmatpush1.bf16.msra.mxu0 %v8401_v2  ;;  %3565 = vmatpush1.bf16.msra.mxu1 %v8403_v3  ;;  %v472_v2 = vld [vmem:[#allocation5 + $0xad0] sm:$0xff]  ;;  %v465_v3 = vld [vmem:[#allocation5 + $0xa98] sm:$0xff] }
 0x134   :  { %3480 = vmatprep.subr.bf16.mxu0 %v8418_v4  ;;  %3566 = vmatprep.subr.bf16.mxu1 %v8420_v8  ;;  %v8532_v4 = vcombine.high %v449_v59, %v457_v61  ;;  %v8546_v8 = vcombine.high %v464_v1, %v472_v2  ;;  %v8545_v14 = vcombine.low %v464_v1, %v472_v2  ;;  %v576_v61 = vld [vmem:[#allocation5 + $0xe10] sm:$0xff]  ;;  %v585_v1 = vld [vmem:[#allocation5 + $0xe58] sm:$0xff] }
 0x135   :  { %v8547_v16 = vcombine.low %v465_v3, %v473_v5 }
 0x137   :  { %3481 = vmatpush1.bf16.msra.mxu0 %v8417_v10  ;;  %3567 = vmatpush1.bf16.msra.mxu1 %v8419_v11  ;;  %v488_v10 = vld [vmem:[#allocation5 + $0xb50] sm:$0xff]  ;;  %v481_v11 = vld [vmem:[#allocation5 + $0xb18] sm:$0xff] }
 0x138   :  { %3482 = vmatprep.subr.bf16.mxu0 %v8434_v12  ;;  %3568 = vmatprep.subr.bf16.mxu1 %v8436_v17  ;;  %v8548_v12 = vcombine.high %v465_v3, %v473_v5  ;;  %v8562_v17 = vcombine.high %v480_v9, %v488_v10  ;;  %v8561_v23 = vcombine.low %v480_v9, %v488_v10  ;;  %v592_v5 = vld [vmem:[#allocation5 + $0xe90] sm:$0xff]  ;;  %v601_v9 = vld [vmem:[#allocation5 + $0xed8] sm:$0xff] }
 0x139   :  { %v8563_v24 = vcombine.low %v481_v11, %v489_v13 }
 0x13b   :  { %3483 = vmatpush1.bf16.msra.mxu0 %v8433_v19  ;;  %3569 = vmatpush1.bf16.msra.mxu1 %v8435_v20  ;;  %v504_v19 = vld [vmem:[#allocation5 + $0xbd0] sm:$0xff]  ;;  %v8564_v20 = vcombine.high %v481_v11, %v489_v13 }
 0x13c   :  { %3484 = vmatprep.subr.bf16.mxu0 %v8450_v21  ;;  %3570 = vmatprep.subr.bf16.mxu1 %v8452_v26  ;;  %v497_v21 = vld [vmem:[#allocation5 + $0xb98] sm:$0xff]  ;;  %v8578_v26 = vcombine.high %v496_v18, %v504_v19  ;;  %v8577_v33 = vcombine.low %v496_v18, %v504_v19  ;;  %v608_v13 = vld [vmem:[#allocation5 + $0xf10] sm:$0xff] }
 0x13d   :  { %v8579_v34 = vcombine.low %v497_v21, %v505_v22  ;;  %v617_v18 = vld [vmem:[#allocation5 + $0xf58] sm:$0xff] }
 0x13f   :  { %3485 = vmatpush1.bf16.msra.mxu0 %v8449_v29  ;;  %3571 = vmatpush1.bf16.msra.mxu1 %v8451_v30  ;;  %v520_v29 = vld [vmem:[#allocation5 + $0xc50] sm:$0xff]  ;;  %v513_v30 = vld [vmem:[#allocation5 + $0xc18] sm:$0xff] }
 0x140   :  { %3497 = vmatprep.subr.bf16.mxu0 %v8466_v31  ;;  %3583 = vmatprep.subr.bf16.mxu1 %v8468_v35  ;;  %v8580_v31 = vcombine.high %v497_v21, %v505_v22  ;;  %v8594_v35 = vcombine.high %v512_v27, %v520_v29  ;;  %v8593_v41 = vcombine.low %v512_v27, %v520_v29  ;;  %v624_v22 = vld [vmem:[#allocation5 + $0xf90] sm:$0xff]  ;;  %v633_v27 = vld [vmem:[#allocation5 + $0xfd8] sm:$0xff] }
 0x141   :  { %v8595_v42 = vcombine.low %v513_v30, %v521_v32 }
 0x142   :  { %3487 = vmatmul.mubr.bf16.vlgmr.msra.gmra.mrb[4].mxu0 %v10554_v15  ;;  %3573 = vmatmul.mubr.bf16.vlgmr.msra.gmra.mrb[4].mxu1 %v10554_v15 }
 0x143   :  { %3498 = vmatpush1.bf16.msra.mxu0 %v8465_v37  ;;  %3584 = vmatpush1.bf16.msra.mxu1 %v8467_v38  ;;  %v536_v37 = vld [vmem:[#allocation5 + $0xcd0] sm:$0xff]  ;;  %v529_v38 = vld [vmem:[#allocation5 + $0xc98] sm:$0xff] }
 0x144   :  { %3499 = vmatprep.subr.bf16.mxu0 %v8482_v39  ;;  %3585 = vmatprep.subr.bf16.mxu1 %v8484_v43  ;;  %v8596_v39 = vcombine.high %v513_v30, %v521_v32  ;;  %v8610_v43 = vcombine.high %v528_v36, %v536_v37  ;;  %v8609_v49 = vcombine.low %v528_v36, %v536_v37  ;;  %v130_v32 = vld [vmem:[#allocation5 + $0x20] sm:$0xff]  ;;  %v139_v36 = vld [vmem:[#allocation5 + $0x68] sm:$0xff] }
 0x145   :  { %3529 = vmatprep.mubr.bf16.mxu0 %v10556_v25  ;;  %3615 = vmatprep.mubr.bf16.mxu1 %v10556_v25  ;;  %v8611_v50 = vcombine.low %v529_v38, %v537_v40 }
 0x147   :  { %3500 = vmatpush1.bf16.msra.mxu0 %v8481_v45  ;;  %3586 = vmatpush1.bf16.msra.mxu1 %v8483_v46  ;;  %v8612_v45 = vcombine.high %v529_v38, %v537_v40  ;;  %v552_v46 = vld [vmem:[#allocation5 + $0xd50] sm:$0xff]  ;;  %v146_v40 = vld [vmem:[#allocation5 + $0xa0] sm:$0xff] }
 0x148   :  { %3501 = vmatprep.subr.bf16.mxu0 %v8498_v47  ;;  %3587 = vmatprep.subr.bf16.mxu1 %v8500_v51  ;;  %v545_v47 = vld [vmem:[#allocation5 + $0xd18] sm:$0xff]  ;;  %v8626_v51 = vcombine.high %v544_v44, %v552_v46  ;;  %v8625_v57 = vcombine.low %v544_v44, %v552_v46  ;;  %v155_v44 = vld [vmem:[#allocation5 + $0xe8] sm:$0xff] }
 0x149   :  { %v8627_v59 = vcombine.low %v545_v47, %v553_v48 }
 0x14b   :  { %3502 = vmatpush1.bf16.msra.mxu0 %v8497_v53  ;;  %3588 = vmatpush1.bf16.msra.mxu1 %v8499_v54  ;;  %v568_v53 = vld [vmem:[#allocation5 + $0xdd0] sm:$0xff]  ;;  %v561_v54 = vld [vmem:[#allocation5 + $0xd98] sm:$0xff] }
 0x14c   :  { %3503 = vmatprep.subr.bf16.mxu0 %v8514_v55  ;;  %3589 = vmatprep.subr.bf16.mxu1 %v8516_v60  ;;  %v8628_v55 = vcombine.high %v545_v47, %v553_v48  ;;  %v8642_v60 = vcombine.high %v560_v52, %v568_v53  ;;  %v8641_v2 = vcombine.low %v560_v52, %v568_v53  ;;  %v162_v48 = vld [vmem:[#allocation5 + $0x120] sm:$0xff]  ;;  %v171_v52 = vld [vmem:[#allocation5 + $0x168] sm:$0xff] }
 0x14d   :  { %v8643_v3 = vcombine.low %v561_v54, %v569_v56 }
 0x14f   :  { %3504 = vmatpush1.bf16.msra.mxu0 %v8513_v62  ;;  %3590 = vmatpush1.bf16.msra.mxu1 %v8515_v63  ;;  %v584_v62 = vld [vmem:[#allocation5 + $0xe50] sm:$0xff]  ;;  %v577_v63 = vld [vmem:[#allocation5 + $0xe18] sm:$0xff] }
 0x150   :  { %3505 = vmatprep.subr.bf16.mxu0 %v8530_v0  ;;  %3591 = vmatprep.subr.bf16.mxu1 %v8532_v4  ;;  %v8644_v0 = vcombine.high %v561_v54, %v569_v56  ;;  %v8658_v4 = vcombine.high %v576_v61, %v584_v62  ;;  %v8657_v10 = vcombine.low %v576_v61, %v584_v62  ;;  %v178_v56 = vld [vmem:[#allocation5 + $0x1a0] sm:$0xff]  ;;  %v187_v61 = vld [vmem:[#allocation5 + $0x1e8] sm:$0xff] }
 0x151   :  { %v8659_v11 = vcombine.low %v577_v63, %v585_v1 }
 0x153   :  { %3506 = vmatpush1.bf16.msra.mxu0 %v8529_v6  ;;  %3592 = vmatpush1.bf16.msra.mxu1 %v8531_v7  ;;  %v600_v6 = vld [vmem:[#allocation5 + $0xed0] sm:$0xff]  ;;  %v593_v7 = vld [vmem:[#allocation5 + $0xe98] sm:$0xff] }
 0x154   :  { %3507 = vmatprep.subr.bf16.mxu0 %v8546_v8  ;;  %3593 = vmatprep.subr.bf16.mxu1 %v8548_v12  ;;  %v8660_v8 = vcombine.high %v577_v63, %v585_v1  ;;  %v8674_v12 = vcombine.high %v592_v5, %v600_v6  ;;  %v8673_v19 = vcombine.low %v592_v5, %v600_v6  ;;  %v194_v1 = vld [vmem:[#allocation5 + $0x220] sm:$0xff]  ;;  %v203_v5 = vld [vmem:[#allocation5 + $0x268] sm:$0xff] }
 0x157   :  { %3508 = vmatpush1.bf16.msra.mxu0 %v8545_v14  ;;  %3594 = vmatpush1.bf16.msra.mxu1 %v8547_v16  ;;  %v616_v14 = vld [vmem:[#allocation5 + $0xf50] sm:$0xff]  ;;  %v609_v16 = vld [vmem:[#allocation5 + $0xf18] sm:$0xff] }
 0x158   :  { %3509 = vmatprep.subr.bf16.mxu0 %v8562_v17  ;;  %3595 = vmatprep.subr.bf16.mxu1 %v8564_v20  ;;  %v8676_v17 = vcombine.high %v593_v7, %v601_v9  ;;  %v8675_v20 = vcombine.low %v593_v7, %v601_v9  ;;  %v8690_v21 = vcombine.high %v608_v13, %v616_v14  ;;  %v210_v9 = vld [vmem:[#allocation5 + $0x2a0] sm:$0xff] }
 0x159   :  { %v8689_v29 = vcombine.low %v608_v13, %v616_v14  ;;  %v8691_v30 = vcombine.low %v609_v16, %v617_v18  ;;  %v219_v13 = vld [vmem:[#allocation5 + $0x2e8] sm:$0xff] }
 0x15b   :  { %3510 = vmatpush1.bf16.msra.mxu0 %v8561_v23  ;;  %3596 = vmatpush1.bf16.msra.mxu1 %v8563_v24  ;;  %v632_v23 = vld [vmem:[#allocation5 + $0xfd0] sm:$0xff]  ;;  %v625_v24 = vld [vmem:[#allocation5 + $0xf98] sm:$0xff] }
 0x15c   :  { %3511 = vmatprep.subr.bf16.mxu0 %v8578_v26  ;;  %3597 = vmatprep.subr.bf16.mxu1 %v8580_v31  ;;  %v8692_v26 = vcombine.high %v609_v16, %v617_v18  ;;  %v8706_v31 = vcombine.high %v624_v22, %v632_v23  ;;  %v8705_v37 = vcombine.low %v624_v22, %v632_v23  ;;  %v226_v18 = vld [vmem:[#allocation5 + $0x320] sm:$0xff]  ;;  %v235_v22 = vld [vmem:[#allocation5 + $0x368] sm:$0xff] }
 0x15d   :  { %v8707_v38 = vcombine.low %v625_v24, %v633_v27 }
 0x15f   :  { %3512 = vmatpush1.bf16.msra.mxu0 %v8577_v33  ;;  %3598 = vmatpush1.bf16.msra.mxu1 %v8579_v34  ;;  %v138_v33 = vld [vmem:[#allocation5 + $0x60] sm:$0xff]  ;;  %v131_v34 = vld [vmem:[#allocation5 + $0x28] sm:$0xff] }
 0x160   :  { %3513 = vmatprep.subr.bf16.mxu0 %v8594_v35  ;;  %3599 = vmatprep.subr.bf16.mxu1 %v8596_v39  ;;  %v8708_v35 = vcombine.high %v625_v24, %v633_v27  ;;  %v8214_v39 = vcombine.high %v130_v32, %v138_v33  ;;  %v8215_v46 = vcombine.low %v131_v34, %v139_v36  ;;  %v242_v27 = vld [vmem:[#allocation5 + $0x3a0] sm:$0xff] }
 0x163   :  { %3514 = vmatpush1.bf16.msra.mxu0 %v8593_v41  ;;  %3600 = vmatpush1.bf16.msra.mxu1 %v8595_v42  ;;  %v154_v41 = vld [vmem:[#allocation5 + $0xe0] sm:$0xff]  ;;  %v147_v42 = vld [vmem:[#allocation5 + $0xa8] sm:$0xff] }
 0x164   :  { %3515 = vmatprep.subr.bf16.mxu0 %v8610_v43  ;;  %3601 = vmatprep.subr.bf16.mxu1 %v8612_v45  ;;  %v8216_v43 = vcombine.high %v131_v34, %v139_v36  ;;  %v8213_v45 = vcombine.low %v130_v32, %v138_v33  ;;  %v8230_v47 = vcombine.high %v146_v40, %v154_v41  ;;  %v251_v32 = vld [vmem:[#allocation5 + $0x3e8] sm:$0xff]  ;;  %v258_v36 = vld [vmem:[#allocation5 + $0x420] sm:$0xff] }
 0x165   :  { %v8229_v53 = vcombine.low %v146_v40, %v154_v41  ;;  %v8231_v54 = vcombine.low %v147_v42, %v155_v44  ;;  %v267_v40 = vld [vmem:[#allocation5 + $0x468] sm:$0xff] }
 0x167   :  { %3516 = vmatpush1.bf16.msra.mxu0 %v8609_v49  ;;  %3602 = vmatpush1.bf16.msra.mxu1 %v8611_v50  ;;  %v170_v49 = vld [vmem:[#allocation5 + $0x160] sm:$0xff]  ;;  %v163_v50 = vld [vmem:[#allocation5 + $0x128] sm:$0xff] }
 0x168   :  { %3517 = vmatprep.subr.bf16.mxu0 %v8626_v51  ;;  %3603 = vmatprep.subr.bf16.mxu1 %v8628_v55  ;;  %v8232_v51 = vcombine.high %v147_v42, %v155_v44  ;;  %v8246_v55 = vcombine.high %v162_v48, %v170_v49  ;;  %v8245_v62 = vcombine.low %v162_v48, %v170_v49  ;;  %v274_v44 = vld [vmem:[#allocation5 + $0x4a0] sm:$0xff]  ;;  %v283_v48 = vld [vmem:[#allocation5 + $0x4e8] sm:$0xff] }
 0x169   :  { %v8247_v63 = vcombine.low %v163_v50, %v171_v52 }
 0x16b   :  { %3518 = vmatpush1.bf16.msra.mxu0 %v8625_v57  ;;  %3604 = vmatpush1.bf16.msra.mxu1 %v8627_v59  ;;  %v186_v57 = vld [vmem:[#allocation5 + $0x1e0] sm:$0xff]  ;;  %v179_v59 = vld [vmem:[#allocation5 + $0x1a8] sm:$0xff] }
 0x16c   :  { %3519 = vmatprep.subr.bf16.mxu0 %v8642_v60  ;;  %3605 = vmatprep.subr.bf16.mxu1 %v8644_v0  ;;  %v8248_v60 = vcombine.high %v163_v50, %v171_v52  ;;  %v8262_v0 = vcombine.high %v178_v56, %v186_v57  ;;  %v8261_v6 = vcombine.low %v178_v56, %v186_v57  ;;  %v290_v52 = vld [vmem:[#allocation5 + $0x520] sm:$0xff]  ;;  %v299_v56 = vld [vmem:[#allocation5 + $0x568] sm:$0xff] }
 0x16d   :  { %v8263_v7 = vcombine.low %v179_v59, %v187_v61 }
 0x16f   :  { %3520 = vmatpush1.bf16.msra.mxu0 %v8641_v2  ;;  %3606 = vmatpush1.bf16.msra.mxu1 %v8643_v3  ;;  %v202_v2 = vld [vmem:[#allocation5 + $0x260] sm:$0xff]  ;;  %v195_v3 = vld [vmem:[#allocation5 + $0x228] sm:$0xff] }
 0x170   :  { %3521 = vmatprep.subr.bf16.mxu0 %v8658_v4  ;;  %3607 = vmatprep.subr.bf16.mxu1 %v8660_v8  ;;  %v8264_v4 = vcombine.high %v179_v59, %v187_v61  ;;  %v8278_v8 = vcombine.high %v194_v1, %v202_v2  ;;  %v8277_v14 = vcombine.low %v194_v1, %v202_v2  ;;  %v306_v61 = vld [vmem:[#allocation5 + $0x5a0] sm:$0xff]  ;;  %v315_v1 = vld [vmem:[#allocation5 + $0x5e8] sm:$0xff] }
 0x171   :  { %v8279_v16 = vcombine.low %v195_v3, %v203_v5 }
 0x173   :  { %3522 = vmatpush1.bf16.msra.mxu0 %v8657_v10  ;;  %3608 = vmatpush1.bf16.msra.mxu1 %v8659_v11  ;;  %v218_v10 = vld [vmem:[#allocation5 + $0x2e0] sm:$0xff]  ;;  %v211_v11 = vld [vmem:[#allocation5 + $0x2a8] sm:$0xff] }
 0x174   :  { %3523 = vmatprep.subr.bf16.mxu0 %v8674_v12  ;;  %3609 = vmatprep.subr.bf16.mxu1 %v8676_v17  ;;  %v8280_v12 = vcombine.high %v195_v3, %v203_v5  ;;  %v8294_v17 = vcombine.high %v210_v9, %v218_v10  ;;  %v8293_v23 = vcombine.low %v210_v9, %v218_v10  ;;  %v322_v5 = vld [vmem:[#allocation5 + $0x620] sm:$0xff]  ;;  %v331_v9 = vld [vmem:[#allocation5 + $0x668] sm:$0xff] }
 0x175   :  { %v8295_v24 = vcombine.low %v211_v11, %v219_v13 }
 0x177   :  { %3524 = vmatpush1.bf16.msra.mxu0 %v8673_v19  ;;  %3610 = vmatpush1.bf16.msra.mxu1 %v8675_v20  ;;  %v234_v19 = vld [vmem:[#allocation5 + $0x360] sm:$0xff]  ;;  %v227_v20 = vld [vmem:[#allocation5 + $0x328] sm:$0xff] }
 0x178   :  { %3525 = vmatprep.subr.bf16.mxu0 %v8690_v21  ;;  %3611 = vmatprep.subr.bf16.mxu1 %v8692_v26  ;;  %v8296_v21 = vcombine.high %v211_v11, %v219_v13  ;;  %v8310_v26 = vcombine.high %v226_v18, %v234_v19  ;;  %v8309_v33 = vcombine.low %v226_v18, %v234_v19  ;;  %v338_v13 = vld [vmem:[#allocation5 + $0x6a0] sm:$0xff]  ;;  %v347_v18 = vld [vmem:[#allocation5 + $0x6e8] sm:$0xff] }
 0x179   :  { %v8311_v34 = vcombine.low %v227_v20, %v235_v22 }
 0x17b   :  { %3526 = vmatpush1.bf16.msra.mxu0 %v8689_v29  ;;  %3612 = vmatpush1.bf16.msra.mxu1 %v8691_v30  ;;  %v250_v29 = vld [vmem:[#allocation5 + $0x3e0] sm:$0xff]  ;;  %v243_v30 = vld [vmem:[#allocation5 + $0x3a8] sm:$0xff] }
 0x17c   :  { %3527 = vmatprep.subr.bf16.mxu0 %v8706_v31  ;;  %3613 = vmatprep.subr.bf16.mxu1 %v8708_v35  ;;  %v8312_v31 = vcombine.high %v227_v20, %v235_v22  ;;  %v8326_v35 = vcombine.high %v242_v27, %v250_v29  ;;  %v8325_v41 = vcombine.low %v242_v27, %v250_v29  ;;  %v354_v22 = vld [vmem:[#allocation5 + $0x720] sm:$0xff]  ;;  %v363_v27 = vld [vmem:[#allocation5 + $0x768] sm:$0xff] }
 0x17d   :  { %v8327_v42 = vcombine.low %v243_v30, %v251_v32 }
 0x17f   :  { %3528 = vmatpush1.bf16.msra.mxu0 %v8705_v37  ;;  %3614 = vmatpush1.bf16.msra.mxu1 %v8707_v38  ;;  %v266_v37 = vld [vmem:[#allocation5 + $0x460] sm:$0xff]  ;;  %v259_v38 = vld [vmem:[#allocation5 + $0x428] sm:$0xff] }
 0x180   :  { %3626 = vmatprep.subr.bf16.mxu0 %v8214_v39  ;;  %3712 = vmatprep.subr.bf16.mxu1 %v8216_v43  ;;  %v8328_v39 = vcombine.high %v243_v30, %v251_v32  ;;  %v8342_v43 = vcombine.high %v258_v36, %v266_v37  ;;  %v8341_v49 = vcombine.low %v258_v36, %v266_v37  ;;  %v370_v32 = vld [vmem:[#allocation5 + $0x7a0] sm:$0xff]  ;;  %v379_v36 = vld [vmem:[#allocation5 + $0x7e8] sm:$0xff] }
 0x181   :  { %v8343_v50 = vcombine.low %v259_v38, %v267_v40 }
 0x182   :  { %3530 = vmatmul.mubr.bf16.vlgmr.msra.gmra.mrb[4].mxu0 %v10562_v28  ;;  %3616 = vmatmul.mubr.bf16.vlgmr.msra.gmra.mrb[4].mxu1 %v10562_v28 }
 0x183   :  { %3627 = vmatpush1.bf16.msra.mxu0 %v8213_v45  ;;  %3713 = vmatpush1.bf16.msra.mxu1 %v8215_v46  ;;  %v282_v45 = vld [vmem:[#allocation5 + $0x4e0] sm:$0xff]  ;;  %v275_v46 = vld [vmem:[#allocation5 + $0x4a8] sm:$0xff] }
 0x184   :  { %3628 = vmatprep.subr.bf16.mxu0 %v8230_v47  ;;  %3714 = vmatprep.subr.bf16.mxu1 %v8232_v51  ;;  %v8344_v47 = vcombine.high %v259_v38, %v267_v40  ;;  %v8358_v51 = vcombine.high %v274_v44, %v282_v45  ;;  %v8357_v57 = vcombine.low %v274_v44, %v282_v45  ;;  %v386_v40 = vld [vmem:[#allocation5 + $0x820] sm:$0xff]  ;;  %v395_v44 = vld [vmem:[#allocation5 + $0x868] sm:$0xff] }
 0x185   :  { %3658 = vmatprep.mubr.bf16.mxu0 %v10550_v58  ;;  %3744 = vmatprep.mubr.bf16.mxu1 %v10550_v58  ;;  %v8359_v59 = vcombine.low %v275_v46, %v283_v48 }
 0x187   :  { %3629 = vmatpush1.bf16.msra.mxu0 %v8229_v53  ;;  %3715 = vmatpush1.bf16.msra.mxu1 %v8231_v54  ;;  %v298_v53 = vld [vmem:[#allocation5 + $0x560] sm:$0xff]  ;;  %v291_v54 = vld [vmem:[#allocation5 + $0x528] sm:$0xff] }
 0x188   :  { %3630 = vmatprep.subr.bf16.mxu0 %v8246_v55  ;;  %3716 = vmatprep.subr.bf16.mxu1 %v8248_v60  ;;  %v8360_v55 = vcombine.high %v275_v46, %v283_v48  ;;  %v8374_v60 = vcombine.high %v290_v52, %v298_v53  ;;  %v8373_v2 = vcombine.low %v290_v52, %v298_v53  ;;  %v402_v48 = vld [vmem:[#allocation5 + $0x8a0] sm:$0xff]  ;;  %v411_v52 = vld [vmem:[#allocation5 + $0x8e8] sm:$0xff] }
 0x189   :  { %v8375_v3 = vcombine.low %v291_v54, %v299_v56 }
 0x18b   :  { %3631 = vmatpush1.bf16.msra.mxu0 %v8245_v62  ;;  %3717 = vmatpush1.bf16.msra.mxu1 %v8247_v63  ;;  %v314_v62 = vld [vmem:[#allocation5 + $0x5e0] sm:$0xff]  ;;  %v307_v63 = vld [vmem:[#allocation5 + $0x5a8] sm:$0xff] }
 0x18c   :  { %3632 = vmatprep.subr.bf16.mxu0 %v8262_v0  ;;  %3718 = vmatprep.subr.bf16.mxu1 %v8264_v4  ;;  %v8376_v0 = vcombine.high %v291_v54, %v299_v56  ;;  %v8390_v4 = vcombine.high %v306_v61, %v314_v62  ;;  %v8389_v10 = vcombine.low %v306_v61, %v314_v62  ;;  %v418_v56 = vld [vmem:[#allocation5 + $0x920] sm:$0xff]  ;;  %v427_v61 = vld [vmem:[#allocation5 + $0x968] sm:$0xff] }
 0x18d   :  { %v8391_v11 = vcombine.low %v307_v63, %v315_v1 }
 0x18f   :  { %3633 = vmatpush1.bf16.msra.mxu0 %v8261_v6  ;;  %3719 = vmatpush1.bf16.msra.mxu1 %v8263_v7  ;;  %v330_v6 = vld [vmem:[#allocation5 + $0x660] sm:$0xff]  ;;  %v323_v7 = vld [vmem:[#allocation5 + $0x628] sm:$0xff] }
 0x190   :  { %3634 = vmatprep.subr.bf16.mxu0 %v8278_v8  ;;  %3720 = vmatprep.subr.bf16.mxu1 %v8280_v12  ;;  %v8392_v8 = vcombine.high %v307_v63, %v315_v1  ;;  %v8406_v12 = vcombine.high %v322_v5, %v330_v6  ;;  %v8405_v19 = vcombine.low %v322_v5, %v330_v6  ;;  %v443_v5 = vld [vmem:[#allocation5 + $0x9e8] sm:$0xff]  ;;  %v642_v6 = vlaneseq }
 0x191   :  { %v8407_v20 = vcombine.low %v323_v7, %v331_v9 }
 0x193   :  { %3635 = vmatpush1.bf16.msra.mxu0 %v8277_v14  ;;  %3721 = vmatpush1.bf16.msra.mxu1 %v8279_v16  ;;  %v346_v14 = vld [vmem:[#allocation5 + $0x6e0] sm:$0xff]  ;;  %v339_v16 = vld [vmem:[#allocation5 + $0x6a8] sm:$0xff] }
 0x194   :  { %3636 = vmatprep.subr.bf16.mxu0 %v8294_v17  ;;  %3722 = vmatprep.subr.bf16.mxu1 %v8296_v21  ;;  %v8408_v17 = vcombine.high %v323_v7, %v331_v9  ;;  %v8422_v21 = vcombine.high %v338_v13, %v346_v14  ;;  %v8421_v29 = vcombine.low %v338_v13, %v346_v14  ;;  %v451_v13 = vld [vmem:[#allocation5 + $0xa28] sm:$0xff] }
 0x195   :  { %v8423_v30 = vcombine.low %v339_v16, %v347_v18  ;;  %v459_v14 = vld [vmem:[#allocation5 + $0xa68] sm:$0xff] }
 0x197   :  { %3637 = vmatpush1.bf16.msra.mxu0 %v8293_v23  ;;  %3723 = vmatpush1.bf16.msra.mxu1 %v8295_v24  ;;  %v362_v23 = vld [vmem:[#allocation5 + $0x760] sm:$0xff]  ;;  %v355_v24 = vld [vmem:[#allocation5 + $0x728] sm:$0xff] }
 0x198   :  { %3638 = vmatprep.subr.bf16.mxu0 %v8310_v26  ;;  %3724 = vmatprep.subr.bf16.mxu1 %v8312_v31  ;;  %v8424_v26 = vcombine.high %v339_v16, %v347_v18  ;;  %v8438_v31 = vcombine.high %v354_v22, %v362_v23  ;;  %v8437_v37 = vcombine.low %v354_v22, %v362_v23  ;;  %v10580_v16 = vshrl.u32 %v642_v6, 7  ;;  %v474_v22 = vld [vmem:[#allocation5 + $0xae0] sm:$0xff] }
 0x199   :  { %v8439_v38 = vcombine.low %v355_v24, %v363_v27 }
 0x19a   :  { %v10583_v23 = vsub.s32 0, %v10580_v16 }
 0x19b   :  { %3639 = vmatpush1.bf16.msra.mxu0 %v8309_v33  ;;  %3725 = vmatpush1.bf16.msra.mxu1 %v8311_v34  ;;  %v378_v33 = vld [vmem:[#allocation5 + $0x7e0] sm:$0xff]  ;;  %v371_v34 = vld [vmem:[#allocation5 + $0x7a8] sm:$0xff] }
 0x19c   :  { %3640 = vmatprep.subr.bf16.mxu0 %v8326_v35  ;;  %3726 = vmatprep.subr.bf16.mxu1 %v8328_v39  ;;  %v8440_v35 = vcombine.high %v355_v24, %v363_v27  ;;  %v8454_v39 = vcombine.high %v370_v32, %v378_v33  ;;  %v8453_v45 = vcombine.low %v370_v32, %v378_v33  ;;  %v467_v24 = vld [vmem:[#allocation5 + $0xaa8] sm:$0xff]  ;;  %v10592_v33 = vsub.s32 3, %v10580_v16 }
 0x19d   :  { %v8455_v46 = vcombine.low %v371_v34, %v379_v36  ;;  %v8535_v32 = vcombine.low %v451_v13, %v459_v14 }
 0x19f   :  { %3641 = vmatpush1.bf16.msra.mxu0 %v8325_v41  ;;  %3727 = vmatpush1.bf16.msra.mxu1 %v8327_v42  ;;  %v394_v41 = vld [vmem:[#allocation5 + $0x860] sm:$0xff]  ;;  %v387_v42 = vld [vmem:[#allocation5 + $0x828] sm:$0xff] }
 0x1a0   :  { %3642 = vmatprep.subr.bf16.mxu0 %v8342_v43  ;;  %3728 = vmatprep.subr.bf16.mxu1 %v8344_v47  ;;  %v8456_v43 = vcombine.high %v371_v34, %v379_v36  ;;  %v8470_v47 = vcombine.high %v386_v40, %v394_v41  ;;  %v8469_v53 = vcombine.low %v386_v40, %v394_v41  ;;  %v482_v36 = vld [vmem:[#allocation5 + $0xb20] sm:$0xff]  ;;  %v491_v40 = vld [vmem:[#allocation5 + $0xb68] sm:$0xff] }
 0x1a1   :  { %v8471_v54 = vcombine.low %v387_v42, %v395_v44 }
 0x1a3   :  { %3643 = vmatpush1.bf16.msra.mxu0 %v8341_v49  ;;  %3729 = vmatpush1.bf16.msra.mxu1 %v8343_v50  ;;  %v410_v49 = vld [vmem:[#allocation5 + $0x8e0] sm:$0xff]  ;;  %v403_v50 = vld [vmem:[#allocation5 + $0x8a8] sm:$0xff] }
 0x1a4   :  { %3644 = vmatprep.subr.bf16.mxu0 %v8358_v51  ;;  %3730 = vmatprep.subr.bf16.mxu1 %v8360_v55  ;;  %v8472_v51 = vcombine.high %v387_v42, %v395_v44  ;;  %v8486_v55 = vcombine.high %v402_v48, %v410_v49  ;;  %v8485_v62 = vcombine.low %v402_v48, %v410_v49  ;;  %v10602_v48 = vld [vmem:[#allocation5 + $0xbe0] sm:$0xff] }
 0x1a5   :  { %v8487_v63 = vcombine.low %v403_v50, %v411_v52 }
 0x1a7   :  { %3645 = vmatpush1.bf16.msra.mxu0 %v8357_v57  ;;  %3731 = vmatpush1.bf16.msra.mxu1 %v8359_v59  ;;  %v426_v57 = vld [vmem:[#allocation5 + $0x960] sm:$0xff]  ;;  %v419_v59 = vld [vmem:[#allocation5 + $0x928] sm:$0xff] }
 0x1a8   :  { %3646 = vmatprep.subr.bf16.mxu0 %v8374_v60  ;;  %3732 = vmatprep.subr.bf16.mxu1 %v8376_v0  ;;  %v8488_v60 = vcombine.high %v403_v50, %v411_v52  ;;  %v8502_v0 = vcombine.high %v418_v56, %v426_v57  ;;  %v8504_v1 = vcombine.high %v419_v59, %v427_v61  ;;  %v10607_v52 = vld [vmem:[#allocation5 + $0xbe8] sm:$0xff] }
 0x1a9   :  { %v8501_v7 = vcombine.low %v418_v56, %v426_v57 }
 0x1ab   :  { %3647 = vmatpush1.bf16.msra.mxu0 %v8373_v2  ;;  %3733 = vmatpush1.bf16.msra.mxu1 %v8375_v3  ;;  %v434_v2 = vld [vmem:[#allocation5 + $0x9a0] sm:$0xff] }
 0x1ac   :  { %3648 = vmatprep.subr.bf16.mxu0 %v8390_v4  ;;  %3734 = vmatprep.subr.bf16.mxu1 %v8392_v8  ;;  %v442_v3 = vld [vmem:[#allocation5 + $0x9e0] sm:$0xff]  ;;  %v435_v4 = vld [vmem:[#allocation5 + $0x9a8] sm:$0xff]  ;;  %v8503_v8 = vcombine.low %v419_v59, %v427_v61 }
 0x1ad   :  { %v8518_v9 = vcombine.high %v434_v2, %v442_v3  ;;  %v8519_v18 = vcombine.low %v435_v4, %v443_v5 }
 0x1af   :  { %3649 = vmatpush1.bf16.msra.mxu0 %v8389_v10  ;;  %3735 = vmatpush1.bf16.msra.mxu1 %v8391_v11  ;;  %v8520_v10 = vcombine.high %v435_v4, %v443_v5  ;;  %v450_v11 = vld [vmem:[#allocation5 + $0xa20] sm:$0xff] }
 0x1b0   :  { %3650 = vmatprep.subr.bf16.mxu0 %v8406_v12  ;;  %3736 = vmatprep.subr.bf16.mxu1 %v8408_v17  ;;  %v458_v12 = vld [vmem:[#allocation5 + $0xa60] sm:$0xff]  ;;  %v8517_v17 = vcombine.low %v434_v2, %v442_v3 }
 0x1b1   :  { %v8533_v27 = vcombine.low %v450_v11, %v458_v12  ;;  %v10622_v2 = vld [vmem:[#allocation5 + $0xc60] sm:$0xff] }
 0x1b3   :  { %3651 = vmatpush1.bf16.msra.mxu0 %v8405_v19  ;;  %3737 = vmatpush1.bf16.msra.mxu1 %v8407_v20  ;;  %v8534_v19 = vcombine.high %v450_v11, %v458_v12  ;;  %v8536_v20 = vcombine.high %v451_v13, %v459_v14  ;;  %v515_v14 = vld [vmem:[#allocation5 + $0xc28] sm:$0xff] }
 0x1b4   :  { %3652 = vmatprep.subr.bf16.mxu0 %v8422_v21  ;;  %3738 = vmatprep.subr.bf16.mxu1 %v8424_v26  ;;  %v466_v21 = vld [vmem:[#allocation5 + $0xaa0] sm:$0xff]  ;;  %v475_v26 = vld [vmem:[#allocation5 + $0xae8] sm:$0xff] }
 0x1b5   :  { %v8550_v34 = vcombine.high %v466_v21, %v474_v22 }
 0x1b7   :  { %3653 = vmatpush1.bf16.msra.mxu0 %v8421_v29  ;;  %3739 = vmatpush1.bf16.msra.mxu1 %v8423_v30  ;;  %v638_v29 = vld [vmem:[#allocation7] sm:$0xff]  ;;  %v10586_v30 = vsub.s32 2, %v10580_v16 }
 0x1b8   :  { %3654 = vmatprep.subr.bf16.mxu0 %v8438_v31  ;;  %3740 = vmatprep.subr.bf16.mxu1 %v8440_v35  ;;  %v10589_v31 = vsub.s32 1, %v10580_v16  ;;  %v8552_v35 = vcombine.high %v467_v24, %v475_v26  ;;  %v657_v44 = vrot.slane %v638_v29, %v10592_v33 }
 0x1b9   :  { %v653_v41 = vrot.slane %v638_v29, %v10586_v30 }
 0x1ba   :  { %v649_v42 = vrot.slane %v638_v29, %v10589_v31 }
 0x1bb   :  { %3655 = vmatpush1.bf16.msra.mxu0 %v8437_v37  ;;  %3741 = vmatpush1.bf16.msra.mxu1 %v8439_v38  ;;  %v490_v37 = vld [vmem:[#allocation5 + $0xb60] sm:$0xff]  ;;  %v645_v38 = vrot.slane %v638_v29, %v10583_v23 }
 0x1bc   :  { %3656 = vmatprep.subr.bf16.mxu0 %v8454_v39  ;;  %3742 = vmatprep.subr.bf16.mxu1 %v8456_v43  ;;  %v10595_v39 = vld [vmem:[#allocation5 + $0xb28] sm:$0xff]  ;;  %v8549_v43 = vcombine.low %v466_v21, %v474_v22  ;;  %v8565_v56 = vcombine.low %v482_v36, %v490_v37  ;;  %v10644_v22 = vld [vmem:[#allocation5 + $0xca0] sm:$0xff] }
 0x1bd   :  { %v8568_v50 = vcombine.high %v10595_v39, %v491_v40  ;;  %v8567_v57 = vcombine.low %v10595_v39, %v491_v40  ;;  %v523_v21 = vld [vmem:[#allocation5 + $0xc68] sm:$0xff] }
 0x1bf   :  { %3657 = vmatpush1.bf16.msra.mxu0 %v8453_v45  ;;  %3743 = vmatpush1.bf16.msra.mxu1 %v8455_v46  ;;  %v8551_v45 = vcombine.low %v467_v24, %v475_v26  ;;  %v8566_v46 = vcombine.high %v482_v36, %v490_v37  ;;  %v10646_v24 = vld [vmem:[#allocation5 + $0xce0] sm:$0xff] }
 0x1c0   :  { %3669 = vmatprep.subr.bf16.mxu0 %v8470_v47  ;;  %3755 = vmatprep.subr.bf16.mxu1 %v8472_v51  ;;  %v10600_v47 = vld [vmem:[#allocation5 + $0xba0] sm:$0xff]  ;;  %v10605_v51 = vld [vmem:[#allocation5 + $0xba8] sm:$0xff] }
 0x1c1   :  { %v8584_v13 = vcombine.high %v10605_v51, %v10607_v52 }
 0x1c2   :  { %3659 = vmatmul.mubr.bf16.vlgmr.msra.gmra.mrb[8].mxu0 %v10554_v15  ;;  %3745 = vmatmul.mubr.bf16.vlgmr.msra.gmra.mrb[8].mxu1 %v10554_v15 }
 0x1c3   :  { %3670 = vmatpush1.bf16.msra.mxu0 %v8469_v53  ;;  %3756 = vmatpush1.bf16.msra.mxu1 %v8471_v54 }
 0x1c4   :  { %3671 = vmatprep.subr.bf16.mxu0 %v8486_v55  ;;  %3757 = vmatprep.subr.bf16.mxu1 %v8488_v60 }
 0x1c5   :  { %3701 = vmatprep.mubr.bf16.mxu0 %v10556_v25  ;;  %3787 = vmatprep.mubr.bf16.mxu1 %v10556_v25 }
 0x1c7   :  { %3672 = vmatpush1.bf16.msra.mxu0 %v8485_v62  ;;  %3758 = vmatpush1.bf16.msra.mxu1 %v8487_v63  ;;  %v8581_v63 = vcombine.low %v10600_v47, %v10602_v48 }
 0x1c8   :  { %3673 = vmatprep.subr.bf16.mxu0 %v8502_v0  ;;  %3759 = vmatprep.subr.bf16.mxu1 %v8504_v1  ;;  %v8582_v0 = vcombine.high %v10600_v47, %v10602_v48  ;;  %v10620_v1 = vld [vmem:[#allocation5 + $0xc20] sm:$0xff]  ;;  %v539_v47 = vld [vmem:[#allocation5 + $0xce8] sm:$0xff] }
 0x1c9   :  { %v8597_v40 = vcombine.low %v10620_v1, %v10622_v2 }
 0x1cb   :  { %3674 = vmatpush1.bf16.msra.mxu0 %v8501_v7  ;;  %3760 = vmatpush1.bf16.msra.mxu1 %v8503_v8  ;;  %v8583_v8 = vcombine.low %v10605_v51, %v10607_v52 }
 0x1cc   :  { %3675 = vmatprep.subr.bf16.mxu0 %v8518_v9  ;;  %3761 = vmatprep.subr.bf16.mxu1 %v8520_v10 }
 0x1cf   :  { %3676 = vmatpush1.bf16.msra.mxu0 %v8517_v17  ;;  %3762 = vmatpush1.bf16.msra.mxu1 %v8519_v18 }
 0x1d0   :  { %3677 = vmatprep.subr.bf16.mxu0 %v8534_v19  ;;  %3763 = vmatprep.subr.bf16.mxu1 %v8536_v20  ;;  %v8598_v20 = vcombine.high %v10620_v1, %v10622_v2  ;;  %v554_v1 = vld [vmem:[#allocation5 + $0xd60] sm:$0xff] }
 0x1d3   :  { %3678 = vmatpush1.bf16.msra.mxu0 %v8533_v27  ;;  %3764 = vmatpush1.bf16.msra.mxu1 %v8535_v32 }
 0x1d4   :  { %3679 = vmatprep.subr.bf16.mxu0 %v8550_v34  ;;  %3765 = vmatprep.subr.bf16.mxu1 %v8552_v35 }
 0x1d5   :  { %v3359_v49 = vpop.f32.mrb[0].mxu0  ;;  %v3445_v54 = vpop.f32.mrb[0].mxu1 }
 0x1d6   :  { %v10609_v53 = vadd.f32 %v3359_v49, %v645_v38  ;;  %v3361_v55 = vpop.f32.mrb[1].mxu0  ;;  %v10612_v59 = vadd.f32 %v3445_v54, %v653_v41  ;;  %v3447_v61 = vpop.f32.mrb[1].mxu1 }
 0x1d7   :  { %v10614_v60 = vadd.f32 %v3361_v55, %v649_v42  ;;  %v3363_v62 = vpop.f32.mrb[2].mxu0  ;;  %3680 = vmatpush1.bf16.msra.mxu0 %v8549_v43  ;;  %v10625_v4 = vadd.f32 %v3447_v61, %v657_v44  ;;  %v3449_v6 = vpop.f32.mrb[2].mxu1  ;;  %3766 = vmatpush1.bf16.msra.mxu1 %v8551_v45  ;;  %v8614_v45 = vcombine.high %v10644_v22, %v10646_v24 }
 0x1d8   :  { %v4002_v3 = vmul.f32 0.044715, %v10609_v53  ;;  %v10627_v5 = vadd.f32 %v3363_v62, %v645_v38  ;;  %v3365_v7 = vpop.f32.mrb[3].mxu0  ;;  %3681 = vmatprep.subr.bf16.mxu0 %v8566_v46  ;;  %v4004_v9 = vmul.f32 0.044715, %v10612_v59  ;;  %v10632_v10 = vadd.f32 %v3449_v6, %v653_v41  ;;  %v3451_v12 = vpop.f32.mrb[3].mxu1  ;;  %3767 = vmatprep.subr.bf16.mxu1 %v8568_v50 }
 0x1d9   :  { %v10634_v11 = vadd.f32 %v3365_v7, %v649_v42  ;;  %v10640_v19 = vadd.f32 %v3451_v12, %v657_v44  ;;  %v4003_v27 = vmul.f32 0.044715, %v10614_v60  ;;  %v4005_v35 = vmul.f32 0.044715, %v10625_v4  ;;  %v531_v46 = vld [vmem:[#allocation5 + $0xca8] sm:$0xff] }
 0x1da   :  { %v4034_v17 = vmul.f32 %v10609_v53, %v4002_v3  ;;  %v4018_v18 = vmul.f32 0.044715, %v10627_v5  ;;  %v4036_v26 = vmul.f32 %v10612_v59, %v4004_v9  ;;  %v4020_v29 = vmul.f32 0.044715, %v10632_v10  ;;  %v547_v6 = vld [vmem:[#allocation5 + $0xd28] sm:$0xff] }
 0x1db   :  { %v4019_v32 = vmul.f32 0.044715, %v10634_v11  ;;  %3682 = vmatpush1.bf16.msra.mxu0 %v8565_v56  ;;  %v4021_v37 = vmul.f32 0.044715, %v10640_v19  ;;  %3768 = vmatpush1.bf16.msra.mxu1 %v8567_v57  ;;  %v8600_v41 = vcombine.high %v515_v14, %v523_v21  ;;  %v8599_v44 = vcombine.low %v515_v14, %v523_v21  ;;  %v555_v7 = vld [vmem:[#allocation5 + $0xd68] sm:$0xff]  ;;  %v570_v21 = vld [vmem:[#allocation5 + $0xde0] sm:$0xff] }
 0x1dc   :  { %v4066_v34 = vmul.f32 %v10609_v53, %v4034_v17  ;;  %v4050_v36 = vmul.f32 %v10627_v5, %v4018_v18  ;;  %3683 = vmatprep.subr.bf16.mxu0 %v8582_v0  ;;  %v4068_v38 = vmul.f32 %v10612_v59, %v4036_v26  ;;  %v4052_v39 = vmul.f32 %v10632_v10, %v4020_v29  ;;  %v546_v0 = vld [vmem:[#allocation5 + $0xd20] sm:$0xff] }
 0x1dd   :  { %3769 = vmatprep.subr.bf16.mxu1 %v8584_v13  ;;  %v4035_v49 = vmul.f32 %v10614_v60, %v4003_v27  ;;  %v4051_v51 = vmul.f32 %v10634_v11, %v4019_v32  ;;  %v4037_v54 = vmul.f32 %v10625_v4, %v4005_v35  ;;  %v4053_v56 = vmul.f32 %v10640_v19, %v4021_v37 }
 0x1de   :  { %v4098_v42 = vadd.f32 %v10609_v53, %v4066_v34  ;;  %v4082_v43 = vmul.f32 %v10627_v5, %v4050_v36  ;;  %v4100_v48 = vadd.f32 %v10612_v59, %v4068_v38  ;;  %v4084_v50 = vmul.f32 %v10632_v10, %v4052_v39  ;;  %v578_v38 = vld [vmem:[#allocation5 + $0xe20] sm:$0xff] }
 0x1df   :  { %3684 = vmatpush1.bf16.msra.mxu0 %v8581_v63  ;;  %3770 = vmatpush1.bf16.msra.mxu1 %v8583_v8  ;;  %v8616_v62 = vcombine.high %v531_v46, %v539_v47  ;;  %v8613_v63 = vcombine.low %v10644_v22, %v10646_v24  ;;  %v8615_v3 = vcombine.low %v531_v46, %v539_v47  ;;  %v563_v22 = vld [vmem:[#allocation5 + $0xda8] sm:$0xff]  ;;  %v586_v39 = vld [vmem:[#allocation5 + $0xe60] sm:$0xff] }
 0x1e0   :  { %v4130_v52 = vmul.f32 0.7978846, %v4098_v42  ;;  %v4114_v55 = vadd.f32 %v10627_v5, %v4082_v43  ;;  %3685 = vmatprep.subr.bf16.mxu0 %v8598_v20  ;;  %v4132_v57 = vmul.f32 0.7978846, %v4100_v48  ;;  %v4116_v61 = vadd.f32 %v10632_v10, %v4084_v50  ;;  %3771 = vmatprep.subr.bf16.mxu1 %v8600_v41  ;;  %v562_v20 = vld [vmem:[#allocation5 + $0xda0] sm:$0xff]  ;;  %v571_v24 = vld [vmem:[#allocation5 + $0xde8] sm:$0xff] }
 0x1e1   :  { %v4067_v9 = vmul.f32 %v10614_v60, %v4035_v49  ;;  %v4083_v12 = vmul.f32 %v10634_v11, %v4051_v51  ;;  %v4069_v13 = vmul.f32 %v10625_v4, %v4037_v54  ;;  %v4085_v14 = vmul.f32 %v10640_v19, %v4053_v56  ;;  %v579_v42 = vld [vmem:[#allocation5 + $0xe28] sm:$0xff]  ;;  %v602_v54 = vld [vmem:[#allocation5 + $0xee0] sm:$0xff] }
 0x1e2   :  { %10139 = vtanh.f32 %v4130_v52  ;;  %v4146_v2 = vmul.f32 0.7978846, %v4114_v55  ;;  %v4148_v8 = vmul.f32 0.7978846, %v4116_v61  ;;  %v8630_v17 = vcombine.high %v546_v0, %v554_v1  ;;  %v587_v43 = vld [vmem:[#allocation5 + $0xe68] sm:$0xff]  ;;  %v594_v52 = vld [vmem:[#allocation5 + $0xea0] sm:$0xff] }
 0x1e3   :  { %10141 = vtanh.f32 %v4132_v57  ;;  %3686 = vmatpush1.bf16.msra.mxu0 %v8597_v40  ;;  %3772 = vmatpush1.bf16.msra.mxu1 %v8599_v44  ;;  %v8632_v18 = vcombine.high %v547_v6, %v555_v7  ;;  %v8629_v26 = vcombine.low %v546_v0, %v554_v1  ;;  %v8631_v27 = vcombine.low %v547_v6, %v555_v7  ;;  %v595_v61 = vld [vmem:[#allocation5 + $0xea8] sm:$0xff] }
 0x1e4   :  { %10143 = vtanh.f32 %v4146_v2  ;;  %3687 = vmatprep.subr.bf16.mxu0 %v8614_v45  ;;  %3773 = vmatprep.subr.bf16.mxu1 %v8616_v62  ;;  %v4099_v29 = vadd.f32 %v10614_v60, %v4067_v9  ;;  %v4115_v32 = vadd.f32 %v10634_v11, %v4083_v12  ;;  %v8646_v34 = vcombine.high %v562_v20, %v570_v21  ;;  %v603_v62 = vld [vmem:[#allocation5 + $0xee8] sm:$0xff] }
 0x1e5   :  { %10145 = vtanh.f32 %v4148_v8  ;;  %v4101_v35 = vadd.f32 %v10625_v4, %v4069_v13  ;;  %v4117_v36 = vadd.f32 %v10640_v19, %v4085_v14  ;;  %v8648_v37 = vcombine.high %v563_v22, %v571_v24  ;;  %v610_v14 = vld [vmem:[#allocation5 + $0xf20] sm:$0xff] }
 0x1e6   :  { %v4131_v40 = vmul.f32 0.7978846, %v4099_v29  ;;  %v4147_v41 = vmul.f32 0.7978846, %v4115_v32  ;;  %v8645_v46 = vcombine.low %v562_v20, %v570_v21  ;;  %v8647_v48 = vcombine.low %v563_v22, %v571_v24  ;;  %v611_v21 = vld [vmem:[#allocation5 + $0xf28] sm:$0xff] }
 0x1e7   :  { %3688 = vmatpush1.bf16.msra.mxu0 %v8613_v63  ;;  %3774 = vmatpush1.bf16.msra.mxu1 %v8615_v3  ;;  %v4133_v44 = vmul.f32 0.7978846, %v4101_v35  ;;  %v4149_v45 = vmul.f32 0.7978846, %v4117_v36  ;;  %v8662_v49 = vcombine.high %v578_v38, %v586_v39  ;;  %v8664_v51 = vcombine.high %v579_v42, %v587_v43  ;;  %v619_v22 = vld [vmem:[#allocation5 + $0xf68] sm:$0xff]  ;;  %v634_v35 = vld [vmem:[#allocation5 + $0xfe0] sm:$0xff] }
 0x1e8   :  { %3689 = vmatprep.subr.bf16.mxu0 %v8630_v17  ;;  %3775 = vmatprep.subr.bf16.mxu1 %v8632_v18  ;;  %10147 = vtanh.f32 %v4131_v40  ;;  %v8661_v57 = vcombine.low %v578_v38, %v586_v39  ;;  %v8663_v2 = vcombine.low %v579_v42, %v587_v43  ;;  %v3970_v63 = vmul.f32 0.5, %v10609_v53  ;;  %v618_v17 = vld [vmem:[#allocation5 + $0xf60] sm:$0xff]  ;;  %v627_v36 = vld [vmem:[#allocation5 + $0xfa8] sm:$0xff] }
 0x1e9   :  { %10149 = vtanh.f32 %v4147_v41  ;;  %v3986_v3 = vmul.f32 0.5, %v10627_v5  ;;  %v8678_v7 = vcombine.high %v594_v52, %v602_v54  ;;  %v3972_v9 = vmul.f32 0.5, %v10612_v59 }
 0x1ea   :  { %10151 = vtanh.f32 %v4133_v44  ;;  %v3988_v8 = vmul.f32 0.5, %v10632_v10  ;;  %v8680_v13 = vcombine.high %v595_v61, %v603_v62  ;;  %v8677_v5 = vcombine.low %v594_v52, %v602_v54  ;;  %v626_v10 = vld [vmem:[#allocation5 + $0xfa0] sm:$0xff]  ;;  %v140_v52 = vld [vmem:[#allocation5 + $0x70] sm:$0xff] }
 0x1eb   :  { %3690 = vmatpush1.bf16.msra.mxu0 %v8629_v26  ;;  %3776 = vmatpush1.bf16.msra.mxu1 %v8631_v27  ;;  %10153 = vtanh.f32 %v4149_v45  ;;  %v8679_v59 = vcombine.low %v595_v61, %v603_v62  ;;  %v8694_v27 = vcombine.high %v610_v14, %v618_v17  ;;  %v8693_v39 = vcombine.low %v610_v14, %v618_v17  ;;  %v141_v61 = vld [vmem:[#allocation5 + $0x78] sm:$0xff]  ;;  %v164_v17 = vld [vmem:[#allocation5 + $0x130] sm:$0xff] }
 0x1ec   :  { %v10140_v47 = vpop.eup %10139  ;;  %3691 = vmatprep.subr.bf16.mxu0 %v8646_v34  ;;  %3777 = vmatprep.subr.bf16.mxu1 %v8648_v37  ;;  %v8696_v34 = vcombine.high %v611_v21, %v619_v22  ;;  %v635_v37 = vld [vmem:[#allocation5 + $0xfe8] sm:$0xff]  ;;  %v8695_v42 = vcombine.low %v611_v21, %v619_v22  ;;  %v3971_v43 = vmul.f32 0.5, %v10614_v60  ;;  %v3987_v44 = vmul.f32 0.5, %v10634_v11  ;;  %v133_v60 = vld [vmem:[#allocation5 + $0x38] sm:$0xff] }
 0x1ed   :  { %v10142_v50 = vpop.eup %10141  ;;  %v4194_v55 = vadd.f32 1.0, %v10140_v47  ;;  %v8710_v47 = vcombine.high %v626_v10, %v634_v35  ;;  %v8709_v11 = vcombine.low %v626_v10, %v634_v35  ;;  %v173_v21 = vld [vmem:[#allocation5 + $0x178] sm:$0xff] }
 0x1ee   :  { %v10144_v56 = vpop.eup %10143  ;;  %v4196_v0 = vadd.f32 1.0, %v10142_v50  ;;  %v181_v10 = vld [vmem:[#allocation5 + $0x1b8] sm:$0xff] }
 0x1ef   :  { %v10146_v1 = vpop.eup %10145  ;;  %3692 = vmatpush1.bf16.msra.mxu0 %v8645_v46  ;;  %v4210_v6 = vadd.f32 1.0, %v10144_v56  ;;  %3778 = vmatpush1.bf16.msra.mxu1 %v8647_v48  ;;  %v4226_v18 = vmul.f32 %v4194_v55, %v3970_v63  ;;  %v8712_v48 = vcombine.high %v627_v36, %v635_v37  ;;  %v3989_v56 = vmul.f32 0.5, %v10640_v19  ;;  %v149_v19 = vld [vmem:[#allocation5 + $0xb8] sm:$0xff] }
 0x1f0   :  { %3693 = vmatprep.subr.bf16.mxu0 %v8662_v49  ;;  %v4212_v12 = vadd.f32 1.0, %v10146_v1  ;;  %3779 = vmatprep.subr.bf16.mxu1 %v8664_v51  ;;  %v4228_v53 = vmul.f32 %v4196_v0, %v3972_v9  ;;  %v3973_v49 = vmul.f32 0.5, %v10625_v4  ;;  %v132_v51 = vld [vmem:[#allocation5 + $0x30] sm:$0xff]  ;;  %v8711_v4 = vcombine.low %v627_v36, %v635_v37  ;;  %v157_v9 = vld [vmem:[#allocation5 + $0xf8] sm:$0xff] }
 0x1f1   :  { %v4242_v20 = vmul.f32 %v4210_v6, %v3986_v3  ;;  %v8220_v63 = vcombine.high %v133_v60, %v141_v61  ;;  %v148_v3 = vld [vmem:[#allocation5 + $0xb0] sm:$0xff]  ;;  %v8236_v14 = vcombine.high %v149_v19, %v157_v9 }
 0x1f2   :  { %v4244_v24 = vmul.f32 %v4212_v12, %v3988_v8  ;;  %v10148_v32 = vpop.eup %10147  ;;  %v156_v6 = vld [vmem:[#allocation5 + $0xf0] sm:$0xff]  ;;  %v8217_v8 = vcombine.low %v132_v51, %v140_v52  ;;  %v8219_v12 = vcombine.low %v133_v60, %v141_v61 }
 0x1f3   :  { %3694 = vmatpush1.bf16.msra.mxu0 %v8661_v57  ;;  %v10686_v26 = vpack.c.bf16 %v4242_v20, %v4226_v18  ;;  %3780 = vmatpush1.bf16.msra.mxu1 %v8663_v2  ;;  %v10150_v38 = vpop.eup %10149  ;;  %v4195_v40 = vadd.f32 1.0, %v10148_v32  ;;  %v8218_v2 = vcombine.high %v132_v51, %v140_v52  ;;  %v172_v18 = vld [vmem:[#allocation5 + $0x170] sm:$0xff]  ;;  %v165_v20 = vld [vmem:[#allocation5 + $0x138] sm:$0xff]  ;;  %v8233_v22 = vcombine.low %v148_v3, %v156_v6 }
 0x1f4   :  { %3695 = vmatprep.subr.bf16.mxu0 %v8678_v7  ;;  %v10688_v29 = vpack.c.bf16 %v4244_v24, %v4228_v53  ;;  %3781 = vmatprep.subr.bf16.mxu1 %v8680_v13  ;;  %v10152_v41 = vpop.eup %10151  ;;  %v4211_v45 = vadd.f32 1.0, %v10150_v38  ;;  %v8234_v13 = vcombine.high %v148_v3, %v156_v6  ;;  %v8235_v53 = vcombine.low %v149_v19, %v157_v9  ;;  %v189_v32 = vld [vmem:[#allocation5 + $0x1f8] sm:$0xff]  ;;  %v196_v38 = vld [vmem:[#allocation5 + $0x230] sm:$0xff] }
 0x1f5   :  { %v10154_v46 = vpop.eup %10153  ;;  %v4197_v50 = vadd.f32 1.0, %v10152_v41  ;;  %v4227_v54 = vmul.f32 %v4195_v40, %v3971_v43  ;;  %v8250_v24 = vcombine.high %v164_v17, %v172_v18  ;;  %v8251_v35 = vcombine.low %v165_v20, %v173_v21  ;;  %v197_v40 = vld [vmem:[#allocation5 + $0x238] sm:$0xff] }
 0x1f6   :  { %v4243_v55 = vmul.f32 %v4211_v45, %v3987_v44  ;;  %v4213_v57 = vadd.f32 1.0, %v10154_v46  ;;  %v8268_v37 = vcombine.high %v181_v10, %v189_v32  ;;  %v205_v41 = vld [vmem:[#allocation5 + $0x278] sm:$0xff]  ;;  %v8267_v43 = vcombine.low %v181_v10, %v189_v32  ;;  %v212_v45 = vld [vmem:[#allocation5 + $0x2b0] sm:$0xff] }
 0x1f7   :  { %3696 = vmatpush1.bf16.msra.mxu0 %v8677_v5  ;;  %3782 = vmatpush1.bf16.msra.mxu1 %v8679_v59  ;;  %v4229_v0 = vmul.f32 %v4197_v50, %v3973_v49  ;;  %v8252_v5 = vcombine.high %v165_v20, %v173_v21  ;;  %v180_v59 = vld [vmem:[#allocation5 + $0x1b0] sm:$0xff]  ;;  %v8283_v50 = vcombine.low %v197_v40, %v205_v41 }
 0x1f8   :  { %3697 = vmatprep.subr.bf16.mxu0 %v8694_v27  ;;  %3783 = vmatprep.subr.bf16.mxu1 %v8696_v34  ;;  %v10694_v62 = vpack.c.bf16 %v4243_v55, %v4227_v54  ;;  %v4245_v1 = vmul.f32 %v4213_v57, %v3989_v56  ;;  %v188_v27 = vld [vmem:[#allocation5 + $0x1f0] sm:$0xff]  ;;  %v8249_v34 = vcombine.low %v164_v17, %v172_v18  ;;  %v229_v56 = vld [vmem:[#allocation5 + $0x338] sm:$0xff] }
 0x1f9   :  { %v8266_v36 = vcombine.high %v180_v59, %v188_v27  ;;  %v220_v46 = vld [vmem:[#allocation5 + $0x2f0] sm:$0xff]  ;;  %v237_v57 = vld [vmem:[#allocation5 + $0x378] sm:$0xff] }
 0x1fa   :  { %v10696_v7 = vpack.c.bf16 %v4245_v1, %v4229_v0  ;;  %v8298_v51 = vcombine.high %v212_v45, %v220_v46  ;;  %v228_v54 = vld [vmem:[#allocation5 + $0x330] sm:$0xff]  ;;  %v8297_v60 = vcombine.low %v212_v45, %v220_v46  ;;  %v8316_v0 = vcombine.high %v229_v56, %v237_v57 }
 0x1fb   :  { %3698 = vmatpush1.bf16.msra.mxu0 %v8693_v39  ;;  %3784 = vmatpush1.bf16.msra.mxu1 %v8695_v42  ;;  %v204_v39 = vld [vmem:[#allocation5 + $0x270] sm:$0xff]  ;;  %v8265_v42 = vcombine.low %v180_v59, %v188_v27  ;;  %v8315_v6 = vcombine.low %v229_v56, %v237_v57 }
 0x1fc   :  { %3699 = vmatprep.subr.bf16.mxu0 %v8710_v47  ;;  %3785 = vmatprep.subr.bf16.mxu1 %v8712_v48  ;;  %v8282_v44 = vcombine.high %v196_v38, %v204_v39  ;;  %v213_v47 = vld [vmem:[#allocation5 + $0x2b8] sm:$0xff]  ;;  %v8281_v49 = vcombine.low %v196_v38, %v204_v39  ;;  %v236_v55 = vld [vmem:[#allocation5 + $0x370] sm:$0xff] }
 0x1fd   :  { %v221_v48 = vld [vmem:[#allocation5 + $0x2f8] sm:$0xff]  ;;  %v244_v1 = vld [vmem:[#allocation5 + $0x3b0] sm:$0xff]  ;;  %v8313_v3 = vcombine.low %v228_v54, %v236_v55 }
 0x1fe   :  { %v8300_v52 = vcombine.high %v213_v47, %v221_v48  ;;  %v8299_v61 = vcombine.low %v213_v47, %v221_v48 }
 0x1ff   :  { %3700 = vmatpush1.bf16.msra.mxu0 %v8709_v11  ;;  %3786 = vmatpush1.bf16.msra.mxu1 %v8711_v4  ;;  %v8314_v11 = vcombine.high %v228_v54, %v236_v55  ;;  %v252_v4 = vld [vmem:[#allocation5 + $0x3f0] sm:$0xff] }
 0x200   :  { %3798 = vmatprep.subr.bf16.mxu0 %v8218_v2  ;;  %3884 = vmatprep.subr.bf16.mxu1 %v8220_v63  ;;  %v245_v2 = vld [vmem:[#allocation5 + $0x3b8] sm:$0xff]  ;;  %v8330_v19 = vcombine.high %v244_v1, %v252_v4  ;;  %v8329_v17 = vcombine.low %v244_v1, %v252_v4 }
 0x201   :  { %v253_v63 = vld [vmem:[#allocation5 + $0x3f8] sm:$0xff] }
 0x202   :  { %3702 = vmatmul.mubr.bf16.vlgmr.msra.gmra.mrb[8].mxu0 %v10562_v28  ;;  %3788 = vmatmul.mubr.bf16.vlgmr.msra.gmra.mrb[8].mxu1 %v10562_v28  ;;  %v8332_v9 = vcombine.high %v245_v2, %v253_v63  ;;  %v8331_v18 = vcombine.low %v245_v2, %v253_v63 }
 0x203   :  { %3799 = vmatpush1.bf16.msra.mxu0 %v8217_v8  ;;  %3885 = vmatpush1.bf16.msra.mxu1 %v8219_v12  ;;  %v260_v8 = vld [vmem:[#allocation5 + $0x430] sm:$0xff] }
 0x204   :  { %3800 = vmatprep.subr.bf16.mxu0 %v8234_v13  ;;  %3886 = vmatprep.subr.bf16.mxu1 %v8236_v14  ;;  %v268_v12 = vld [vmem:[#allocation5 + $0x470] sm:$0xff]  ;;  %v261_v13 = vld [vmem:[#allocation5 + $0x438] sm:$0xff] }
 0x205   :  { %3830 = vmatprep.mubr.bf16.mxu0 %v10550_v58  ;;  %3916 = vmatprep.mubr.bf16.mxu1 %v10550_v58  ;;  %v8284_v58 = vcombine.high %v197_v40, %v205_v41  ;;  %v269_v14 = vld [vmem:[#allocation5 + $0x478] sm:$0xff]  ;;  %v8346_v20 = vcombine.high %v260_v8, %v268_v12  ;;  %v8345_v59 = vcombine.low %v260_v8, %v268_v12 }
 0x206   :  { %v8348_v21 = vcombine.high %v261_v13, %v269_v14  ;;  %v8347_v27 = vcombine.low %v261_v13, %v269_v14 }
 0x207   :  { %3801 = vmatpush1.bf16.msra.mxu0 %v8233_v22  ;;  %3887 = vmatpush1.bf16.msra.mxu1 %v8235_v53  ;;  %v276_v22 = vld [vmem:[#allocation5 + $0x4b0] sm:$0xff] }
 0x208   :  { %3802 = vmatprep.subr.bf16.mxu0 %v8250_v24  ;;  %3888 = vmatprep.subr.bf16.mxu1 %v8252_v5  ;;  %v284_v53 = vld [vmem:[#allocation5 + $0x4f0] sm:$0xff]  ;;  %v277_v24 = vld [vmem:[#allocation5 + $0x4b8] sm:$0xff] }
 0x209   :  { %v285_v5 = vld [vmem:[#allocation5 + $0x4f8] sm:$0xff]  ;;  %v8362_v10 = vcombine.high %v276_v22, %v284_v53  ;;  %v8361_v38 = vcombine.low %v276_v22, %v284_v53 }
 0x20a   :  { %v8364_v32 = vcombine.high %v277_v24, %v285_v5  ;;  %v8363_v39 = vcombine.low %v277_v24, %v285_v5 }
 0x20b   :  { %3803 = vmatpush1.bf16.msra.mxu0 %v8249_v34  ;;  %3889 = vmatpush1.bf16.msra.mxu1 %v8251_v35  ;;  %v292_v34 = vld [vmem:[#allocation5 + $0x530] sm:$0xff] }
 0x20c   :  { %3804 = vmatprep.subr.bf16.mxu0 %v8266_v36  ;;  %3890 = vmatprep.subr.bf16.mxu1 %v8268_v37  ;;  %v300_v35 = vld [vmem:[#allocation5 + $0x570] sm:$0xff]  ;;  %v293_v36 = vld [vmem:[#allocation5 + $0x538] sm:$0xff] }
 0x20d   :  { %v301_v37 = vld [vmem:[#allocation5 + $0x578] sm:$0xff]  ;;  %v8378_v40 = vcombine.high %v292_v34, %v300_v35  ;;  %v8377_v45 = vcombine.low %v292_v34, %v300_v35 }
 0x20e   :  { %v8380_v41 = vcombine.high %v293_v36, %v301_v37  ;;  %v8379_v46 = vcombine.low %v293_v36, %v301_v37 }
 0x20f   :  { %3805 = vmatpush1.bf16.msra.mxu0 %v8265_v42  ;;  %3891 = vmatpush1.bf16.msra.mxu1 %v8267_v43  ;;  %v308_v42 = vld [vmem:[#allocation5 + $0x5b0] sm:$0xff] }
 0x210   :  { %3806 = vmatprep.subr.bf16.mxu0 %v8282_v44  ;;  %3892 = vmatprep.subr.bf16.mxu1 %v8284_v58  ;;  %v316_v43 = vld [vmem:[#allocation5 + $0x5f0] sm:$0xff]  ;;  %v309_v44 = vld [vmem:[#allocation5 + $0x5b8] sm:$0xff] }
 0x211   :  { %v317_v58 = vld [vmem:[#allocation5 + $0x5f8] sm:$0xff]  ;;  %v8394_v47 = vcombine.high %v308_v42, %v316_v43  ;;  %v8393_v54 = vcombine.low %v308_v42, %v316_v43 }
 0x212   :  { %v8396_v48 = vcombine.high %v309_v44, %v317_v58  ;;  %v8395_v55 = vcombine.low %v309_v44, %v317_v58 }
 0x213   :  { %3807 = vmatpush1.bf16.msra.mxu0 %v8281_v49  ;;  %3893 = vmatpush1.bf16.msra.mxu1 %v8283_v50  ;;  %v324_v49 = vld [vmem:[#allocation5 + $0x630] sm:$0xff] }
 0x214   :  { %3808 = vmatprep.subr.bf16.mxu0 %v8298_v51  ;;  %3894 = vmatprep.subr.bf16.mxu1 %v8300_v52  ;;  %v332_v50 = vld [vmem:[#allocation5 + $0x670] sm:$0xff]  ;;  %v325_v51 = vld [vmem:[#allocation5 + $0x638] sm:$0xff] }
 0x215   :  { %v333_v52 = vld [vmem:[#allocation5 + $0x678] sm:$0xff]  ;;  %v8410_v56 = vcombine.high %v324_v49, %v332_v50  ;;  %v8409_v1 = vcombine.low %v324_v49, %v332_v50 }
 0x216   :  { %v8412_v57 = vcombine.high %v325_v51, %v333_v52  ;;  %v8411_v4 = vcombine.low %v325_v51, %v333_v52 }
 0x217   :  { %3809 = vmatpush1.bf16.msra.mxu0 %v8297_v60  ;;  %3895 = vmatpush1.bf16.msra.mxu1 %v8299_v61  ;;  %v340_v60 = vld [vmem:[#allocation5 + $0x6b0] sm:$0xff] }
 0x218   :  { %3810 = vmatprep.subr.bf16.mxu0 %v8314_v11  ;;  %3896 = vmatprep.subr.bf16.mxu1 %v8316_v0  ;;  %v348_v61 = vld [vmem:[#allocation5 + $0x6f0] sm:$0xff]  ;;  %v341_v11 = vld [vmem:[#allocation5 + $0x6b8] sm:$0xff] }
 0x219   :  { %v349_v0 = vld [vmem:[#allocation5 + $0x6f8] sm:$0xff]  ;;  %v8426_v2 = vcombine.high %v340_v60, %v348_v61  ;;  %v8425_v8 = vcombine.low %v340_v60, %v348_v61 }
 0x21a   :  { %v8428_v63 = vcombine.high %v341_v11, %v349_v0  ;;  %v8427_v12 = vcombine.low %v341_v11, %v349_v0  ;;  %v452_v0 = vld [vmem:[#allocation5 + $0xa30] sm:$0xff] }
 0x21b   :  { %3811 = vmatpush1.bf16.msra.mxu0 %v8313_v3  ;;  %3897 = vmatpush1.bf16.msra.mxu1 %v8315_v6  ;;  %v356_v3 = vld [vmem:[#allocation5 + $0x730] sm:$0xff] }
 0x21c   :  { %3812 = vmatprep.subr.bf16.mxu0 %v8330_v19  ;;  %3898 = vmatprep.subr.bf16.mxu1 %v8332_v9  ;;  %v364_v6 = vld [vmem:[#allocation5 + $0x770] sm:$0xff]  ;;  %v357_v19 = vld [vmem:[#allocation5 + $0x738] sm:$0xff] }
 0x21d   :  { %v365_v9 = vld [vmem:[#allocation5 + $0x778] sm:$0xff]  ;;  %v8442_v13 = vcombine.high %v356_v3, %v364_v6  ;;  %v8441_v22 = vcombine.low %v356_v3, %v364_v6 }
 0x21e   :  { %v8444_v14 = vcombine.high %v357_v19, %v365_v9  ;;  %v8443_v53 = vcombine.low %v357_v19, %v365_v9  ;;  %v468_v19 = vld [vmem:[#allocation5 + $0xab0] sm:$0xff] }
 0x21f   :  { %3813 = vmatpush1.bf16.msra.mxu0 %v8329_v17  ;;  %3899 = vmatpush1.bf16.msra.mxu1 %v8331_v18  ;;  %v372_v17 = vld [vmem:[#allocation5 + $0x7b0] sm:$0xff] }
 0x220   :  { %3814 = vmatprep.subr.bf16.mxu0 %v8346_v20  ;;  %3900 = vmatprep.subr.bf16.mxu1 %v8348_v21  ;;  %v380_v18 = vld [vmem:[#allocation5 + $0x7f0] sm:$0xff]  ;;  %v373_v20 = vld [vmem:[#allocation5 + $0x7b8] sm:$0xff] }
 0x221   :  { %v381_v21 = vld [vmem:[#allocation5 + $0x7f8] sm:$0xff]  ;;  %v8458_v24 = vcombine.high %v372_v17, %v380_v18  ;;  %v8457_v34 = vcombine.low %v372_v17, %v380_v18  ;;  %v476_v9 = vld [vmem:[#allocation5 + $0xaf0] sm:$0xff]  ;;  %v668_v17 = vsub.s32 6, %v10580_v16  ;;  %v664_v18 = vsub.s32 5, %v10580_v16 }
 0x222   :  { %v8460_v5 = vcombine.high %v373_v20, %v381_v21  ;;  %v8459_v35 = vcombine.low %v373_v20, %v381_v21  ;;  %v672_v21 = vsub.s32 7, %v10580_v16 }
 0x223   :  { %3815 = vmatpush1.bf16.msra.mxu0 %v8345_v59  ;;  %3901 = vmatpush1.bf16.msra.mxu1 %v8347_v27  ;;  %v388_v59 = vld [vmem:[#allocation5 + $0x830] sm:$0xff] }
 0x224   :  { %3816 = vmatprep.subr.bf16.mxu0 %v8362_v10  ;;  %3902 = vmatprep.subr.bf16.mxu1 %v8364_v32  ;;  %v396_v27 = vld [vmem:[#allocation5 + $0x870] sm:$0xff]  ;;  %v389_v10 = vld [vmem:[#allocation5 + $0x838] sm:$0xff] }
 0x225   :  { %v397_v32 = vld [vmem:[#allocation5 + $0x878] sm:$0xff]  ;;  %v8474_v36 = vcombine.high %v388_v59, %v396_v27  ;;  %v8473_v42 = vcombine.low %v388_v59, %v396_v27  ;;  %v10207_v59 = vld [vmem:[#allocation7] sm:$0xff] }
 0x226   :  { %v8476_v37 = vcombine.high %v389_v10, %v397_v32  ;;  %v8475_v43 = vcombine.low %v389_v10, %v397_v32  ;;  %v485_v10 = vld [vmem:[#allocation5 + $0xb38] sm:$0xff] }
 0x227   :  { %3817 = vmatpush1.bf16.msra.mxu0 %v8361_v38  ;;  %3903 = vmatpush1.bf16.msra.mxu1 %v8363_v39  ;;  %v404_v38 = vld [vmem:[#allocation5 + $0x8b0] sm:$0xff]  ;;  %v493_v32 = vld [vmem:[#allocation5 + $0xb78] sm:$0xff] }
 0x228   :  { %3818 = vmatprep.subr.bf16.mxu0 %v8378_v40  ;;  %3904 = vmatprep.subr.bf16.mxu1 %v8380_v41  ;;  %v412_v39 = vld [vmem:[#allocation5 + $0x8f0] sm:$0xff]  ;;  %v405_v40 = vld [vmem:[#allocation5 + $0x8b8] sm:$0xff] }
 0x229   :  { %v413_v41 = vld [vmem:[#allocation5 + $0x8f8] sm:$0xff]  ;;  %v8490_v44 = vcombine.high %v404_v38, %v412_v39  ;;  %v8489_v49 = vcombine.low %v404_v38, %v412_v39 }
 0x22a   :  { %v8492_v58 = vcombine.high %v405_v40, %v413_v41  ;;  %v8491_v50 = vcombine.low %v405_v40, %v413_v41  ;;  %v10718_v40 = vld [vmem:[#allocation5 + $0xbb0] sm:$0xff] }
 0x22b   :  { %3819 = vmatpush1.bf16.msra.mxu0 %v8377_v45  ;;  %3905 = vmatpush1.bf16.msra.mxu1 %v8379_v46  ;;  %v420_v45 = vld [vmem:[#allocation5 + $0x930] sm:$0xff] }
 0x22c   :  { %3820 = vmatprep.subr.bf16.mxu0 %v8394_v47  ;;  %3906 = vmatprep.subr.bf16.mxu1 %v8396_v48  ;;  %v428_v46 = vld [vmem:[#allocation5 + $0x970] sm:$0xff]  ;;  %v421_v47 = vld [vmem:[#allocation5 + $0x938] sm:$0xff] }
 0x22d   :  { %v429_v48 = vld [vmem:[#allocation5 + $0x978] sm:$0xff]  ;;  %v8506_v51 = vcombine.high %v420_v45, %v428_v46  ;;  %v8505_v60 = vcombine.low %v420_v45, %v428_v46  ;;  %v10720_v41 = vld [vmem:[#allocation5 + $0xbf0] sm:$0xff] }
 0x22e   :  { %v8508_v52 = vcombine.high %v421_v47, %v429_v48 }
 0x22f   :  { %3821 = vmatpush1.bf16.msra.mxu0 %v8393_v54  ;;  %3907 = vmatpush1.bf16.msra.mxu1 %v8395_v55  ;;  %v436_v54 = vld [vmem:[#allocation5 + $0x9b0] sm:$0xff] }
 0x230   :  { %3822 = vmatprep.subr.bf16.mxu0 %v8410_v56  ;;  %3908 = vmatprep.subr.bf16.mxu1 %v8412_v57  ;;  %v444_v55 = vld [vmem:[#allocation5 + $0x9f0] sm:$0xff]  ;;  %v437_v56 = vld [vmem:[#allocation5 + $0x9b8] sm:$0xff] }
 0x231   :  { %v445_v57 = vld [vmem:[#allocation5 + $0x9f8] sm:$0xff]  ;;  %v8522_v61 = vcombine.high %v436_v54, %v444_v55 }
 0x232   :  { %v8524_v11 = vcombine.high %v437_v56, %v445_v57  ;;  %v8523_v3 = vcombine.low %v437_v56, %v445_v57  ;;  %v8586_v56 = vcombine.high %v10718_v40, %v10720_v41 }
 0x233   :  { %3823 = vmatpush1.bf16.msra.mxu0 %v8409_v1  ;;  %3909 = vmatpush1.bf16.msra.mxu1 %v8411_v4  ;;  %v460_v1 = vld [vmem:[#allocation5 + $0xa70] sm:$0xff]  ;;  %v453_v4 = vld [vmem:[#allocation5 + $0xa38] sm:$0xff] }
 0x234   :  { %3824 = vmatprep.subr.bf16.mxu0 %v8426_v2  ;;  %3910 = vmatprep.subr.bf16.mxu1 %v8428_v63  ;;  %v461_v2 = vld [vmem:[#allocation5 + $0xa78] sm:$0xff]  ;;  %v8521_v63 = vcombine.low %v436_v54, %v444_v55  ;;  %v8538_v6 = vcombine.high %v452_v0, %v460_v1  ;;  %v8585_v55 = vcombine.low %v10718_v40, %v10720_v41 }
 0x235   :  { %v8539_v20 = vcombine.low %v453_v4, %v461_v2 }
 0x237   :  { %3825 = vmatpush1.bf16.msra.mxu0 %v8425_v8  ;;  %3911 = vmatpush1.bf16.msra.mxu1 %v8427_v12  ;;  %v660_v8 = vsub.s32 4, %v10580_v16  ;;  %v469_v12 = vld [vmem:[#allocation5 + $0xab8] sm:$0xff] }
 0x238   :  { %3826 = vmatprep.subr.bf16.mxu0 %v8442_v13  ;;  %3912 = vmatprep.subr.bf16.mxu1 %v8444_v14  ;;  %v477_v13 = vld [vmem:[#allocation5 + $0xaf8] sm:$0xff]  ;;  %v8537_v14 = vcombine.low %v452_v0, %v460_v1  ;;  %v10743_v1 = vld [vmem:[#allocation5 + $0xc30] sm:$0xff] }
 0x239   :  { %v661_v27 = vrot.slane %v10207_v59, %v660_v8  ;;  %v8555_v38 = vcombine.low %v469_v12, %v477_v13  ;;  %v9698_v16 = vld [vmem:[#allocation8 + $0x6c8] ss:$16 sps:$4 sm:$0xff]  }
 0x23b   :  { %3827 = vmatpush1.bf16.msra.mxu0 %v8441_v22  ;;  %3913 = vmatpush1.bf16.msra.mxu1 %v8443_v53  ;;  %v8554_v22 = vcombine.high %v468_v19, %v476_v9  ;;  %v8556_v53 = vcombine.high %v469_v12, %v477_v13 }
 0x23c   :  { %3828 = vmatprep.subr.bf16.mxu0 %v8458_v24  ;;  %3914 = vmatprep.subr.bf16.mxu1 %v8460_v5  ;;  %v484_v24 = vld [vmem:[#allocation5 + $0xb30] sm:$0xff] }
 0x23d   :  { %v492_v5 = vld [vmem:[#allocation5 + $0xb70] sm:$0xff] }
 0x23e   :  { %v8570_v39 = vcombine.high %v484_v24, %v492_v5 }
 0x23f   :  { %3829 = vmatpush1.bf16.msra.mxu0 %v8457_v34  ;;  %3915 = vmatpush1.bf16.msra.mxu1 %v8459_v35  ;;  %v669_v34 = vrot.slane %v10207_v59, %v668_v17  ;;  %v665_v35 = vrot.slane %v10207_v59, %v664_v18 }
 0x240   :  { %3841 = vmatprep.subr.bf16.mxu0 %v8474_v36  ;;  %3927 = vmatprep.subr.bf16.mxu1 %v8476_v37  ;;  %v8553_v36 = vcombine.low %v468_v19, %v476_v9  ;;  %v673_v37 = vrot.slane %v10207_v59, %v672_v21 }
 0x242   :  { %3831 = vmatmul.mubr.bf16.vlgmr.msra.gmra.mrb[12].mxu0 %v10554_v15  ;;  %3917 = vmatmul.mubr.bf16.vlgmr.msra.gmra.mrb[12].mxu1 %v10554_v15  ;;  %v8507_v15 = vcombine.low %v421_v47, %v429_v48  ;;  %v8569_v48 = vcombine.low %v484_v24, %v492_v5 }
 0x243   :  { %3842 = vmatpush1.bf16.msra.mxu0 %v8473_v42  ;;  %3928 = vmatpush1.bf16.msra.mxu1 %v8475_v43  ;;  %v8572_v43 = vcombine.high %v485_v10, %v493_v32 }
 0x244   :  { %3843 = vmatprep.subr.bf16.mxu0 %v8490_v44  ;;  %3929 = vmatprep.subr.bf16.mxu1 %v8492_v58  ;;  %v10722_v44 = vld [vmem:[#allocation5 + $0xbb8] sm:$0xff] }
 0x245   :  { %3873 = vmatprep.mubr.bf16.mxu0 %v10556_v25  ;;  %3959 = vmatprep.mubr.bf16.mxu1 %v10556_v25  ;;  %v8540_v25 = vcombine.high %v453_v4, %v461_v2  ;;  %v10724_v58 = vld [vmem:[#allocation5 + $0xbf8] sm:$0xff] }
 0x246   :  { %v8588_v0 = vcombine.high %v10722_v44, %v10724_v58  ;;  %v8587_v13 = vcombine.low %v10722_v44, %v10724_v58  ;;  %v541_v44 = vld [vmem:[#allocation5 + $0xcf8] sm:$0xff] }
 0x247   :  { %3844 = vmatpush1.bf16.msra.mxu0 %v8489_v49  ;;  %3930 = vmatpush1.bf16.msra.mxu1 %v8491_v50  ;;  %v8571_v49 = vcombine.low %v485_v10, %v493_v32 }
 0x248   :  { %3845 = vmatprep.subr.bf16.mxu0 %v8506_v51  ;;  %3931 = vmatprep.subr.bf16.mxu1 %v8508_v52 }
 0x24b   :  { %3846 = vmatpush1.bf16.msra.mxu0 %v8505_v60  ;;  %3932 = vmatpush1.bf16.msra.mxu1 %v8507_v15 }
 0x24c   :  { %3847 = vmatprep.subr.bf16.mxu0 %v8522_v61  ;;  %3933 = vmatprep.subr.bf16.mxu1 %v8524_v11 }
 0x24f   :  { %3848 = vmatpush1.bf16.msra.mxu0 %v8521_v63  ;;  %3934 = vmatpush1.bf16.msra.mxu1 %v8523_v3 }
 0x250   :  { %3849 = vmatprep.subr.bf16.mxu0 %v8538_v6  ;;  %3935 = vmatprep.subr.bf16.mxu1 %v8540_v25  ;;  %v524_v25 = vld [vmem:[#allocation5 + $0xc70] sm:$0xff] }
 0x251   :  { %v8602_v10 = vcombine.high %v10743_v1, %v524_v25 }
 0x253   :  { %3850 = vmatpush1.bf16.msra.mxu0 %v8537_v14  ;;  %3936 = vmatpush1.bf16.msra.mxu1 %v8539_v20  ;;  %v517_v14 = vld [vmem:[#allocation5 + $0xc38] sm:$0xff] }
 0x254   :  { %3851 = vmatprep.subr.bf16.mxu0 %v8554_v22  ;;  %3937 = vmatprep.subr.bf16.mxu1 %v8556_v53  ;;  %v525_v20 = vld [vmem:[#allocation5 + $0xc78] sm:$0xff] }
 0x255   :  { %v3531_v42 = vpop.f32.mrb[4].mxu0  ;;  %v3617_v46 = vpop.f32.mrb[4].mxu1 }
 0x256   :  { %v10726_v45 = vadd.f32 %v3531_v42, %v661_v27  ;;  %v3533_v47 = vpop.f32.mrb[5].mxu0  ;;  %v10728_v50 = vadd.f32 %v3617_v46, %v669_v34  ;;  %v3619_v52 = vpop.f32.mrb[5].mxu1 }
 0x257   :  { %v10730_v51 = vadd.f32 %v3533_v47, %v665_v35  ;;  %v3535_v54 = vpop.f32.mrb[6].mxu0  ;;  %3852 = vmatpush1.bf16.msra.mxu0 %v8553_v36  ;;  %v10737_v60 = vadd.f32 %v3619_v52, %v673_v37  ;;  %v3621_v61 = vpop.f32.mrb[6].mxu1  ;;  %3938 = vmatpush1.bf16.msra.mxu1 %v8555_v38  ;;  %v8604_v36 = vcombine.high %v517_v14, %v525_v20  ;;  %v540_v38 = vld [vmem:[#allocation5 + $0xcf0] sm:$0xff] }
 0x258   :  { %v4006_v57 = vmul.f32 0.044715, %v10726_v45  ;;  %v10739_v15 = vadd.f32 %v3535_v54, %v661_v27  ;;  %v3537_v11 = vpop.f32.mrb[7].mxu0  ;;  %3853 = vmatprep.subr.bf16.mxu0 %v8570_v39  ;;  %v4008_v4 = vmul.f32 0.044715, %v10728_v50  ;;  %v10747_v63 = vadd.f32 %v3621_v61, %v669_v34  ;;  %v3623_v6 = vpop.f32.mrb[7].mxu1  ;;  %3939 = vmatprep.subr.bf16.mxu1 %v8572_v43 }
 0x259   :  { %v4007_v2 = vmul.f32 0.044715, %v10730_v51  ;;  %v10749_v3 = vadd.f32 %v3537_v11, %v665_v35  ;;  %v10753_v12 = vadd.f32 %v3623_v6, %v673_v37  ;;  %v4009_v34 = vmul.f32 0.044715, %v10737_v60  ;;  %v532_v37 = vld [vmem:[#allocation5 + $0xcb0] sm:$0xff]  ;;  %v533_v43 = vld [vmem:[#allocation5 + $0xcb8] sm:$0xff] }
 0x25a   :  { %v4038_v19 = vmul.f32 %v10726_v45, %v4006_v57  ;;  %v4022_v9 = vmul.f32 0.044715, %v10739_v15  ;;  %v4040_v22 = vmul.f32 %v10728_v50, %v4008_v4  ;;  %v4024_v24 = vmul.f32 0.044715, %v10747_v63  ;;  %v548_v4 = vld [vmem:[#allocation5 + $0xd30] sm:$0xff]  ;;  %v549_v6 = vld [vmem:[#allocation5 + $0xd38] sm:$0xff] }
 0x25b   :  { %v4039_v53 = vmul.f32 %v10730_v51, %v4007_v2  ;;  %v4023_v5 = vmul.f32 0.044715, %v10749_v3  ;;  %3854 = vmatpush1.bf16.msra.mxu0 %v8569_v48  ;;  %3940 = vmatpush1.bf16.msra.mxu1 %v8571_v49  ;;  %v4025_v42 = vmul.f32 0.044715, %v10753_v12  ;;  %v8601_v48 = vcombine.low %v10743_v1, %v524_v25  ;;  %v556_v2 = vld [vmem:[#allocation5 + $0xd70] sm:$0xff]  ;;  %v557_v25 = vld [vmem:[#allocation5 + $0xd78] sm:$0xff] }
 0x25c   :  { %v4070_v59 = vmul.f32 %v10726_v45, %v4038_v19  ;;  %v4054_v27 = vmul.f32 %v10739_v15, %v4022_v9  ;;  %3855 = vmatprep.subr.bf16.mxu0 %v8586_v56  ;;  %v4072_v32 = vmul.f32 %v10728_v50, %v4040_v22  ;;  %v4056_v35 = vmul.f32 %v10747_v63, %v4024_v24  ;;  %v564_v24 = vld [vmem:[#allocation5 + $0xdb0] sm:$0xff] }
 0x25d   :  { %3941 = vmatprep.subr.bf16.mxu1 %v8588_v0  ;;  %v4071_v40 = vmul.f32 %v10730_v51, %v4039_v53  ;;  %v4055_v47 = vmul.f32 %v10749_v3, %v4023_v5  ;;  %v8603_v54 = vcombine.low %v517_v14, %v525_v20  ;;  %v8618_v56 = vcombine.high %v532_v37, %v540_v38  ;;  %v572_v5 = vld [vmem:[#allocation5 + $0xdf0] sm:$0xff] }
 0x25e   :  { %v4102_v39 = vadd.f32 %v10726_v45, %v4070_v59  ;;  %v4086_v41 = vmul.f32 %v10739_v15, %v4054_v27  ;;  %v4104_v58 = vadd.f32 %v10728_v50, %v4072_v32  ;;  %v4088_v46 = vmul.f32 %v10747_v63, %v4056_v35  ;;  %v573_v32 = vld [vmem:[#allocation5 + $0xdf8] sm:$0xff] }
 0x25f   :  { %3856 = vmatpush1.bf16.msra.mxu0 %v8585_v55  ;;  %3942 = vmatpush1.bf16.msra.mxu1 %v8587_v13  ;;  %v4041_v61 = vmul.f32 %v10737_v60, %v4009_v34  ;;  %v8620_v0 = vcombine.high %v533_v43, %v541_v44  ;;  %v4057_v1 = vmul.f32 %v10753_v12, %v4025_v42  ;;  %v581_v42 = vld [vmem:[#allocation5 + $0xe38] sm:$0xff] }
 0x260   :  { %v4134_v49 = vmul.f32 0.7978846, %v4102_v39  ;;  %v4118_v52 = vadd.f32 %v10739_v15, %v4086_v41  ;;  %3857 = vmatprep.subr.bf16.mxu0 %v8602_v10  ;;  %v4136_v57 = vmul.f32 0.7978846, %v4104_v58  ;;  %v4120_v11 = vadd.f32 %v10747_v63, %v4088_v46  ;;  %3943 = vmatprep.subr.bf16.mxu1 %v8604_v36  ;;  %v565_v10 = vld [vmem:[#allocation5 + $0xdb8] sm:$0xff]  ;;  %v588_v41 = vld [vmem:[#allocation5 + $0xe70] sm:$0xff] }
 0x261   :  { %v4103_v19 = vadd.f32 %v10730_v51, %v4071_v40  ;;  %v4087_v13 = vmul.f32 %v10749_v3, %v4055_v47  ;;  %v8617_v14 = vcombine.low %v532_v37, %v540_v38  ;;  %v8619_v20 = vcombine.low %v533_v43, %v541_v44  ;;  %v580_v40 = vld [vmem:[#allocation5 + $0xe30] sm:$0xff]  ;;  %v589_v43 = vld [vmem:[#allocation5 + $0xe78] sm:$0xff] }
 0x262   :  { %10155 = vtanh.f32 %v4134_v49  ;;  %v4150_v55 = vmul.f32 0.7978846, %v4118_v52  ;;  %v4152_v9 = vmul.f32 0.7978846, %v4120_v11  ;;  %v8634_v22 = vcombine.high %v548_v4, %v556_v2  ;;  %v596_v47 = vld [vmem:[#allocation5 + $0xeb0] sm:$0xff] }
 0x263   :  { %10157 = vtanh.f32 %v4136_v57  ;;  %3858 = vmatpush1.bf16.msra.mxu0 %v8601_v48  ;;  %3944 = vmatpush1.bf16.msra.mxu1 %v8603_v54  ;;  %v8636_v53 = vcombine.high %v549_v6, %v557_v25  ;;  %v4073_v59 = vmul.f32 %v10737_v60, %v4041_v61  ;;  %v4089_v27 = vmul.f32 %v10753_v12, %v4057_v1  ;;  %v604_v48 = vld [vmem:[#allocation5 + $0xef0] sm:$0xff] }
 0x264   :  { %10159 = vtanh.f32 %v4150_v55  ;;  %3859 = vmatprep.subr.bf16.mxu0 %v8618_v56  ;;  %3945 = vmatprep.subr.bf16.mxu1 %v8620_v0  ;;  %v4135_v34 = vmul.f32 0.7978846, %v4103_v19  ;;  %v8633_v35 = vcombine.low %v548_v4, %v556_v2  ;;  %v4119_v36 = vadd.f32 %v10749_v3, %v4087_v13  ;;  %v597_v0 = vld [vmem:[#allocation5 + $0xeb8] sm:$0xff] }
 0x265   :  { %10161 = vtanh.f32 %v4152_v9  ;;  %v8635_v37 = vcombine.low %v549_v6, %v557_v25  ;;  %v8650_v38 = vcombine.high %v564_v24, %v572_v5  ;;  %v8652_v39 = vcombine.high %v565_v10, %v573_v32  ;;  %v605_v4 = vld [vmem:[#allocation5 + $0xef8] sm:$0xff] }
 0x266   :  { %10163 = vtanh.f32 %v4135_v34  ;;  %v4105_v44 = vadd.f32 %v10737_v60, %v4073_v59  ;;  %v4121_v58 = vadd.f32 %v10753_v12, %v4089_v27  ;;  %v8649_v46 = vcombine.low %v564_v24, %v572_v5  ;;  %v612_v59 = vld [vmem:[#allocation5 + $0xf30] sm:$0xff] }
 0x267   :  { %3860 = vmatpush1.bf16.msra.mxu0 %v8617_v14  ;;  %3946 = vmatpush1.bf16.msra.mxu1 %v8619_v20  ;;  %v4151_v49 = vmul.f32 0.7978846, %v4119_v36  ;;  %v8651_v54 = vcombine.low %v565_v10, %v573_v32  ;;  %v8666_v56 = vcombine.high %v580_v40, %v588_v41  ;;  %v8665_v61 = vcombine.low %v580_v40, %v588_v41  ;;  %v620_v27 = vld [vmem:[#allocation5 + $0xf70] sm:$0xff] }
 0x268   :  { %3861 = vmatprep.subr.bf16.mxu0 %v8634_v22  ;;  %3947 = vmatprep.subr.bf16.mxu1 %v8636_v53  ;;  %v8668_v11 = vcombine.high %v581_v42, %v589_v43  ;;  %v8667_v1 = vcombine.low %v581_v42, %v589_v43  ;;  %v8682_v6 = vcombine.high %v596_v47, %v604_v48  ;;  %v4137_v25 = vmul.f32 0.7978846, %v4105_v44  ;;  %v628_v41 = vld [vmem:[#allocation5 + $0xfb0] sm:$0xff]  ;;  %v629_v44 = vld [vmem:[#allocation5 + $0xfb8] sm:$0xff] }
 0x269   :  { %10165 = vtanh.f32 %v4151_v49  ;;  %v4153_v19 = vmul.f32 0.7978846, %v4121_v58  ;;  %v3974_v13 = vmul.f32 0.5, %v10726_v45  ;;  %v3990_v14 = vmul.f32 0.5, %v10739_v15  ;;  %v613_v45 = vld [vmem:[#allocation5 + $0xf38] sm:$0xff]  ;;  %v636_v42 = vld [vmem:[#allocation5 + $0xff0] sm:$0xff] }
 0x26a   :  { %v8684_v53 = vcombine.high %v597_v0, %v605_v4  ;;  %10167 = vtanh.f32 %v4137_v25  ;;  %v3976_v24 = vmul.f32 0.5, %v10728_v50  ;;  %v3992_v5 = vmul.f32 0.5, %v10747_v63  ;;  %v637_v58 = vld [vmem:[#allocation5 + $0xff8] sm:$0xff]  ;;  %v9373_v25 = vld [vmem:[#allocation8 + $0x4] ss:$16 sps:$4 sm:$0xff]  }
 0x26b   :  { %3862 = vmatpush1.bf16.msra.mxu0 %v8633_v35  ;;  %3948 = vmatpush1.bf16.msra.mxu1 %v8635_v37  ;;  %10169 = vtanh.f32 %v4153_v19  ;;  %v621_v35 = vld [vmem:[#allocation5 + $0xf78] sm:$0xff]  ;;  %v8681_v15 = vcombine.low %v596_v47, %v604_v48  ;;  %v8683_v50 = vcombine.low %v597_v0, %v605_v4  ;;  %v8698_v63 = vcombine.high %v612_v59, %v620_v27 }
 0x26c   :  { %v10156_v52 = vpop.eup %10155  ;;  %3863 = vmatprep.subr.bf16.mxu0 %v8650_v38  ;;  %3949 = vmatprep.subr.bf16.mxu1 %v8652_v39  ;;  %v8700_v40 = vcombine.high %v613_v45, %v621_v35  ;;  %v8697_v47 = vcombine.low %v612_v59, %v620_v27  ;;  %v8699_v49 = vcombine.low %v613_v45, %v621_v35  ;;  %v9376_v19 = vld [vmem:[#allocation8 + $0xc] ss:$16 sps:$4 sm:$0xff]   ;;  %v9385_v27 = vld [vmem:[#allocation8 + $0x44] ss:$16 sps:$4 sm:$0xff]   ;;  %v9389_v35 = vld [vmem:[#allocation8 + $0x60] ss:$16 sps:$4 sm:$0xff]  }
 0x26d   :  { %v10158_v57 = vpop.eup %10157  ;;  %v4198_v2 = vadd.f32 1.0, %v10156_v52  ;;  %v8714_v52 = vcombine.high %v628_v41, %v636_v42  ;;  %v8713_v4 = vcombine.low %v628_v41, %v636_v42  ;;  %v9382_v59 = vld [vmem:[#allocation8 + $0x2c] ss:$16 sps:$4 sm:$0xff]   ;;  %v9391_v45 = vld [vmem:[#allocation8 + $0x64] ss:$16 sps:$4 sm:$0xff]  }
 0x26e   :  { %v10160_v55 = vpop.eup %10159  ;;  %v4200_v22 = vadd.f32 1.0, %v10158_v57  ;;  %v3991_v57 = vmul.f32 0.5, %v10749_v3  ;;  %v3993_v3 = vmul.f32 0.5, %v10753_v12  ;;  %v9380_v12 = vld [vmem:[#allocation8 + $0x28] ss:$16 sps:$4 sm:$0xff]  }
 0x26f   :  { %v10162_v9 = vpop.eup %10161  ;;  %3864 = vmatpush1.bf16.msra.mxu0 %v8649_v46  ;;  %v4214_v20 = vadd.f32 1.0, %v10160_v55  ;;  %3950 = vmatpush1.bf16.msra.mxu1 %v8651_v54  ;;  %v4230_v10 = vmul.f32 %v4198_v2, %v3974_v13  ;;  %v8716_v54 = vcombine.high %v629_v44, %v637_v58  ;;  %v9404_v41 = vld [vmem:[#allocation8 + $0xa8] ss:$16 sps:$4 sm:$0xff]   ;;  %v9409_v42 = vld [vmem:[#allocation8 + $0xc4] ss:$16 sps:$4 sm:$0xff]  }
 0x270   :  { %3865 = vmatprep.subr.bf16.mxu0 %v8666_v56  ;;  %3951 = vmatprep.subr.bf16.mxu1 %v8668_v11  ;;  %v4216_v34 = vadd.f32 1.0, %v10162_v9  ;;  %v4232_v37 = vmul.f32 %v4200_v22, %v3976_v24  ;;  %v10164_v39 = vpop.eup %10163  ;;  %v3975_v56 = vmul.f32 0.5, %v10730_v51  ;;  %v3977_v51 = vmul.f32 0.5, %v10737_v60  ;;  %v9379_v24 = vld [vmem:[#allocation8 + $0x24] ss:$16 sps:$4 sm:$0xff]  }
 0x271   :  { %v4246_v32 = vmul.f32 %v4214_v20, %v3990_v14  ;;  %v4199_v48 = vadd.f32 1.0, %v10164_v39  ;;  %v9371_v14 = vld [vmem:[#allocation8] ss:$16 sps:$4 sm:$0xff]   ;;  %v9398_v39 = vld [vmem:[#allocation8 + $0x88] ss:$16 sps:$4 sm:$0xff]  }
 0x272   :  { %v4248_v38 = vmul.f32 %v4216_v34, %v3992_v5  ;;  %v9377_v60 = vld [vmem:[#allocation8 + $0x20] ss:$16 sps:$4 sm:$0xff]   ;;  %v9386_v34 = vld [vmem:[#allocation8 + $0x48] ss:$16 sps:$4 sm:$0xff]  }
 0x273   :  { %3866 = vmatpush1.bf16.msra.mxu0 %v8665_v61  ;;  %v10790_v36 = vpack.c.bf16 %v4246_v32, %v4230_v10  ;;  %3952 = vmatpush1.bf16.msra.mxu1 %v8667_v1  ;;  %v10166_v46 = vpop.eup %10165  ;;  %v4231_v2 = vmul.f32 %v4199_v48, %v3975_v56  ;;  %v9388_v10 = vld [vmem:[#allocation8 + $0x4c] ss:$16 sps:$4 sm:$0xff]   ;;  %v9383_v32 = vld [vmem:[#allocation8 + $0x40] ss:$16 sps:$4 sm:$0xff]  }
 0x274   :  { %3867 = vmatprep.subr.bf16.mxu0 %v8682_v6  ;;  %3953 = vmatprep.subr.bf16.mxu1 %v8684_v53  ;;  %v10792_v43 = vpack.c.bf16 %v4248_v38, %v4232_v37  ;;  %v4215_v61 = vadd.f32 1.0, %v10166_v46  ;;  %v10168_v11 = vpop.eup %10167  ;;  %v8715_v6 = vcombine.low %v629_v44, %v637_v58  ;;  %v9374_v53 = vld [vmem:[#allocation8 + $0x8] ss:$16 sps:$4 sm:$0xff]   ;;  %v9397_v37 = vld [vmem:[#allocation8 + $0x84] ss:$16 sps:$4 sm:$0xff]  }
 0x275   :  { %v10170_v0 = vpop.eup %10169  ;;  %v4201_v1 = vadd.f32 1.0, %v10168_v11  ;;  %v9400_v38 = vld [vmem:[#allocation8 + $0x8c] ss:$16 sps:$4 sm:$0xff]   ;;  %v9407_v58 = vld [vmem:[#allocation8 + $0xc0] ss:$16 sps:$4 sm:$0xff]  }
 0x276   :  { %v4247_v55 = vmul.f32 %v4215_v61, %v3991_v57  ;;  %v4217_v13 = vadd.f32 1.0, %v10170_v0  ;;  %v9412_v44 = vld [vmem:[#allocation8 + $0xcc] ss:$16 sps:$4 sm:$0xff]   ;;  %v9410_v46 = vld [vmem:[#allocation8 + $0xc8] ss:$16 sps:$4 sm:$0xff]  }
 0x277   :  { %3868 = vmatpush1.bf16.msra.mxu0 %v8681_v15  ;;  %3954 = vmatpush1.bf16.msra.mxu1 %v8683_v50  ;;  %v4233_v20 = vmul.f32 %v4201_v1, %v3977_v51  ;;  %v9392_v15 = vld [vmem:[#allocation8 + $0x68] ss:$16 sps:$4 sm:$0xff]   ;;  %v9403_v50 = vld [vmem:[#allocation8 + $0xa4] ss:$16 sps:$4 sm:$0xff]   ;;  %v9418_v48 = vld [vmem:[#allocation8 + $0xec] ss:$16 sps:$4 sm:$0xff]  }
 0x278   :  { %3869 = vmatprep.subr.bf16.mxu0 %v8698_v63  ;;  %3955 = vmatprep.subr.bf16.mxu1 %v8700_v40  ;;  %v10796_v9 = vpack.c.bf16 %v4247_v55, %v4231_v2  ;;  %v4249_v22 = vmul.f32 %v4217_v13, %v3993_v3  ;;  %v9406_v63 = vld [vmem:[#allocation8 + $0xac] ss:$16 sps:$4 sm:$0xff]   ;;  %v9401_v40 = vld [vmem:[#allocation8 + $0xa0] ss:$16 sps:$4 sm:$0xff]   ;;  %v9422_v61 = vld [vmem:[#allocation8 + $0x108] ss:$16 sps:$4 sm:$0xff]  }
 0x279   :  { %v9424_v56 = vld [vmem:[#allocation8 + $0x10c] ss:$16 sps:$4 sm:$0xff]   ;;  %v9419_v57 = vld [vmem:[#allocation8 + $0x100] ss:$16 sps:$4 sm:$0xff]   ;;  %v9427_v11 = vld [vmem:[#allocation8 + $0x124] ss:$16 sps:$4 sm:$0xff]  }
 0x27a   :  { %v10800_v5 = vpack.c.bf16 %v4249_v22, %v4233_v20  ;;  %v9430_v0 = vld [vmem:[#allocation8 + $0x12c] ss:$16 sps:$4 sm:$0xff]   ;;  %v9428_v2 = vld [vmem:[#allocation8 + $0x128] ss:$16 sps:$4 sm:$0xff]   ;;  %v9433_v55 = vld [vmem:[#allocation8 + $0x144] ss:$16 sps:$4 sm:$0xff]  }
 0x27b   :  { %3870 = vmatpush1.bf16.msra.mxu0 %v8697_v47  ;;  %3956 = vmatpush1.bf16.msra.mxu1 %v8699_v49  ;;  %v9415_v47 = vld [vmem:[#allocation8 + $0xe4] ss:$16 sps:$4 sm:$0xff]   ;;  %v9413_v49 = vld [vmem:[#allocation8 + $0xe0] ss:$16 sps:$4 sm:$0xff]   ;;  %v9436_v1 = vld [vmem:[#allocation8 + $0x14c] ss:$16 sps:$4 sm:$0xff]  }
 0x27c   :  { %3871 = vmatprep.subr.bf16.mxu0 %v8714_v52  ;;  %3957 = vmatprep.subr.bf16.mxu1 %v8716_v54  ;;  %v9416_v52 = vld [vmem:[#allocation8 + $0xe8] ss:$16 sps:$4 sm:$0xff]   ;;  %v9421_v54 = vld [vmem:[#allocation8 + $0x104] ss:$16 sps:$4 sm:$0xff]   ;;  %v9442_v51 = vld [vmem:[#allocation8 + $0x16c] ss:$16 sps:$4 sm:$0xff]  }
 0x27d   :  { %v9437_v3 = vld [vmem:[#allocation8 + $0x160] ss:$16 sps:$4 sm:$0xff]   ;;  %v9440_v13 = vld [vmem:[#allocation8 + $0x168] ss:$16 sps:$4 sm:$0xff]   ;;  %v9448_v20 = vld [vmem:[#allocation8 + $0x18c] ss:$16 sps:$4 sm:$0xff]  }
 0x27e   :  { %v9443_v22 = vld [vmem:[#allocation8 + $0x180] ss:$16 sps:$4 sm:$0xff]  }
 0x27f   :  { %3872 = vmatpush1.bf16.msra.mxu0 %v8713_v4  ;;  %3958 = vmatpush1.bf16.msra.mxu1 %v8715_v6  ;;  %v9425_v4 = vld [vmem:[#allocation8 + $0x120] ss:$16 sps:$4 sm:$0xff]  }
 0x280   :  { %7368 = vmatprep.subr.bf16.mxu0 %v9373_v25  ;;  %7712 = vmatprep.subr.bf16.mxu1 %v9376_v19  ;;  %v9431_v6 = vld [vmem:[#allocation8 + $0x140] ss:$16 sps:$4 sm:$0xff]   ;;  %v9434_v25 = vld [vmem:[#allocation8 + $0x148] ss:$16 sps:$4 sm:$0xff]   ;;  %v9439_v19 = vld [vmem:[#allocation8 + $0x164] ss:$16 sps:$4 sm:$0xff]  }
 0x282   :  { %3874 = vmatmul.mubr.bf16.vlgmr.msra.gmra.mrb[12].mxu0 %v10562_v28  ;;  %3960 = vmatmul.mubr.bf16.vlgmr.msra.gmra.mrb[12].mxu1 %v10562_v28  ;;  %v9394_v28 = vld [vmem:[#allocation8 + $0x6c] ss:$16 sps:$4 sm:$0xff]  }
 0x283   :  { %7369 = vmatpush1.bf16.msra.mxu0 %v9371_v14  ;;  %7400 = vmatprep.mubr.bf16.mxu0 %v10694_v62  ;;  %v9445_v14 = vld [vmem:[#allocation8 + $0x184] ss:$16 sps:$4 sm:$0xff]  }
 0x284   :  { %7713 = vmatpush1.bf16.msra.mxu1 %v9374_v53  ;;  %7744 = vmatprep.mubr.bf16.mxu1 %v10694_v62  ;;  %v9395_v62 = vld [vmem:[#allocation8 + $0x80] ss:$16 sps:$4 sm:$0xff]   ;;  %v9446_v53 = vld [vmem:[#allocation8 + $0x188] ss:$16 sps:$4 sm:$0xff]  }
 0x285   :  { %7370 = vmatprep.subr.bf16.mxu0 %v9379_v24  ;;  %7714 = vmatprep.subr.bf16.mxu1 %v9382_v59  ;;  %v9451_v24 = vld [vmem:[#allocation8 + $0x1a4] ss:$16 sps:$4 sm:$0xff]   ;;  %v9454_v59 = vld [vmem:[#allocation8 + $0x1ac] ss:$16 sps:$4 sm:$0xff]  }
 0x287   :  { %7371 = vmatpush1.bf16.msra.mxu0 %v9377_v60  ;;  %v9449_v60 = vld [vmem:[#allocation8 + $0x1a0] ss:$16 sps:$4 sm:$0xff]  }
 0x288   :  { %7715 = vmatpush1.bf16.msra.mxu1 %v9380_v12  ;;  %7372 = vmatprep.subr.bf16.mxu0 %v9385_v27  ;;  %v9452_v12 = vld [vmem:[#allocation8 + $0x1a8] ss:$16 sps:$4 sm:$0xff]   ;;  %v9457_v27 = vld [vmem:[#allocation8 + $0x1c4] ss:$16 sps:$4 sm:$0xff]  }
 0x289   :  { %7716 = vmatprep.subr.bf16.mxu1 %v9388_v10  ;;  %v9460_v10 = vld [vmem:[#allocation8 + $0x1cc] ss:$16 sps:$4 sm:$0xff]  }
 0x28b   :  { %7373 = vmatpush1.bf16.msra.mxu0 %v9383_v32  ;;  %v9455_v32 = vld [vmem:[#allocation8 + $0x1c0] ss:$16 sps:$4 sm:$0xff]  }
 0x28c   :  { %7717 = vmatpush1.bf16.msra.mxu1 %v9386_v34  ;;  %7374 = vmatprep.subr.bf16.mxu0 %v9391_v45  ;;  %v9458_v34 = vld [vmem:[#allocation8 + $0x1c8] ss:$16 sps:$4 sm:$0xff]   ;;  %v9463_v45 = vld [vmem:[#allocation8 + $0x1e4] ss:$16 sps:$4 sm:$0xff]  }
 0x28d   :  { %7718 = vmatprep.subr.bf16.mxu1 %v9394_v28  ;;  %v9466_v28 = vld [vmem:[#allocation8 + $0x1ec] ss:$16 sps:$4 sm:$0xff]  }
 0x28f   :  { %7375 = vmatpush1.bf16.msra.mxu0 %v9389_v35  ;;  %v9461_v35 = vld [vmem:[#allocation8 + $0x1e0] ss:$16 sps:$4 sm:$0xff]  }
 0x290   :  { %7719 = vmatpush1.bf16.msra.mxu1 %v9392_v15  ;;  %7376 = vmatprep.subr.bf16.mxu0 %v9397_v37  ;;  %v9464_v15 = vld [vmem:[#allocation8 + $0x1e8] ss:$16 sps:$4 sm:$0xff]   ;;  %v9469_v37 = vld [vmem:[#allocation8 + $0x204] ss:$16 sps:$4 sm:$0xff]  }
 0x291   :  { %7720 = vmatprep.subr.bf16.mxu1 %v9400_v38  ;;  %v9472_v38 = vld [vmem:[#allocation8 + $0x20c] ss:$16 sps:$4 sm:$0xff]  }
 0x293   :  { %7377 = vmatpush1.bf16.msra.mxu0 %v9395_v62  ;;  %v9467_v62 = vld [vmem:[#allocation8 + $0x200] ss:$16 sps:$4 sm:$0xff]  }
 0x294   :  { %7721 = vmatpush1.bf16.msra.mxu1 %v9398_v39  ;;  %7378 = vmatprep.subr.bf16.mxu0 %v9403_v50  ;;  %v9470_v39 = vld [vmem:[#allocation8 + $0x208] ss:$16 sps:$4 sm:$0xff]   ;;  %v9475_v50 = vld [vmem:[#allocation8 + $0x224] ss:$16 sps:$4 sm:$0xff]  }
 0x295   :  { %7722 = vmatprep.subr.bf16.mxu1 %v9406_v63  ;;  %v9478_v63 = vld [vmem:[#allocation8 + $0x22c] ss:$16 sps:$4 sm:$0xff]  }
 0x297   :  { %7379 = vmatpush1.bf16.msra.mxu0 %v9401_v40  ;;  %v9473_v40 = vld [vmem:[#allocation8 + $0x220] ss:$16 sps:$4 sm:$0xff]  }
 0x298   :  { %7723 = vmatpush1.bf16.msra.mxu1 %v9404_v41  ;;  %7380 = vmatprep.subr.bf16.mxu0 %v9409_v42  ;;  %v9476_v41 = vld [vmem:[#allocation8 + $0x228] ss:$16 sps:$4 sm:$0xff]   ;;  %v9481_v42 = vld [vmem:[#allocation8 + $0x244] ss:$16 sps:$4 sm:$0xff]  }
 0x299   :  { %7724 = vmatprep.subr.bf16.mxu1 %v9412_v44  ;;  %v9484_v44 = vld [vmem:[#allocation8 + $0x24c] ss:$16 sps:$4 sm:$0xff]  }
 0x29b   :  { %7381 = vmatpush1.bf16.msra.mxu0 %v9407_v58  ;;  %v9479_v58 = vld [vmem:[#allocation8 + $0x240] ss:$16 sps:$4 sm:$0xff]  }
 0x29c   :  { %7725 = vmatpush1.bf16.msra.mxu1 %v9410_v46  ;;  %7382 = vmatprep.subr.bf16.mxu0 %v9415_v47  ;;  %v9482_v46 = vld [vmem:[#allocation8 + $0x248] ss:$16 sps:$4 sm:$0xff]   ;;  %v9487_v47 = vld [vmem:[#allocation8 + $0x264] ss:$16 sps:$4 sm:$0xff]  }
 0x29d   :  { %7726 = vmatprep.subr.bf16.mxu1 %v9418_v48  ;;  %v9485_v48 = vld [vmem:[#allocation8 + $0x260] ss:$16 sps:$4 sm:$0xff]  }
 0x29f   :  { %7383 = vmatpush1.bf16.msra.mxu0 %v9413_v49  ;;  %v9488_v49 = vld [vmem:[#allocation8 + $0x268] ss:$16 sps:$4 sm:$0xff]  }
 0x2a0   :  { %7727 = vmatpush1.bf16.msra.mxu1 %v9416_v52  ;;  %7384 = vmatprep.subr.bf16.mxu0 %v9421_v54  ;;  %v9493_v52 = vld [vmem:[#allocation8 + $0x284] ss:$16 sps:$4 sm:$0xff]   ;;  %v9496_v54 = vld [vmem:[#allocation8 + $0x28c] ss:$16 sps:$4 sm:$0xff]  }
 0x2a1   :  { %7728 = vmatprep.subr.bf16.mxu1 %v9424_v56  ;;  %v10810_v56 = vld [vmem:[#allocation7 + $0x8] sm:$0xff] }
 0x2a3   :  { %7385 = vmatpush1.bf16.msra.mxu0 %v9419_v57  ;;  %v9494_v57 = vld [vmem:[#allocation8 + $0x288] ss:$16 sps:$4 sm:$0xff]  }
 0x2a4   :  { %7729 = vmatpush1.bf16.msra.mxu1 %v9422_v61  ;;  %7386 = vmatprep.subr.bf16.mxu0 %v9427_v11  ;;  %v9499_v61 = vld [vmem:[#allocation8 + $0x2a4] ss:$16 sps:$4 sm:$0xff]   ;;  %v9502_v11 = vld [vmem:[#allocation8 + $0x2ac] ss:$16 sps:$4 sm:$0xff]  }
 0x2a5   :  { %7730 = vmatprep.subr.bf16.mxu1 %v9430_v0  ;;  %v677_v0 = vrot.slane %v10810_v56, %v10583_v23 }
 0x2a7   :  { %7387 = vmatpush1.bf16.msra.mxu0 %v9425_v4  ;;  %v685_v4 = vrot.slane %v10810_v56, %v10586_v30 }
 0x2a8   :  { %7731 = vmatpush1.bf16.msra.mxu1 %v9428_v2  ;;  %7388 = vmatprep.subr.bf16.mxu0 %v9433_v55  ;;  %v681_v2 = vrot.slane %v10810_v56, %v10589_v31  ;;  %v9497_v55 = vld [vmem:[#allocation8 + $0x2a0] ss:$16 sps:$4 sm:$0xff]  }
 0x2a9   :  { %7732 = vmatprep.subr.bf16.mxu1 %v9436_v1  ;;  %v689_v1 = vrot.slane %v10810_v56, %v10592_v33 }
 0x2ab   :  { %7389 = vmatpush1.bf16.msra.mxu0 %v9431_v6  ;;  %v9500_v6 = vld [vmem:[#allocation8 + $0x2a8] ss:$16 sps:$4 sm:$0xff]  }
 0x2ac   :  { %7733 = vmatpush1.bf16.msra.mxu1 %v9434_v25  ;;  %7390 = vmatprep.subr.bf16.mxu0 %v9439_v19  ;;  %v9505_v25 = vld [vmem:[#allocation8 + $0x2c4] ss:$16 sps:$4 sm:$0xff]  }
 0x2ad   :  { %7734 = vmatprep.subr.bf16.mxu1 %v9442_v51  ;;  %v9508_v51 = vld [vmem:[#allocation8 + $0x2cc] ss:$16 sps:$4 sm:$0xff]  }
 0x2af   :  { %7391 = vmatpush1.bf16.msra.mxu0 %v9437_v3 }
 0x2b0   :  { %7735 = vmatpush1.bf16.msra.mxu1 %v9440_v13  ;;  %7392 = vmatprep.subr.bf16.mxu0 %v9445_v14 }
 0x2b1   :  { %7736 = vmatprep.subr.bf16.mxu1 %v9448_v20  ;;  %v9503_v20 = vld [vmem:[#allocation8 + $0x2c0] ss:$16 sps:$4 sm:$0xff]  }
 0x2b3   :  { %7393 = vmatpush1.bf16.msra.mxu0 %v9443_v22 }
 0x2b4   :  { %7737 = vmatpush1.bf16.msra.mxu1 %v9446_v53  ;;  %7394 = vmatprep.subr.bf16.mxu0 %v9451_v24 }
 0x2b5   :  { %7738 = vmatprep.subr.bf16.mxu1 %v9454_v59 }
 0x2b7   :  { %7395 = vmatpush1.bf16.msra.mxu0 %v9449_v60  ;;  %v9506_v60 = vld [vmem:[#allocation8 + $0x2c8] ss:$16 sps:$4 sm:$0xff]  }
 0x2b8   :  { %7739 = vmatpush1.bf16.msra.mxu1 %v9452_v12  ;;  %7396 = vmatprep.subr.bf16.mxu0 %v9457_v27  ;;  %v9511_v12 = vld [vmem:[#allocation8 + $0x2e4] ss:$16 sps:$4 sm:$0xff]  }
 0x2b9   :  { %7740 = vmatprep.subr.bf16.mxu1 %v9460_v10 }
 0x2bb   :  { %7397 = vmatpush1.bf16.msra.mxu0 %v9455_v32 }
 0x2bc   :  { %7741 = vmatpush1.bf16.msra.mxu1 %v9458_v34  ;;  %7398 = vmatprep.subr.bf16.mxu0 %v9463_v45 }
 0x2bd   :  { %7742 = vmatprep.subr.bf16.mxu1 %v9466_v28  ;;  %v9514_v28 = vld [vmem:[#allocation8 + $0x2ec] ss:$16 sps:$4 sm:$0xff]  }
 0x2bf   :  { %7399 = vmatpush1.bf16.msra.mxu0 %v9461_v35 }
 0x2c0   :  { %7743 = vmatpush1.bf16.msra.mxu1 %v9464_v15  ;;  %7411 = vmatprep.subr.bf16.mxu0 %v9469_v37 }
 0x2c1   :  { %7755 = vmatprep.subr.bf16.mxu1 %v9472_v38 }
 0x2c2   :  { %7401 = vmatmul.mubr.bf16.vlgmr.msra.gmra.mrb[16].mxu0 %v10686_v26 }
 0x2c3   :  { %7745 = vmatmul.mubr.bf16.vlgmr.msra.gmra.mrb[16].mxu1 %v10686_v26  ;;  %7412 = vmatpush1.bf16.msra.mxu0 %v9467_v62  ;;  %v9490_v26 = vld [vmem:[#allocation8 + $0x26c] ss:$16 sps:$4 sm:$0xff]  }
 0x2c4   :  { %7443 = vmatprep.mubr.bf16.mxu0 %v10696_v7  ;;  %7756 = vmatpush1.bf16.msra.mxu1 %v9470_v39 }
 0x2c5   :  { %7787 = vmatprep.mubr.bf16.mxu1 %v10696_v7  ;;  %7413 = vmatprep.subr.bf16.mxu0 %v9475_v50  ;;  %v9491_v7 = vld [vmem:[#allocation8 + $0x280] ss:$16 sps:$4 sm:$0xff]  }
 0x2c6   :  { %7757 = vmatprep.subr.bf16.mxu1 %v9478_v63 }
 0x2c7   :  { %7414 = vmatpush1.bf16.msra.mxu0 %v9473_v40 }
 0x2c8   :  { %7758 = vmatpush1.bf16.msra.mxu1 %v9476_v41  ;;  %7415 = vmatprep.subr.bf16.mxu0 %v9481_v42 }
 0x2c9   :  { %7759 = vmatprep.subr.bf16.mxu1 %v9484_v44 }
 0x2cb   :  { %7416 = vmatpush1.bf16.msra.mxu0 %v9479_v58  ;;  %v9509_v58 = vld [vmem:[#allocation8 + $0x2e0] ss:$16 sps:$4 sm:$0xff]  }
 0x2cc   :  { %7760 = vmatpush1.bf16.msra.mxu1 %v9482_v46  ;;  %7417 = vmatprep.subr.bf16.mxu0 %v9487_v47 }
 0x2cd   :  { %7761 = vmatprep.subr.bf16.mxu1 %v9490_v26  ;;  %v9512_v26 = vld [vmem:[#allocation8 + $0x2e8] ss:$16 sps:$4 sm:$0xff]  }
 0x2cf   :  { %7418 = vmatpush1.bf16.msra.mxu0 %v9485_v48  ;;  %v9517_v48 = vld [vmem:[#allocation8 + $0x304] ss:$16 sps:$4 sm:$0xff]  }
 0x2d0   :  { %7762 = vmatpush1.bf16.msra.mxu1 %v9488_v49  ;;  %7419 = vmatprep.subr.bf16.mxu0 %v9493_v52 }
 0x2d1   :  { %7763 = vmatprep.subr.bf16.mxu1 %v9496_v54 }
 0x2d3   :  { %7420 = vmatpush1.bf16.msra.mxu0 %v9491_v7  ;;  %v9520_v7 = vld [vmem:[#allocation8 + $0x30c] ss:$16 sps:$4 sm:$0xff]  }
 0x2d4   :  { %7764 = vmatpush1.bf16.msra.mxu1 %v9494_v57  ;;  %7421 = vmatprep.subr.bf16.mxu0 %v9499_v61 }
 0x2d5   :  { %v3703_v19 = vpop.f32.mrb[8].mxu0  ;;  %7765 = vmatprep.subr.bf16.mxu1 %v9502_v11  ;;  %v3789_v13 = vpop.f32.mrb[8].mxu1 }
 0x2d6   :  { %v10820_v3 = vadd.f32 %v3703_v19, %v677_v0  ;;  %v3705_v14 = vpop.f32.mrb[9].mxu0  ;;  %v10822_v22 = vadd.f32 %v3789_v13, %v685_v4  ;;  %v3791_v24 = vpop.f32.mrb[9].mxu1  ;;  %v9518_v19 = vld [vmem:[#allocation8 + $0x308] ss:$16 sps:$4 sm:$0xff]  }
 0x2d7   :  { %v10824_v53 = vadd.f32 %v3705_v14, %v681_v2  ;;  %v3707_v59 = vpop.f32.mrb[10].mxu0  ;;  %7422 = vmatpush1.bf16.msra.mxu0 %v9497_v55  ;;  %v10827_v10 = vadd.f32 %v3791_v24, %v689_v1  ;;  %v3793_v34 = vpop.f32.mrb[10].mxu1  ;;  %v9526_v24 = vld [vmem:[#allocation8 + $0x32c] ss:$16 sps:$4 sm:$0xff]  }
 0x2d8   :  { %v4010_v27 = vmul.f32 0.044715, %v10820_v3  ;;  %v10829_v32 = vadd.f32 %v3707_v59, %v677_v0  ;;  %7766 = vmatpush1.bf16.msra.mxu1 %v9500_v6  ;;  %v3709_v45 = vpop.f32.mrb[11].mxu0  ;;  %7423 = vmatprep.subr.bf16.mxu0 %v9505_v25  ;;  %v4012_v35 = vmul.f32 0.044715, %v10822_v22  ;;  %v10833_v37 = vadd.f32 %v3793_v34, %v685_v4  ;;  %v3795_v62 = vpop.f32.mrb[11].mxu1 }
 0x2d9   :  { %v4011_v15 = vmul.f32 0.044715, %v10824_v53  ;;  %v10835_v38 = vadd.f32 %v3709_v45, %v681_v2  ;;  %7767 = vmatprep.subr.bf16.mxu1 %v9508_v51  ;;  %v10839_v63 = vadd.f32 %v3795_v62, %v689_v1  ;;  %v4013_v52 = vmul.f32 0.044715, %v10827_v10  ;;  %v9515_v1 = vld [vmem:[#allocation8 + $0x300] ss:$16 sps:$4 sm:$0xff]  }
 0x2da   :  { %v4042_v39 = vmul.f32 %v10820_v3, %v4010_v27  ;;  %v4026_v50 = vmul.f32 0.044715, %v10829_v32  ;;  %v4044_v40 = vmul.f32 %v10822_v22, %v4012_v35  ;;  %v4028_v42 = vmul.f32 0.044715, %v10833_v37  ;;  %v9523_v51 = vld [vmem:[#allocation8 + $0x324] ss:$16 sps:$4 sm:$0xff]  }
 0x2db   :  { %v4043_v41 = vmul.f32 %v10824_v53, %v4011_v15  ;;  %v4027_v44 = vmul.f32 0.044715, %v10835_v38  ;;  %7424 = vmatpush1.bf16.msra.mxu0 %v9503_v20  ;;  %v4029_v0 = vmul.f32 0.044715, %v10839_v63  ;;  %v4045_v14 = vmul.f32 %v10827_v10, %v4013_v52  ;;  %v9521_v45 = vld [vmem:[#allocation8 + $0x320] ss:$16 sps:$4 sm:$0xff]  }
 0x2dc   :  { %v4074_v46 = vmul.f32 %v10820_v3, %v4042_v39  ;;  %v4058_v47 = vmul.f32 %v10829_v32, %v4026_v50  ;;  %7768 = vmatpush1.bf16.msra.mxu1 %v9506_v60  ;;  %7425 = vmatprep.subr.bf16.mxu0 %v9511_v12  ;;  %v4076_v49 = vmul.f32 %v10822_v22, %v4044_v40  ;;  %v9529_v35 = vld [vmem:[#allocation8 + $0x344] ss:$16 sps:$4 sm:$0xff]   ;;  %v9532_v15 = vld [vmem:[#allocation8 + $0x34c] ss:$16 sps:$4 sm:$0xff]   ;;  %v9527_v40 = vld [vmem:[#allocation8 + $0x340] ss:$16 sps:$4 sm:$0xff]  }
 0x2dd   :  { %v4060_v54 = vmul.f32 %v10833_v37, %v4028_v42  ;;  %7769 = vmatprep.subr.bf16.mxu1 %v9514_v28  ;;  %v4075_v61 = vmul.f32 %v10824_v53, %v4043_v41  ;;  %v4059_v55 = vmul.f32 %v10835_v38, %v4027_v44  ;;  %v4061_v60 = vmul.f32 %v10839_v63, %v4029_v0  ;;  %v9524_v28 = vld [vmem:[#allocation8 + $0x328] ss:$16 sps:$4 sm:$0xff]   ;;  %v9535_v44 = vld [vmem:[#allocation8 + $0x364] ss:$16 sps:$4 sm:$0xff]  }
 0x2de   :  { %v4106_v57 = vadd.f32 %v10820_v3, %v4074_v46  ;;  %v4090_v11 = vmul.f32 %v10829_v32, %v4058_v47  ;;  %v4108_v4 = vadd.f32 %v10822_v22, %v4076_v49  ;;  %v4077_v62 = vmul.f32 %v10827_v10, %v4045_v14  ;;  %v9530_v42 = vld [vmem:[#allocation8 + $0x348] ss:$16 sps:$4 sm:$0xff]  }
 0x2df   :  { %v4092_v2 = vmul.f32 %v10833_v37, %v4060_v54  ;;  %7426 = vmatpush1.bf16.msra.mxu0 %v9509_v58  ;;  %v4107_v12 = vadd.f32 %v10824_v53, %v4075_v61  ;;  %v4091_v34 = vmul.f32 %v10835_v38, %v4059_v55  ;;  %v4093_v39 = vmul.f32 %v10839_v63, %v4061_v60  ;;  %v9538_v58 = vld [vmem:[#allocation8 + $0x36c] ss:$16 sps:$4 sm:$0xff]   ;;  %v9536_v52 = vld [vmem:[#allocation8 + $0x368] ss:$16 sps:$4 sm:$0xff]   ;;  %v9541_v54 = vld [vmem:[#allocation8 + $0x384] ss:$16 sps:$4 sm:$0xff]  }
 0x2e0   :  { %v4138_v6 = vmul.f32 0.7978846, %v4106_v57  ;;  %v4122_v25 = vadd.f32 %v10829_v32, %v4090_v11  ;;  %7770 = vmatpush1.bf16.msra.mxu1 %v9512_v26  ;;  %7427 = vmatprep.subr.bf16.mxu0 %v9517_v48  ;;  %v4140_v13 = vmul.f32 0.7978846, %v4108_v4  ;;  %v4109_v46 = vadd.f32 %v10827_v10, %v4077_v62  ;;  %v9533_v26 = vld [vmem:[#allocation8 + $0x360] ss:$16 sps:$4 sm:$0xff]  }
 0x2e1   :  { %v4124_v20 = vadd.f32 %v10833_v37, %v4092_v2  ;;  %7771 = vmatprep.subr.bf16.mxu1 %v9520_v7  ;;  %v4139_v50 = vmul.f32 0.7978846, %v4107_v12  ;;  %v4123_v41 = vadd.f32 %v10835_v38, %v4091_v34  ;;  %v4125_v47 = vadd.f32 %v10839_v63, %v4093_v39  ;;  %v9544_v57 = vld [vmem:[#allocation8 + $0x38c] ss:$16 sps:$4 sm:$0xff]   ;;  %v9539_v55 = vld [vmem:[#allocation8 + $0x380] ss:$16 sps:$4 sm:$0xff]  }
 0x2e2   :  { %10171 = vtanh.f32 %v4138_v6  ;;  %v4154_v59 = vmul.f32 0.7978846, %v4122_v25  ;;  %v4141_v0 = vmul.f32 0.7978846, %v4109_v46  ;;  %v3994_v6 = vmul.f32 0.5, %v10829_v32 }
 0x2e3   :  { %10173 = vtanh.f32 %v4140_v13  ;;  %v4156_v27 = vmul.f32 0.7978846, %v4124_v20  ;;  %7428 = vmatpush1.bf16.msra.mxu0 %v9515_v1  ;;  %v4155_v48 = vmul.f32 0.7978846, %v4123_v41  ;;  %v4157_v4 = vmul.f32 0.7978846, %v4125_v47 }
 0x2e4   :  { %10175 = vtanh.f32 %v4154_v59  ;;  %7772 = vmatpush1.bf16.msra.mxu1 %v9518_v19  ;;  %7429 = vmatprep.subr.bf16.mxu0 %v9523_v51  ;;  %v3978_v1 = vmul.f32 0.5, %v10820_v3  ;;  %v9542_v51 = vld [vmem:[#allocation8 + $0x388] ss:$16 sps:$4 sm:$0xff]   ;;  %v9547_v13 = vld [vmem:[#allocation8 + $0x3a4] ss:$16 sps:$4 sm:$0xff]   ;;  %v3980_v14 = vmul.f32 0.5, %v10822_v22 }
 0x2e5   :  { %10177 = vtanh.f32 %v4156_v27  ;;  %7773 = vmatprep.subr.bf16.mxu1 %v9526_v24  ;;  %v3996_v20 = vmul.f32 0.5, %v10833_v37  ;;  %v9550_v24 = vld [vmem:[#allocation8 + $0x3ac] ss:$16 sps:$4 sm:$0xff]   ;;  %v9545_v3 = vld [vmem:[#allocation8 + $0x3a0] ss:$16 sps:$4 sm:$0xff]  }
 0x2e6   :  { %10179 = vtanh.f32 %v4139_v50  ;;  %v9556_v22 = vld [vmem:[#allocation8 + $0x3cc] ss:$16 sps:$4 sm:$0xff]   ;;  %v9551_v62 = vld [vmem:[#allocation8 + $0x3c0] ss:$16 sps:$4 sm:$0xff]   ;;  %v9554_v50 = vld [vmem:[#allocation8 + $0x3c8] ss:$16 sps:$4 sm:$0xff]  }
 0x2e7   :  { %7430 = vmatpush1.bf16.msra.mxu0 %v9521_v45  ;;  %10181 = vtanh.f32 %v4155_v48  ;;  %v9562_v41 = vld [vmem:[#allocation8 + $0x3ec] ss:$16 sps:$4 sm:$0xff]  }
 0x2e8   :  { %7774 = vmatpush1.bf16.msra.mxu1 %v9524_v28  ;;  %7431 = vmatprep.subr.bf16.mxu0 %v9529_v35  ;;  %10183 = vtanh.f32 %v4141_v0  ;;  %v9548_v28 = vld [vmem:[#allocation8 + $0x3a8] ss:$16 sps:$4 sm:$0xff]   ;;  %v9553_v35 = vld [vmem:[#allocation8 + $0x3c4] ss:$16 sps:$4 sm:$0xff]   ;;  %v9563_v0 = vld [vmem:[#allocation8 + $0x400] ss:$16 sps:$4 sm:$0xff]  }
 0x2e9   :  { %7775 = vmatprep.subr.bf16.mxu1 %v9532_v15  ;;  %10185 = vtanh.f32 %v4157_v4 }
 0x2eb   :  { %7432 = vmatpush1.bf16.msra.mxu0 %v9527_v40  ;;  %v9559_v40 = vld [vmem:[#allocation8 + $0x3e4] ss:$16 sps:$4 sm:$0xff]  }
 0x2ec   :  { %v10172_v49 = vpop.eup %10171  ;;  %7776 = vmatpush1.bf16.msra.mxu1 %v9530_v42  ;;  %7433 = vmatprep.subr.bf16.mxu0 %v9535_v44  ;;  %v3979_v42 = vmul.f32 0.5, %v10824_v53  ;;  %v3995_v44 = vmul.f32 0.5, %v10835_v38  ;;  %v3981_v53 = vmul.f32 0.5, %v10827_v10  ;;  %v3997_v38 = vmul.f32 0.5, %v10839_v63  ;;  %v9569_v10 = vld [vmem:[#allocation8 + $0x420] ss:$16 sps:$4 sm:$0xff]  }
 0x2ed   :  { %v10174_v7 = vpop.eup %10173  ;;  %7777 = vmatprep.subr.bf16.mxu1 %v9538_v58  ;;  %v4202_v61 = vadd.f32 1.0, %v10172_v49  ;;  %v9572_v63 = vld [vmem:[#allocation8 + $0x428] ss:$16 sps:$4 sm:$0xff]  }
 0x2ee   :  { %v10176_v11 = vpop.eup %10175  ;;  %v4204_v19 = vadd.f32 1.0, %v10174_v7  ;;  %v9565_v7 = vld [vmem:[#allocation8 + $0x404] ss:$16 sps:$4 sm:$0xff]  }
 0x2ef   :  { %v10178_v2 = vpop.eup %10177  ;;  %7434 = vmatpush1.bf16.msra.mxu0 %v9533_v26  ;;  %v4218_v25 = vadd.f32 1.0, %v10176_v11  ;;  %v4234_v59 = vmul.f32 %v4202_v61, %v3978_v1  ;;  %v9557_v26 = vld [vmem:[#allocation8 + $0x3e0] ss:$16 sps:$4 sm:$0xff]   ;;  %v9571_v1 = vld [vmem:[#allocation8 + $0x424] ss:$16 sps:$4 sm:$0xff]  }
 0x2f0   :  { %7778 = vmatpush1.bf16.msra.mxu1 %v9536_v52  ;;  %7435 = vmatprep.subr.bf16.mxu0 %v9541_v54  ;;  %v4220_v12 = vadd.f32 1.0, %v10178_v2  ;;  %v4236_v27 = vmul.f32 %v4204_v19, %v3980_v14  ;;  %v10180_v45 = vpop.eup %10179  ;;  %v9560_v54 = vld [vmem:[#allocation8 + $0x3e8] ss:$16 sps:$4 sm:$0xff]   ;;  %v9577_v19 = vld [vmem:[#allocation8 + $0x444] ss:$16 sps:$4 sm:$0xff]  }
 0x2f1   :  { %7779 = vmatprep.subr.bf16.mxu1 %v9544_v57  ;;  %v4250_v60 = vmul.f32 %v4218_v25, %v3994_v6  ;;  %v10182_v15 = vpop.eup %10181  ;;  %v4203_v39 = vadd.f32 1.0, %v10180_v45  ;;  %v9568_v57 = vld [vmem:[#allocation8 + $0x40c] ss:$16 sps:$4 sm:$0xff]   ;;  %v9578_v14 = vld [vmem:[#allocation8 + $0x448] ss:$16 sps:$4 sm:$0xff]  }
 0x2f2   :  { %v4252_v34 = vmul.f32 %v4220_v12, %v3996_v20  ;;  %v4219_v58 = vadd.f32 1.0, %v10182_v15  ;;  %v10184_v46 = vpop.eup %10183  ;;  %v9574_v25 = vld [vmem:[#allocation8 + $0x42c] ss:$16 sps:$4 sm:$0xff]   ;;  %v9583_v20 = vld [vmem:[#allocation8 + $0x464] ss:$16 sps:$4 sm:$0xff]  }
 0x2f3   :  { %7436 = vmatpush1.bf16.msra.mxu0 %v9539_v55  ;;  %v10872_v32 = vpack.c.bf16 %v4250_v60, %v4234_v59  ;;  %v10186_v47 = vpop.eup %10185  ;;  %v4235_v48 = vmul.f32 %v4203_v39, %v3979_v42  ;;  %v4205_v52 = vadd.f32 1.0, %v10184_v46  ;;  %v9566_v55 = vld [vmem:[#allocation8 + $0x408] ss:$16 sps:$4 sm:$0xff]   ;;  %v9589_v60 = vld [vmem:[#allocation8 + $0x484] ss:$16 sps:$4 sm:$0xff]  }
 0x2f4   :  { %7780 = vmatpush1.bf16.msra.mxu1 %v9542_v51  ;;  %7437 = vmatprep.subr.bf16.mxu0 %v9547_v13  ;;  %v10874_v37 = vpack.c.bf16 %v4252_v34, %v4236_v27  ;;  %v4251_v49 = vmul.f32 %v4219_v58, %v3995_v44  ;;  %v4221_v11 = vadd.f32 1.0, %v10186_v47  ;;  %v9580_v51 = vld [vmem:[#allocation8 + $0x44c] ss:$16 sps:$4 sm:$0xff]   ;;  %v9575_v13 = vld [vmem:[#allocation8 + $0x440] ss:$16 sps:$4 sm:$0xff]  }
 0x2f5   :  { %7781 = vmatprep.subr.bf16.mxu1 %v9550_v24  ;;  %v4237_v4 = vmul.f32 %v4205_v52, %v3981_v53  ;;  %v9581_v24 = vld [vmem:[#allocation8 + $0x460] ss:$16 sps:$4 sm:$0xff]   ;;  %v9584_v59 = vld [vmem:[#allocation8 + $0x468] ss:$16 sps:$4 sm:$0xff]   ;;  %v9592_v12 = vld [vmem:[#allocation8 + $0x48c] ss:$16 sps:$4 sm:$0xff]  }
 0x2f6   :  { %v10878_v61 = vpack.c.bf16 %v4251_v49, %v4235_v48  ;;  %v4253_v2 = vmul.f32 %v4221_v11, %v3997_v38  ;;  %v9595_v27 = vld [vmem:[#allocation8 + $0x4a4] ss:$16 sps:$4 sm:$0xff]   ;;  %v9598_v34 = vld [vmem:[#allocation8 + $0x4ac] ss:$16 sps:$4 sm:$0xff]   ;;  %v9593_v45 = vld [vmem:[#allocation8 + $0x4a0] ss:$16 sps:$4 sm:$0xff]  }
 0x2f7   :  { %7438 = vmatpush1.bf16.msra.mxu0 %v9545_v3  ;;  %v9590_v3 = vld [vmem:[#allocation8 + $0x488] ss:$16 sps:$4 sm:$0xff]   ;;  %v9599_v15 = vld [vmem:[#allocation8 + $0x4c0] ss:$16 sps:$4 sm:$0xff]   ;;  %v9607_v39 = vld [vmem:[#allocation8 + $0x4e4] ss:$16 sps:$4 sm:$0xff]  }
 0x2f8   :  { %7782 = vmatpush1.bf16.msra.mxu1 %v9548_v28  ;;  %7439 = vmatprep.subr.bf16.mxu0 %v9553_v35  ;;  %v10882_v6 = vpack.c.bf16 %v4253_v2, %v4237_v4  ;;  %v9596_v28 = vld [vmem:[#allocation8 + $0x4a8] ss:$16 sps:$4 sm:$0xff]   ;;  %v9601_v35 = vld [vmem:[#allocation8 + $0x4c4] ss:$16 sps:$4 sm:$0xff]   ;;  %v9616_v44 = vld [vmem:[#allocation8 + $0x50c] ss:$16 sps:$4 sm:$0xff]  }
 0x2f9   :  { %7783 = vmatprep.subr.bf16.mxu1 %v9556_v22  ;;  %v9604_v22 = vld [vmem:[#allocation8 + $0x4cc] ss:$16 sps:$4 sm:$0xff]   ;;  %v9613_v42 = vld [vmem:[#allocation8 + $0x504] ss:$16 sps:$4 sm:$0xff]   ;;  %v9611_v58 = vld [vmem:[#allocation8 + $0x500] ss:$16 sps:$4 sm:$0xff]  }
 0x2fa   :  { %v9614_v46 = vld [vmem:[#allocation8 + $0x508] ss:$16 sps:$4 sm:$0xff]   ;;  %v9619_v47 = vld [vmem:[#allocation8 + $0x524] ss:$16 sps:$4 sm:$0xff]   ;;  %v9617_v48 = vld [vmem:[#allocation8 + $0x520] ss:$16 sps:$4 sm:$0xff]  }
 0x2fb   :  { %7440 = vmatpush1.bf16.msra.mxu0 %v9551_v62  ;;  %v9602_v62 = vld [vmem:[#allocation8 + $0x4c8] ss:$16 sps:$4 sm:$0xff]   ;;  %v9625_v52 = vld [vmem:[#allocation8 + $0x544] ss:$16 sps:$4 sm:$0xff]   ;;  %v9634_v38 = vld [vmem:[#allocation8 + $0x56c] ss:$16 sps:$4 sm:$0xff]  }
 0x2fc   :  { %7784 = vmatpush1.bf16.msra.mxu1 %v9554_v50  ;;  %7441 = vmatprep.subr.bf16.mxu0 %v9559_v40  ;;  %v9610_v50 = vld [vmem:[#allocation8 + $0x4ec] ss:$16 sps:$4 sm:$0xff]   ;;  %v9605_v40 = vld [vmem:[#allocation8 + $0x4e0] ss:$16 sps:$4 sm:$0xff]   ;;  %v9620_v49 = vld [vmem:[#allocation8 + $0x528] ss:$16 sps:$4 sm:$0xff]  }
 0x2fd   :  { %7785 = vmatprep.subr.bf16.mxu1 %v9562_v41  ;;  %v9608_v41 = vld [vmem:[#allocation8 + $0x4e8] ss:$16 sps:$4 sm:$0xff]   ;;  %v9631_v53 = vld [vmem:[#allocation8 + $0x564] ss:$16 sps:$4 sm:$0xff]   ;;  %v9629_v11 = vld [vmem:[#allocation8 + $0x560] ss:$16 sps:$4 sm:$0xff]  }
 0x2fe   :  { %v9637_v4 = vld [vmem:[#allocation8 + $0x584] ss:$16 sps:$4 sm:$0xff]   ;;  %v9640_v2 = vld [vmem:[#allocation8 + $0x58c] ss:$16 sps:$4 sm:$0xff]  }
 0x2ff   :  { %7442 = vmatpush1.bf16.msra.mxu0 %v9557_v26  ;;  %v9622_v26 = vld [vmem:[#allocation8 + $0x52c] ss:$16 sps:$4 sm:$0xff]  }
 0x300   :  { %7786 = vmatpush1.bf16.msra.mxu1 %v9560_v54  ;;  %7454 = vmatprep.subr.bf16.mxu0 %v9565_v7  ;;  %v9628_v54 = vld [vmem:[#allocation8 + $0x54c] ss:$16 sps:$4 sm:$0xff]   ;;  %v9623_v7 = vld [vmem:[#allocation8 + $0x540] ss:$16 sps:$4 sm:$0xff]  }
 0x301   :  { %7798 = vmatprep.subr.bf16.mxu1 %v9568_v57  ;;  %v9626_v57 = vld [vmem:[#allocation8 + $0x548] ss:$16 sps:$4 sm:$0xff]  }
 0x302   :  { %7444 = vmatmul.mubr.bf16.vlgmr.msra.gmra.mrb[16].mxu0 %v10688_v29 }
 0x303   :  { %7788 = vmatmul.mubr.bf16.vlgmr.msra.gmra.mrb[16].mxu1 %v10688_v29  ;;  %7455 = vmatpush1.bf16.msra.mxu0 %v9563_v0  ;;  %v9586_v29 = vld [vmem:[#allocation8 + $0x46c] ss:$16 sps:$4 sm:$0xff]   ;;  %v9632_v0 = vld [vmem:[#allocation8 + $0x568] ss:$16 sps:$4 sm:$0xff]  }
 0x304   :  { %7486 = vmatprep.mubr.bf16.mxu0 %v10796_v9  ;;  %7799 = vmatpush1.bf16.msra.mxu1 %v9566_v55  ;;  %v9635_v55 = vld [vmem:[#allocation8 + $0x580] ss:$16 sps:$4 sm:$0xff]  }
 0x305   :  { %7830 = vmatprep.mubr.bf16.mxu1 %v10796_v9  ;;  %7456 = vmatprep.subr.bf16.mxu0 %v9571_v1  ;;  %v9587_v9 = vld [vmem:[#allocation8 + $0x480] ss:$16 sps:$4 sm:$0xff]   ;;  %v9638_v1 = vld [vmem:[#allocation8 + $0x588] ss:$16 sps:$4 sm:$0xff]  }
 0x306   :  { %7800 = vmatprep.subr.bf16.mxu1 %v9574_v25  ;;  %v9643_v25 = vld [vmem:[#allocation8 + $0x5a4] ss:$16 sps:$4 sm:$0xff]  }
 0x307   :  { %7457 = vmatpush1.bf16.msra.mxu0 %v9569_v10  ;;  %v9646_v10 = vld [vmem:[#allocation8 + $0x5ac] ss:$16 sps:$4 sm:$0xff]  }
 0x308   :  { %7801 = vmatpush1.bf16.msra.mxu1 %v9572_v63  ;;  %7458 = vmatprep.subr.bf16.mxu0 %v9577_v19  ;;  %v9641_v63 = vld [vmem:[#allocation8 + $0x5a0] ss:$16 sps:$4 sm:$0xff]   ;;  %v9644_v19 = vld [vmem:[#allocation8 + $0x5a8] ss:$16 sps:$4 sm:$0xff]  }
 0x309   :  { %7802 = vmatprep.subr.bf16.mxu1 %v9580_v51  ;;  %v9649_v51 = vld [vmem:[#allocation8 + $0x5c4] ss:$16 sps:$4 sm:$0xff]  }
 0x30b   :  { %7459 = vmatpush1.bf16.msra.mxu0 %v9575_v13  ;;  %v9652_v13 = vld [vmem:[#allocation8 + $0x5cc] ss:$16 sps:$4 sm:$0xff]  }
 0x30c   :  { %7803 = vmatpush1.bf16.msra.mxu1 %v9578_v14  ;;  %7460 = vmatprep.subr.bf16.mxu0 %v9583_v20  ;;  %v9647_v14 = vld [vmem:[#allocation8 + $0x5c0] ss:$16 sps:$4 sm:$0xff]   ;;  %v9650_v20 = vld [vmem:[#allocation8 + $0x5c8] ss:$16 sps:$4 sm:$0xff]  }
 0x30d   :  { %7804 = vmatprep.subr.bf16.mxu1 %v9586_v29  ;;  %v9655_v29 = vld [vmem:[#allocation8 + $0x5e4] ss:$16 sps:$4 sm:$0xff]  }
 0x30f   :  { %7461 = vmatpush1.bf16.msra.mxu0 %v9581_v24  ;;  %v9658_v24 = vld [vmem:[#allocation8 + $0x5ec] ss:$16 sps:$4 sm:$0xff]  }
 0x310   :  { %7805 = vmatpush1.bf16.msra.mxu1 %v9584_v59  ;;  %7462 = vmatprep.subr.bf16.mxu0 %v9589_v60  ;;  %v9653_v59 = vld [vmem:[#allocation8 + $0x5e0] ss:$16 sps:$4 sm:$0xff]   ;;  %v9656_v60 = vld [vmem:[#allocation8 + $0x5e8] ss:$16 sps:$4 sm:$0xff]  }
 0x311   :  { %7806 = vmatprep.subr.bf16.mxu1 %v9592_v12  ;;  %v9661_v12 = vld [vmem:[#allocation8 + $0x604] ss:$16 sps:$4 sm:$0xff]  }
 0x313   :  { %7463 = vmatpush1.bf16.msra.mxu0 %v9587_v9  ;;  %v9664_v9 = vld [vmem:[#allocation8 + $0x60c] ss:$16 sps:$4 sm:$0xff]  }
 0x314   :  { %7807 = vmatpush1.bf16.msra.mxu1 %v9590_v3  ;;  %7464 = vmatprep.subr.bf16.mxu0 %v9595_v27  ;;  %v9659_v3 = vld [vmem:[#allocation8 + $0x600] ss:$16 sps:$4 sm:$0xff]   ;;  %v9662_v27 = vld [vmem:[#allocation8 + $0x608] ss:$16 sps:$4 sm:$0xff]  }
 0x315   :  { %7808 = vmatprep.subr.bf16.mxu1 %v9598_v34  ;;  %v9667_v34 = vld [vmem:[#allocation8 + $0x624] ss:$16 sps:$4 sm:$0xff]  }
 0x317   :  { %7465 = vmatpush1.bf16.msra.mxu0 %v9593_v45  ;;  %v9670_v45 = vld [vmem:[#allocation8 + $0x62c] ss:$16 sps:$4 sm:$0xff]  }
 0x318   :  { %7809 = vmatpush1.bf16.msra.mxu1 %v9596_v28  ;;  %7466 = vmatprep.subr.bf16.mxu0 %v9601_v35  ;;  %v9665_v28 = vld [vmem:[#allocation8 + $0x620] ss:$16 sps:$4 sm:$0xff]   ;;  %v9668_v35 = vld [vmem:[#allocation8 + $0x628] ss:$16 sps:$4 sm:$0xff]  }
 0x319   :  { %7810 = vmatprep.subr.bf16.mxu1 %v9604_v22  ;;  %v9673_v22 = vld [vmem:[#allocation8 + $0x644] ss:$16 sps:$4 sm:$0xff]  }
 0x31b   :  { %7467 = vmatpush1.bf16.msra.mxu0 %v9599_v15  ;;  %v9676_v15 = vld [vmem:[#allocation8 + $0x64c] ss:$16 sps:$4 sm:$0xff]  }
 0x31c   :  { %7811 = vmatpush1.bf16.msra.mxu1 %v9602_v62  ;;  %7468 = vmatprep.subr.bf16.mxu0 %v9607_v39  ;;  %v9671_v62 = vld [vmem:[#allocation8 + $0x640] ss:$16 sps:$4 sm:$0xff]   ;;  %v9674_v39 = vld [vmem:[#allocation8 + $0x648] ss:$16 sps:$4 sm:$0xff]  }
 0x31d   :  { %7812 = vmatprep.subr.bf16.mxu1 %v9610_v50  ;;  %v9679_v50 = vld [vmem:[#allocation8 + $0x664] ss:$16 sps:$4 sm:$0xff]  }
 0x31f   :  { %7469 = vmatpush1.bf16.msra.mxu0 %v9605_v40  ;;  %v9677_v40 = vld [vmem:[#allocation8 + $0x660] ss:$16 sps:$4 sm:$0xff]  }
 0x320   :  { %7813 = vmatpush1.bf16.msra.mxu1 %v9608_v41  ;;  %7470 = vmatprep.subr.bf16.mxu0 %v9613_v42  ;;  %v9680_v41 = vld [vmem:[#allocation8 + $0x668] ss:$16 sps:$4 sm:$0xff]   ;;  %v9685_v42 = vld [vmem:[#allocation8 + $0x684] ss:$16 sps:$4 sm:$0xff]  }
 0x321   :  { %7814 = vmatprep.subr.bf16.mxu1 %v9616_v44  ;;  %v9688_v44 = vld [vmem:[#allocation8 + $0x68c] ss:$16 sps:$4 sm:$0xff]  }
 0x323   :  { %7471 = vmatpush1.bf16.msra.mxu0 %v9611_v58  ;;  %v9686_v58 = vld [vmem:[#allocation8 + $0x688] ss:$16 sps:$4 sm:$0xff]  }
 0x324   :  { %7815 = vmatpush1.bf16.msra.mxu1 %v9614_v46  ;;  %7472 = vmatprep.subr.bf16.mxu0 %v9619_v47  ;;  %v9691_v46 = vld [vmem:[#allocation8 + $0x6a4] ss:$16 sps:$4 sm:$0xff]   ;;  %v9694_v47 = vld [vmem:[#allocation8 + $0x6ac] ss:$16 sps:$4 sm:$0xff]  }
 0x325   :  { %7816 = vmatprep.subr.bf16.mxu1 %v9622_v26  ;;  %v693_v26 = vrot.slane %v10810_v56, %v660_v8  ;;  %v9700_v8 = vld [vmem:[#allocation8 + $0x6cc] ss:$16 sps:$4 sm:$0xff]  }
 0x327   :  { %7473 = vmatpush1.bf16.msra.mxu0 %v9617_v48  ;;  %v701_v48 = vrot.slane %v10810_v56, %v668_v17 }
 0x328   :  { %7817 = vmatpush1.bf16.msra.mxu1 %v9620_v49  ;;  %7474 = vmatprep.subr.bf16.mxu0 %v9625_v52  ;;  %v697_v49 = vrot.slane %v10810_v56, %v664_v18  ;;  %v9689_v52 = vld [vmem:[#allocation8 + $0x6a0] ss:$16 sps:$4 sm:$0xff]  }
 0x329   :  { %7818 = vmatprep.subr.bf16.mxu1 %v9628_v54  ;;  %v705_v54 = vrot.slane %v10810_v56, %v672_v21  ;;  %v9703_v21 = vld [vmem:[#allocation8 + $0x6e4] ss:$16 sps:$4 sm:$0xff]  }
 0x32b   :  { %7475 = vmatpush1.bf16.msra.mxu0 %v9623_v7  ;;  %v9692_v7 = vld [vmem:[#allocation8 + $0x6a8] ss:$16 sps:$4 sm:$0xff]  }
 0x32c   :  { %7819 = vmatpush1.bf16.msra.mxu1 %v9626_v57  ;;  %7476 = vmatprep.subr.bf16.mxu0 %v9631_v53  ;;  %v9697_v57 = vld [vmem:[#allocation8 + $0x6c4] ss:$16 sps:$4 sm:$0xff]  }
 0x32d   :  { %7820 = vmatprep.subr.bf16.mxu1 %v9634_v38 }
 0x32f   :  { %7477 = vmatpush1.bf16.msra.mxu0 %v9629_v11 }
 0x330   :  { %7821 = vmatpush1.bf16.msra.mxu1 %v9632_v0  ;;  %7478 = vmatprep.subr.bf16.mxu0 %v9637_v4  ;;  %v9695_v0 = vld [vmem:[#allocation8 + $0x6c0] ss:$16 sps:$4 sm:$0xff]  }
 0x331   :  { %7822 = vmatprep.subr.bf16.mxu1 %v9640_v2 }
 0x333   :  { %7479 = vmatpush1.bf16.msra.mxu0 %v9635_v55 }
 0x334   :  { %7823 = vmatpush1.bf16.msra.mxu1 %v9638_v1  ;;  %7480 = vmatprep.subr.bf16.mxu0 %v9643_v25 }
 0x335   :  { %7824 = vmatprep.subr.bf16.mxu1 %v9646_v10 }
 0x337   :  { %7481 = vmatpush1.bf16.msra.mxu0 %v9641_v63 }
 0x338   :  { %7825 = vmatpush1.bf16.msra.mxu1 %v9644_v19  ;;  %7482 = vmatprep.subr.bf16.mxu0 %v9649_v51  ;;  %v9706_v19 = vld [vmem:[#allocation8 + $0x6ec] ss:$16 sps:$4 sm:$0xff]  }
 0x339   :  { %7826 = vmatprep.subr.bf16.mxu1 %v9652_v13 }
 0x33b   :  { %7483 = vmatpush1.bf16.msra.mxu0 %v9647_v14 }
 0x33c   :  { %7827 = vmatpush1.bf16.msra.mxu1 %v9650_v20  ;;  %7484 = vmatprep.subr.bf16.mxu0 %v9655_v29 }
 0x33d   :  { %7828 = vmatprep.subr.bf16.mxu1 %v9658_v24 }
 0x33f   :  { %7485 = vmatpush1.bf16.msra.mxu0 %v9653_v59 }
 0x340   :  { %7829 = vmatpush1.bf16.msra.mxu1 %v9656_v60  ;;  %7497 = vmatprep.subr.bf16.mxu0 %v9661_v12 }
 0x341   :  { %7841 = vmatprep.subr.bf16.mxu1 %v9664_v9 }
 0x342   :  { %7487 = vmatmul.mubr.bf16.vlgmr.msra.gmra.mrb[16].mxu0 %v10790_v36 }
 0x343   :  { %7831 = vmatmul.mubr.bf16.vlgmr.msra.gmra.mrb[16].mxu1 %v10790_v36  ;;  %7498 = vmatpush1.bf16.msra.mxu0 %v9659_v3  ;;  %v9682_v36 = vld [vmem:[#allocation8 + $0x66c] ss:$16 sps:$4 sm:$0xff]  }
 0x344   :  { %7529 = vmatprep.mubr.bf16.mxu0 %v10800_v5  ;;  %7842 = vmatpush1.bf16.msra.mxu1 %v9662_v27 }
 0x345   :  { %7873 = vmatprep.mubr.bf16.mxu1 %v10800_v5  ;;  %7499 = vmatprep.subr.bf16.mxu0 %v9667_v34  ;;  %v9683_v5 = vld [vmem:[#allocation8 + $0x680] ss:$16 sps:$4 sm:$0xff]  }
 0x346   :  { %7843 = vmatprep.subr.bf16.mxu1 %v9670_v45  ;;  %v9701_v45 = vld [vmem:[#allocation8 + $0x6e0] ss:$16 sps:$4 sm:$0xff]  }
 0x347   :  { %7500 = vmatpush1.bf16.msra.mxu0 %v9665_v28 }
 0x348   :  { %7844 = vmatpush1.bf16.msra.mxu1 %v9668_v35  ;;  %7501 = vmatprep.subr.bf16.mxu0 %v9673_v22 }
 0x349   :  { %7845 = vmatprep.subr.bf16.mxu1 %v9676_v15 }
 0x34b   :  { %7502 = vmatpush1.bf16.msra.mxu0 %v9671_v62  ;;  %v9704_v62 = vld [vmem:[#allocation8 + $0x6e8] ss:$16 sps:$4 sm:$0xff]  }
 0x34c   :  { %7846 = vmatpush1.bf16.msra.mxu1 %v9674_v39  ;;  %7503 = vmatprep.subr.bf16.mxu0 %v9679_v50  ;;  %v9709_v39 = vld [vmem:[#allocation8 + $0x704] ss:$16 sps:$4 sm:$0xff]  }
 0x34d   :  { %7847 = vmatprep.subr.bf16.mxu1 %v9682_v36 }
 0x34f   :  { %7504 = vmatpush1.bf16.msra.mxu0 %v9677_v40 }
 0x350   :  { %7848 = vmatpush1.bf16.msra.mxu1 %v9680_v41  ;;  %7505 = vmatprep.subr.bf16.mxu0 %v9685_v42  ;;  %v9712_v42 = vld [vmem:[#allocation8 + $0x70c] ss:$16 sps:$4 sm:$0xff]  }
 0x351   :  { %7849 = vmatprep.subr.bf16.mxu1 %v9688_v44 }
 0x353   :  { %7506 = vmatpush1.bf16.msra.mxu0 %v9683_v5 }
 0x354   :  { %7850 = vmatpush1.bf16.msra.mxu1 %v9686_v58  ;;  %7507 = vmatprep.subr.bf16.mxu0 %v9691_v46 }
 0x355   :  { %v3875_v53 = vpop.f32.mrb[12].mxu0  ;;  %7851 = vmatprep.subr.bf16.mxu1 %v9694_v47  ;;  %v3961_v11 = vpop.f32.mrb[12].mxu1 }
 0x356   :  { %v10904_v38 = vadd.f32 %v3875_v53, %v693_v26  ;;  %v3877_v17 = vpop.f32.mrb[13].mxu0  ;;  %v10906_v4 = vadd.f32 %v3961_v11, %v701_v48  ;;  %v3963_v2 = vpop.f32.mrb[13].mxu1  ;;  %v9715_v53 = vld [vmem:[#allocation8 + $0x724] ss:$16 sps:$4 sm:$0xff]  }
 0x357   :  { %v10908_v18 = vadd.f32 %v3877_v17, %v697_v49  ;;  %v3879_v55 = vpop.f32.mrb[14].mxu0  ;;  %7508 = vmatpush1.bf16.msra.mxu0 %v9689_v52  ;;  %v10911_v1 = vadd.f32 %v3963_v2, %v705_v54  ;;  %v3965_v10 = vpop.f32.mrb[14].mxu1 }
 0x358   :  { %v4014_v56 = vmul.f32 0.044715, %v10904_v38  ;;  %v10913_v25 = vadd.f32 %v3879_v55, %v693_v26  ;;  %7852 = vmatpush1.bf16.msra.mxu1 %v9692_v7  ;;  %v3881_v63 = vpop.f32.mrb[15].mxu0  ;;  %7509 = vmatprep.subr.bf16.mxu0 %v9697_v57  ;;  %v4016_v51 = vmul.f32 0.044715, %v10906_v4  ;;  %v10917_v14 = vadd.f32 %v3965_v10, %v701_v48  ;;  %v3967_v29 = vpop.f32.mrb[15].mxu1 }
 0x359   :  { %v4015_v13 = vmul.f32 0.044715, %v10908_v18  ;;  %v10919_v20 = vadd.f32 %v3881_v63, %v697_v49  ;;  %7853 = vmatprep.subr.bf16.mxu1 %v9700_v8  ;;  %v4017_v59 = vmul.f32 0.044715, %v10911_v1  ;;  %v10924_v12 = vadd.f32 %v3967_v29, %v705_v54  ;;  %v9707_v49 = vld [vmem:[#allocation8 + $0x700] ss:$16 sps:$4 sm:$0xff]  }
 0x35a   :  { %v4046_v24 = vmul.f32 %v10904_v38, %v4014_v56  ;;  %v4030_v60 = vmul.f32 0.044715, %v10913_v25  ;;  %v4048_v9 = vmul.f32 %v10906_v4, %v4016_v51  ;;  %v4032_v27 = vmul.f32 0.044715, %v10917_v14  ;;  %v9710_v57 = vld [vmem:[#allocation8 + $0x708] ss:$16 sps:$4 sm:$0xff]  }
 0x35b   :  { %v4047_v3 = vmul.f32 %v10908_v18, %v4015_v13  ;;  %v4031_v34 = vmul.f32 0.044715, %v10919_v20  ;;  %7510 = vmatpush1.bf16.msra.mxu0 %v9695_v0  ;;  %v4049_v35 = vmul.f32 %v10911_v1, %v4017_v59  ;;  %v4033_v15 = vmul.f32 0.044715, %v10924_v12  ;;  %v9718_v0 = vld [vmem:[#allocation8 + $0x72c] ss:$16 sps:$4 sm:$0xff]  }
 0x35c   :  { %v4078_v28 = vmul.f32 %v10904_v38, %v4046_v24  ;;  %v4062_v22 = vmul.f32 %v10913_v25, %v4030_v60  ;;  %7854 = vmatpush1.bf16.msra.mxu1 %v9698_v16  ;;  %7511 = vmatprep.subr.bf16.mxu0 %v9703_v21  ;;  %v4080_v50 = vmul.f32 %v10906_v4, %v4048_v9  ;;  %v9713_v10 = vld [vmem:[#allocation8 + $0x720] ss:$16 sps:$4 sm:$0xff]   ;;  %v9721_v51 = vld [vmem:[#allocation8 + $0x744] ss:$16 sps:$4 sm:$0xff]   ;;  %v9724_v29 = vld [vmem:[#allocation8 + $0x74c] ss:$16 sps:$4 sm:$0xff]  }
 0x35d   :  { %v4079_v36 = vmul.f32 %v10908_v18, %v4047_v3  ;;  %v4064_v40 = vmul.f32 %v10917_v14, %v4032_v27  ;;  %v4063_v41 = vmul.f32 %v10919_v20, %v4031_v34  ;;  %7855 = vmatprep.subr.bf16.mxu1 %v9706_v19  ;;  %v4081_v5 = vmul.f32 %v10911_v1, %v4049_v35  ;;  %v9716_v19 = vld [vmem:[#allocation8 + $0x728] ss:$16 sps:$4 sm:$0xff]   ;;  %v9719_v60 = vld [vmem:[#allocation8 + $0x740] ss:$16 sps:$4 sm:$0xff]   ;;  %v9727_v3 = vld [vmem:[#allocation8 + $0x764] ss:$16 sps:$4 sm:$0xff]  }
 0x35e   :  { %v4110_v44 = vadd.f32 %v10904_v38, %v4078_v28  ;;  %v4094_v58 = vmul.f32 %v10913_v25, %v4062_v22  ;;  %v4065_v46 = vmul.f32 %v10924_v12, %v4033_v15  ;;  %v4112_v47 = vadd.f32 %v10906_v4, %v4080_v50  ;;  %v9722_v9 = vld [vmem:[#allocation8 + $0x748] ss:$16 sps:$4 sm:$0xff]   ;;  %v9730_v27 = vld [vmem:[#allocation8 + $0x76c] ss:$16 sps:$4 sm:$0xff]   ;;  %v9725_v34 = vld [vmem:[#allocation8 + $0x760] ss:$16 sps:$4 sm:$0xff]  }
 0x35f   :  { %v4096_v26 = vmul.f32 %v10917_v14, %v4064_v40  ;;  %v4095_v48 = vmul.f32 %v10919_v20, %v4063_v41  ;;  %7512 = vmatpush1.bf16.msra.mxu0 %v9701_v45  ;;  %v4111_v8 = vadd.f32 %v10908_v18, %v4079_v36  ;;  %v4113_v21 = vadd.f32 %v10911_v1, %v4081_v5  ;;  %v9728_v28 = vld [vmem:[#allocation8 + $0x768] ss:$16 sps:$4 sm:$0xff]   ;;  %v9733_v35 = vld [vmem:[#allocation8 + $0x784] ss:$16 sps:$4 sm:$0xff]   ;;  %v9736_v15 = vld [vmem:[#allocation8 + $0x78c] ss:$16 sps:$4 sm:$0xff]  }
 0x360   :  { %v4142_v52 = vmul.f32 0.7978846, %v4110_v44  ;;  %v4126_v54 = vadd.f32 %v10913_v25, %v4094_v58  ;;  %v4097_v7 = vmul.f32 %v10924_v12, %v4065_v46  ;;  %7856 = vmatpush1.bf16.msra.mxu1 %v9704_v62  ;;  %7513 = vmatprep.subr.bf16.mxu0 %v9709_v39  ;;  %v4144_v11 = vmul.f32 0.7978846, %v4112_v47  ;;  %v9731_v36 = vld [vmem:[#allocation8 + $0x780] ss:$16 sps:$4 sm:$0xff]  }
 0x361   :  { %v4128_v17 = vadd.f32 %v10917_v14, %v4096_v26  ;;  %7857 = vmatprep.subr.bf16.mxu1 %v9712_v42  ;;  %v4127_v2 = vadd.f32 %v10919_v20, %v4095_v48  ;;  %v4143_v16 = vmul.f32 0.7978846, %v4111_v8  ;;  %v4145_v24 = vmul.f32 0.7978846, %v4113_v21  ;;  %v9734_v58 = vld [vmem:[#allocation8 + $0x788] ss:$16 sps:$4 sm:$0xff]  }
 0x362   :  { %10187 = vtanh.f32 %v4142_v52  ;;  %v4158_v55 = vmul.f32 0.7978846, %v4126_v54  ;;  %v4129_v13 = vadd.f32 %v10924_v12, %v4097_v7  ;;  %v3982_v40 = vmul.f32 0.5, %v10904_v38  ;;  %v9739_v46 = vld [vmem:[#allocation8 + $0x7a4] ss:$16 sps:$4 sm:$0xff]  }
 0x363   :  { %10189 = vtanh.f32 %v4144_v11  ;;  %v4160_v56 = vmul.f32 0.7978846, %v4128_v17  ;;  %7514 = vmatpush1.bf16.msra.mxu0 %v9707_v49  ;;  %v4159_v63 = vmul.f32 0.7978846, %v4127_v2  ;;  %v3998_v41 = vmul.f32 0.5, %v10913_v25 }
 0x364   :  { %10191 = vtanh.f32 %v4158_v55  ;;  %7858 = vmatpush1.bf16.msra.mxu1 %v9710_v57  ;;  %7515 = vmatprep.subr.bf16.mxu0 %v9715_v53  ;;  %v4161_v59 = vmul.f32 0.7978846, %v4129_v13  ;;  %v3984_v47 = vmul.f32 0.5, %v10906_v4  ;;  %v4000_v26 = vmul.f32 0.5, %v10917_v14  ;;  %v9742_v49 = vld [vmem:[#allocation8 + $0x7ac] ss:$16 sps:$4 sm:$0xff]  }
 0x365   :  { %10193 = vtanh.f32 %v4160_v56  ;;  %7859 = vmatprep.subr.bf16.mxu1 %v9718_v0  ;;  %v3983_v25 = vmul.f32 0.5, %v10908_v18  ;;  %v3999_v53 = vmul.f32 0.5, %v10919_v20  ;;  %v9737_v17 = vld [vmem:[#allocation8 + $0x7a0] ss:$16 sps:$4 sm:$0xff]   ;;  %v9740_v55 = vld [vmem:[#allocation8 + $0x7a8] ss:$16 sps:$4 sm:$0xff]  }
 0x366   :  { %10195 = vtanh.f32 %v4143_v16  ;;  %v9745_v16 = vld [vmem:[#allocation8 + $0x7c4] ss:$16 sps:$4 sm:$0xff]   ;;  %v3985_v18 = vmul.f32 0.5, %v10911_v1  ;;  %v4001_v20 = vmul.f32 0.5, %v10924_v12  ;;  %v9743_v13 = vld [vmem:[#allocation8 + $0x7c0] ss:$16 sps:$4 sm:$0xff]  }
 0x367   :  { %7516 = vmatpush1.bf16.msra.mxu0 %v9713_v10  ;;  %10197 = vtanh.f32 %v4159_v63  ;;  %v9748_v10 = vld [vmem:[#allocation8 + $0x7cc] ss:$16 sps:$4 sm:$0xff]   ;;  %v9749_v1 = vld [vmem:[#allocation8 + $0x7e0] ss:$16 sps:$4 sm:$0xff]   ;;  %v9752_v12 = vld [vmem:[#allocation8 + $0x7e8] ss:$16 sps:$4 sm:$0xff]  }
 0x368   :  { %7860 = vmatpush1.bf16.msra.mxu1 %v9716_v19  ;;  %7517 = vmatprep.subr.bf16.mxu0 %v9721_v51  ;;  %10199 = vtanh.f32 %v4145_v24 }
 0x369   :  { %7861 = vmatprep.subr.bf16.mxu1 %v9724_v29  ;;  %10201 = vtanh.f32 %v4161_v59  ;;  %v9746_v59 = vld [vmem:[#allocation8 + $0x7c8] ss:$16 sps:$4 sm:$0xff]  }
 0x36b   :  { %7518 = vmatpush1.bf16.msra.mxu0 %v9719_v60  ;;  %v9751_v60 = vld [vmem:[#allocation8 + $0x7e4] ss:$16 sps:$4 sm:$0xff]  }
 0x36c   :  { %v10188_v45 = vpop.eup %10187  ;;  %7862 = vmatpush1.bf16.msra.mxu1 %v9722_v9  ;;  %7519 = vmatprep.subr.bf16.mxu0 %v9727_v3  ;;  %v9754_v9 = vld [vmem:[#allocation8 + $0x7ec] ss:$16 sps:$4 sm:$0xff]  }
 0x36d   :  { %v10190_v22 = vpop.eup %10189  ;;  %7863 = vmatprep.subr.bf16.mxu1 %v9730_v27  ;;  %v4206_v62 = vadd.f32 1.0, %v10188_v45  ;;  %v9757_v27 = vld [vmem:[#allocation8 + $0x804] ss:$16 sps:$4 sm:$0xff]   ;;  %v9755_v45 = vld [vmem:[#allocation8 + $0x800] ss:$16 sps:$4 sm:$0xff]  }
 0x36e   :  { %v10192_v39 = vpop.eup %10191  ;;  %v4208_v44 = vadd.f32 1.0, %v10190_v22  ;;  %v9766_v22 = vld [vmem:[#allocation8 + $0x82c] ss:$16 sps:$4 sm:$0xff]  }
 0x36f   :  { %v10194_v50 = vpop.eup %10193  ;;  %7520 = vmatpush1.bf16.msra.mxu0 %v9725_v34  ;;  %v4222_v42 = vadd.f32 1.0, %v10192_v39  ;;  %v4238_v54 = vmul.f32 %v4206_v62, %v3982_v40  ;;  %v9760_v34 = vld [vmem:[#allocation8 + $0x80c] ss:$16 sps:$4 sm:$0xff]   ;;  %v9764_v62 = vld [vmem:[#allocation8 + $0x828] ss:$16 sps:$4 sm:$0xff]  }
 0x370   :  { %v10196_v5 = vpop.eup %10195  ;;  %7864 = vmatpush1.bf16.msra.mxu1 %v9728_v28  ;;  %7521 = vmatprep.subr.bf16.mxu0 %v9733_v35  ;;  %v4224_v38 = vadd.f32 1.0, %v10194_v50  ;;  %v4240_v14 = vmul.f32 %v4208_v44, %v3984_v47  ;;  %v9758_v28 = vld [vmem:[#allocation8 + $0x808] ss:$16 sps:$4 sm:$0xff]   ;;  %v9763_v35 = vld [vmem:[#allocation8 + $0x824] ss:$16 sps:$4 sm:$0xff]  }
 0x371   :  { %v10198_v48 = vpop.eup %10197  ;;  %7865 = vmatprep.subr.bf16.mxu1 %v9736_v15  ;;  %v4207_v52 = vadd.f32 1.0, %v10196_v5  ;;  %v4254_v7 = vmul.f32 %v4222_v42, %v3998_v41  ;;  %v9761_v15 = vld [vmem:[#allocation8 + $0x820] ss:$16 sps:$4 sm:$0xff]   ;;  %v9769_v39 = vld [vmem:[#allocation8 + $0x844] ss:$16 sps:$4 sm:$0xff]  }
 0x372   :  { %v10200_v57 = vpop.eup %10199  ;;  %v4223_v8 = vadd.f32 1.0, %v10198_v48  ;;  %v4256_v2 = vmul.f32 %v4224_v38, %v4000_v26  ;;  %v9772_v50 = vld [vmem:[#allocation8 + $0x84c] ss:$16 sps:$4 sm:$0xff]   ;;  %v9770_v40 = vld [vmem:[#allocation8 + $0x848] ss:$16 sps:$4 sm:$0xff]  }
 0x373   :  { %v10202_v11 = vpop.eup %10201  ;;  %7522 = vmatpush1.bf16.msra.mxu0 %v9731_v36  ;;  %v10958_v0 = vpack.c.bf16 %v4254_v7, %v4238_v54  ;;  %v4209_v4 = vadd.f32 1.0, %v10200_v57  ;;  %v4239_v21 = vmul.f32 %v4207_v52, %v3983_v25  ;;  %v9767_v36 = vld [vmem:[#allocation8 + $0x840] ss:$16 sps:$4 sm:$0xff]   ;;  %v9775_v41 = vld [vmem:[#allocation8 + $0x864] ss:$16 sps:$4 sm:$0xff]  }
 0x374   :  { %7866 = vmatpush1.bf16.msra.mxu1 %v9734_v58  ;;  %7523 = vmatprep.subr.bf16.mxu0 %v9739_v46  ;;  %v4255_v56 = vmul.f32 %v4223_v8, %v3999_v53  ;;  %v4225_v63 = vadd.f32 1.0, %v10202_v11  ;;  %v10962_v19 = vpack.c.bf16 %v4256_v2, %v4240_v14  ;;  %v9773_v42 = vld [vmem:[#allocation8 + $0x860] ss:$16 sps:$4 sm:$0xff]   ;;  %v9776_v44 = vld [vmem:[#allocation8 + $0x868] ss:$16 sps:$4 sm:$0xff]  }
 0x375   :  { %7867 = vmatprep.subr.bf16.mxu1 %v9742_v49  ;;  %v4241_v29 = vmul.f32 %v4209_v4, %v3985_v18  ;;  %v9781_v5 = vld [vmem:[#allocation8 + $0x884] ss:$16 sps:$4 sm:$0xff]   ;;  %v9784_v58 = vld [vmem:[#allocation8 + $0x88c] ss:$16 sps:$4 sm:$0xff]   ;;  %v9782_v46 = vld [vmem:[#allocation8 + $0x888] ss:$16 sps:$4 sm:$0xff]  }
 0x376   :  { %v10964_v51 = vpack.c.bf16 %v4255_v56, %v4239_v21  ;;  %v4257_v24 = vmul.f32 %v4225_v63, %v4001_v20  ;;  %v9787_v47 = vld [vmem:[#allocation8 + $0x8a4] ss:$16 sps:$4 sm:$0xff]   ;;  %v9790_v26 = vld [vmem:[#allocation8 + $0x8ac] ss:$16 sps:$4 sm:$0xff]   ;;  %v9785_v48 = vld [vmem:[#allocation8 + $0x8a0] ss:$16 sps:$4 sm:$0xff]  }
 0x377   :  { %7524 = vmatpush1.bf16.msra.mxu0 %v9737_v17  ;;  %v9788_v49 = vld [vmem:[#allocation8 + $0x8a8] ss:$16 sps:$4 sm:$0xff]   ;;  %v9793_v52 = vld [vmem:[#allocation8 + $0x8c4] ss:$16 sps:$4 sm:$0xff]   ;;  %v9796_v54 = vld [vmem:[#allocation8 + $0x8cc] ss:$16 sps:$4 sm:$0xff]  }
 0x378   :  { %7868 = vmatpush1.bf16.msra.mxu1 %v9740_v55  ;;  %7525 = vmatprep.subr.bf16.mxu0 %v9745_v16  ;;  %v10966_v3 = vpack.c.bf16 %v4257_v24, %v4241_v29  ;;  %v9791_v7 = vld [vmem:[#allocation8 + $0x8c0] ss:$16 sps:$4 sm:$0xff]   ;;  %v9794_v38 = vld [vmem:[#allocation8 + $0x8c8] ss:$16 sps:$4 sm:$0xff]   ;;  %v9799_v57 = vld [vmem:[#allocation8 + $0x8e4] ss:$16 sps:$4 sm:$0xff]  }
 0x379   :  { %7869 = vmatprep.subr.bf16.mxu1 %v9748_v10  ;;  %v9802_v25 = vld [vmem:[#allocation8 + $0x8ec] ss:$16 sps:$4 sm:$0xff]   ;;  %v9797_v53 = vld [vmem:[#allocation8 + $0x8e0] ss:$16 sps:$4 sm:$0xff]   ;;  %v9800_v8 = vld [vmem:[#allocation8 + $0x8e8] ss:$16 sps:$4 sm:$0xff]  }
 0x37a   :  { %v9805_v11 = vld [vmem:[#allocation8 + $0x904] ss:$16 sps:$4 sm:$0xff]   ;;  %v9808_v17 = vld [vmem:[#allocation8 + $0x90c] ss:$16 sps:$4 sm:$0xff]   ;;  %v9803_v4 = vld [vmem:[#allocation8 + $0x900] ss:$16 sps:$4 sm:$0xff]  }
 0x37b   :  { %7526 = vmatpush1.bf16.msra.mxu0 %v9743_v13  ;;  %v9806_v14 = vld [vmem:[#allocation8 + $0x908] ss:$16 sps:$4 sm:$0xff]   ;;  %v9811_v2 = vld [vmem:[#allocation8 + $0x924] ss:$16 sps:$4 sm:$0xff]   ;;  %v9814_v55 = vld [vmem:[#allocation8 + $0x92c] ss:$16 sps:$4 sm:$0xff]  }
 0x37c   :  { %7870 = vmatpush1.bf16.msra.mxu1 %v9746_v59  ;;  %7527 = vmatprep.subr.bf16.mxu0 %v9751_v60  ;;  %v9809_v16 = vld [vmem:[#allocation8 + $0x920] ss:$16 sps:$4 sm:$0xff]   ;;  %v9812_v21 = vld [vmem:[#allocation8 + $0x928] ss:$16 sps:$4 sm:$0xff]   ;;  %v9817_v56 = vld [vmem:[#allocation8 + $0x944] ss:$16 sps:$4 sm:$0xff]  }
 0x37d   :  { %7871 = vmatprep.subr.bf16.mxu1 %v9754_v9  ;;  %v9820_v10 = vld [vmem:[#allocation8 + $0x94c] ss:$16 sps:$4 sm:$0xff]   ;;  %v9815_v18 = vld [vmem:[#allocation8 + $0x940] ss:$16 sps:$4 sm:$0xff]   ;;  %v9818_v20 = vld [vmem:[#allocation8 + $0x948] ss:$16 sps:$4 sm:$0xff]  }
 0x37e   :  { %v9823_v63 = vld [vmem:[#allocation8 + $0x964] ss:$16 sps:$4 sm:$0xff]   ;;  %v9826_v13 = vld [vmem:[#allocation8 + $0x96c] ss:$16 sps:$4 sm:$0xff]   ;;  %v9821_v29 = vld [vmem:[#allocation8 + $0x960] ss:$16 sps:$4 sm:$0xff]  }
 0x37f   :  { %7528 = vmatpush1.bf16.msra.mxu0 %v9749_v1  ;;  %v9824_v24 = vld [vmem:[#allocation8 + $0x968] ss:$16 sps:$4 sm:$0xff]   ;;  %v9829_v59 = vld [vmem:[#allocation8 + $0x984] ss:$16 sps:$4 sm:$0xff]   ;;  %v9832_v60 = vld [vmem:[#allocation8 + $0x98c] ss:$16 sps:$4 sm:$0xff]  }
 0x380   :  { %7872 = vmatpush1.bf16.msra.mxu1 %v9752_v12  ;;  %7540 = vmatprep.subr.bf16.mxu0 %v9757_v27  ;;  %v9827_v9 = vld [vmem:[#allocation8 + $0x980] ss:$16 sps:$4 sm:$0xff]   ;;  %v9830_v1 = vld [vmem:[#allocation8 + $0x988] ss:$16 sps:$4 sm:$0xff]   ;;  %v9835_v12 = vld [vmem:[#allocation8 + $0x9a4] ss:$16 sps:$4 sm:$0xff]  }
 0x381   :  { %7884 = vmatprep.subr.bf16.mxu1 %v9760_v34  ;;  %v9838_v27 = vld [vmem:[#allocation8 + $0x9ac] ss:$16 sps:$4 sm:$0xff]   ;;  %v9833_v34 = vld [vmem:[#allocation8 + $0x9a0] ss:$16 sps:$4 sm:$0xff]  }
 0x382   :  { %7530 = vmatmul.mubr.bf16.vlgmr.msra.gmra.mrb[16].mxu0 %v10792_v43 }
 0x383   :  { %7874 = vmatmul.mubr.bf16.vlgmr.msra.gmra.mrb[16].mxu1 %v10792_v43  ;;  %7541 = vmatpush1.bf16.msra.mxu0 %v9755_v45  ;;  %v9778_v43 = vld [vmem:[#allocation8 + $0x86c] ss:$16 sps:$4 sm:$0xff]   ;;  %v9836_v45 = vld [vmem:[#allocation8 + $0x9a8] ss:$16 sps:$4 sm:$0xff]  }
 0x384   :  { %7572 = vmatprep.mubr.bf16.mxu0 %v10878_v61  ;;  %7885 = vmatpush1.bf16.msra.mxu1 %v9758_v28  ;;  %v9841_v28 = vld [vmem:[#allocation8 + $0x9c4] ss:$16 sps:$4 sm:$0xff]  }
 0x385   :  { %7916 = vmatprep.mubr.bf16.mxu1 %v10878_v61  ;;  %7542 = vmatprep.subr.bf16.mxu0 %v9763_v35  ;;  %v9779_v61 = vld [vmem:[#allocation8 + $0x880] ss:$16 sps:$4 sm:$0xff]   ;;  %v9844_v35 = vld [vmem:[#allocation8 + $0x9cc] ss:$16 sps:$4 sm:$0xff]  }
 0x386   :  { %7886 = vmatprep.subr.bf16.mxu1 %v9766_v22  ;;  %v9839_v22 = vld [vmem:[#allocation8 + $0x9c0] ss:$16 sps:$4 sm:$0xff]  }
 0x387   :  { %7543 = vmatpush1.bf16.msra.mxu0 %v9761_v15  ;;  %v9842_v15 = vld [vmem:[#allocation8 + $0x9c8] ss:$16 sps:$4 sm:$0xff]  }
 0x388   :  { %7887 = vmatpush1.bf16.msra.mxu1 %v9764_v62  ;;  %7544 = vmatprep.subr.bf16.mxu0 %v9769_v39  ;;  %v9847_v62 = vld [vmem:[#allocation8 + $0x9e4] ss:$16 sps:$4 sm:$0xff]   ;;  %v9850_v39 = vld [vmem:[#allocation8 + $0x9ec] ss:$16 sps:$4 sm:$0xff]  }
 0x389   :  { %7888 = vmatprep.subr.bf16.mxu1 %v9772_v50  ;;  %v9845_v50 = vld [vmem:[#allocation8 + $0x9e0] ss:$16 sps:$4 sm:$0xff]  }
 0x38b   :  { %7545 = vmatpush1.bf16.msra.mxu0 %v9767_v36  ;;  %v9848_v36 = vld [vmem:[#allocation8 + $0x9e8] ss:$16 sps:$4 sm:$0xff]  }
 0x38c   :  { %7889 = vmatpush1.bf16.msra.mxu1 %v9770_v40  ;;  %7546 = vmatprep.subr.bf16.mxu0 %v9775_v41  ;;  %v9853_v40 = vld [vmem:[#allocation8 + $0xa04] ss:$16 sps:$4 sm:$0xff]   ;;  %v9856_v41 = vld [vmem:[#allocation8 + $0xa0c] ss:$16 sps:$4 sm:$0xff]  }
 0x38d   :  { %7890 = vmatprep.subr.bf16.mxu1 %v9778_v43  ;;  %v9851_v43 = vld [vmem:[#allocation8 + $0xa00] ss:$16 sps:$4 sm:$0xff]  }
 0x38f   :  { %7547 = vmatpush1.bf16.msra.mxu0 %v9773_v42  ;;  %v9854_v42 = vld [vmem:[#allocation8 + $0xa08] ss:$16 sps:$4 sm:$0xff]  }
 0x390   :  { %7891 = vmatpush1.bf16.msra.mxu1 %v9776_v44  ;;  %7548 = vmatprep.subr.bf16.mxu0 %v9781_v5  ;;  %v9859_v44 = vld [vmem:[#allocation8 + $0xa24] ss:$16 sps:$4 sm:$0xff]   ;;  %v9862_v5 = vld [vmem:[#allocation8 + $0xa2c] ss:$16 sps:$4 sm:$0xff]  }
 0x391   :  { %7892 = vmatprep.subr.bf16.mxu1 %v9784_v58  ;;  %v9857_v58 = vld [vmem:[#allocation8 + $0xa20] ss:$16 sps:$4 sm:$0xff]  }
 0x393   :  { %7549 = vmatpush1.bf16.msra.mxu0 %v9779_v61  ;;  %v9860_v61 = vld [vmem:[#allocation8 + $0xa28] ss:$16 sps:$4 sm:$0xff]  }
 0x394   :  { %7893 = vmatpush1.bf16.msra.mxu1 %v9782_v46  ;;  %7550 = vmatprep.subr.bf16.mxu0 %v9787_v47  ;;  %v9865_v46 = vld [vmem:[#allocation8 + $0xa44] ss:$16 sps:$4 sm:$0xff]   ;;  %v9868_v47 = vld [vmem:[#allocation8 + $0xa4c] ss:$16 sps:$4 sm:$0xff]  }
 0x395   :  { %7894 = vmatprep.subr.bf16.mxu1 %v9790_v26  ;;  %v9863_v26 = vld [vmem:[#allocation8 + $0xa40] ss:$16 sps:$4 sm:$0xff]  }
 0x397   :  { %7551 = vmatpush1.bf16.msra.mxu0 %v9785_v48  ;;  %v9866_v48 = vld [vmem:[#allocation8 + $0xa48] ss:$16 sps:$4 sm:$0xff]  }
 0x398   :  { %7895 = vmatpush1.bf16.msra.mxu1 %v9788_v49  ;;  %7552 = vmatprep.subr.bf16.mxu0 %v9793_v52  ;;  %v9871_v49 = vld [vmem:[#allocation8 + $0xa64] ss:$16 sps:$4 sm:$0xff]   ;;  %v9869_v52 = vld [vmem:[#allocation8 + $0xa60] ss:$16 sps:$4 sm:$0xff]  }
 0x399   :  { %7896 = vmatprep.subr.bf16.mxu1 %v9796_v54  ;;  %v9872_v54 = vld [vmem:[#allocation8 + $0xa68] ss:$16 sps:$4 sm:$0xff]  }
 0x39b   :  { %7553 = vmatpush1.bf16.msra.mxu0 %v9791_v7  ;;  %v9877_v7 = vld [vmem:[#allocation8 + $0xa84] ss:$16 sps:$4 sm:$0xff]  }
 0x39c   :  { %7897 = vmatpush1.bf16.msra.mxu1 %v9794_v38  ;;  %7554 = vmatprep.subr.bf16.mxu0 %v9799_v57  ;;  %v9880_v38 = vld [vmem:[#allocation8 + $0xa8c] ss:$16 sps:$4 sm:$0xff]   ;;  %v9878_v57 = vld [vmem:[#allocation8 + $0xa88] ss:$16 sps:$4 sm:$0xff]  }
 0x39d   :  { %7898 = vmatprep.subr.bf16.mxu1 %v9802_v25  ;;  %v9883_v25 = vld [vmem:[#allocation8 + $0xaa4] ss:$16 sps:$4 sm:$0xff]  }
 0x39f   :  { %7555 = vmatpush1.bf16.msra.mxu0 %v9797_v53  ;;  %v9886_v53 = vld [vmem:[#allocation8 + $0xaac] ss:$16 sps:$4 sm:$0xff]  }
 0x3a0   :  { %7899 = vmatpush1.bf16.msra.mxu1 %v9800_v8  ;;  %7556 = vmatprep.subr.bf16.mxu0 %v9805_v11  ;;  %v9881_v8 = vld [vmem:[#allocation8 + $0xaa0] ss:$16 sps:$4 sm:$0xff]   ;;  %v9884_v11 = vld [vmem:[#allocation8 + $0xaa8] ss:$16 sps:$4 sm:$0xff]  }
 0x3a1   :  { %7900 = vmatprep.subr.bf16.mxu1 %v9808_v17  ;;  %v9889_v17 = vld [vmem:[#allocation8 + $0xac4] ss:$16 sps:$4 sm:$0xff]  }
 0x3a3   :  { %7557 = vmatpush1.bf16.msra.mxu0 %v9803_v4  ;;  %v9892_v4 = vld [vmem:[#allocation8 + $0xacc] ss:$16 sps:$4 sm:$0xff]  }
 0x3a4   :  { %7901 = vmatpush1.bf16.msra.mxu1 %v9806_v14  ;;  %7558 = vmatprep.subr.bf16.mxu0 %v9811_v2  ;;  %v9887_v14 = vld [vmem:[#allocation8 + $0xac0] ss:$16 sps:$4 sm:$0xff]   ;;  %v9890_v2 = vld [vmem:[#allocation8 + $0xac8] ss:$16 sps:$4 sm:$0xff]  }
 0x3a5   :  { %7902 = vmatprep.subr.bf16.mxu1 %v9814_v55  ;;  %v9895_v55 = vld [vmem:[#allocation8 + $0xae4] ss:$16 sps:$4 sm:$0xff]  }
 0x3a7   :  { %7559 = vmatpush1.bf16.msra.mxu0 %v9809_v16  ;;  %v9898_v16 = vld [vmem:[#allocation8 + $0xaec] ss:$16 sps:$4 sm:$0xff]  }
 0x3a8   :  { %7903 = vmatpush1.bf16.msra.mxu1 %v9812_v21  ;;  %7560 = vmatprep.subr.bf16.mxu0 %v9817_v56  ;;  %v9893_v21 = vld [vmem:[#allocation8 + $0xae0] ss:$16 sps:$4 sm:$0xff]   ;;  %v9896_v56 = vld [vmem:[#allocation8 + $0xae8] ss:$16 sps:$4 sm:$0xff]  }
 0x3a9   :  { %7904 = vmatprep.subr.bf16.mxu1 %v9820_v10  ;;  %v9901_v10 = vld [vmem:[#allocation8 + $0xb04] ss:$16 sps:$4 sm:$0xff]  }
 0x3ab   :  { %7561 = vmatpush1.bf16.msra.mxu0 %v9815_v18  ;;  %v9904_v18 = vld [vmem:[#allocation8 + $0xb0c] ss:$16 sps:$4 sm:$0xff]  }
 0x3ac   :  { %7905 = vmatpush1.bf16.msra.mxu1 %v9818_v20  ;;  %7562 = vmatprep.subr.bf16.mxu0 %v9823_v63  ;;  %v9899_v20 = vld [vmem:[#allocation8 + $0xb00] ss:$16 sps:$4 sm:$0xff]   ;;  %v9902_v63 = vld [vmem:[#allocation8 + $0xb08] ss:$16 sps:$4 sm:$0xff]  }
 0x3ad   :  { %7906 = vmatprep.subr.bf16.mxu1 %v9826_v13  ;;  %v9907_v13 = vld [vmem:[#allocation8 + $0xb24] ss:$16 sps:$4 sm:$0xff]  }
 0x3af   :  { %7563 = vmatpush1.bf16.msra.mxu0 %v9821_v29  ;;  %v9910_v29 = vld [vmem:[#allocation8 + $0xb2c] ss:$16 sps:$4 sm:$0xff]  }
 0x3b0   :  { %7907 = vmatpush1.bf16.msra.mxu1 %v9824_v24  ;;  %7564 = vmatprep.subr.bf16.mxu0 %v9829_v59  ;;  %v9905_v24 = vld [vmem:[#allocation8 + $0xb20] ss:$16 sps:$4 sm:$0xff]   ;;  %v9908_v59 = vld [vmem:[#allocation8 + $0xb28] ss:$16 sps:$4 sm:$0xff]  }
 0x3b1   :  { %7908 = vmatprep.subr.bf16.mxu1 %v9832_v60  ;;  %v9913_v60 = vld [vmem:[#allocation8 + $0xb44] ss:$16 sps:$4 sm:$0xff]  }
 0x3b3   :  { %7565 = vmatpush1.bf16.msra.mxu0 %v9827_v9  ;;  %v9916_v9 = vld [vmem:[#allocation8 + $0xb4c] ss:$16 sps:$4 sm:$0xff]  }
 0x3b4   :  { %7909 = vmatpush1.bf16.msra.mxu1 %v9830_v1  ;;  %7566 = vmatprep.subr.bf16.mxu0 %v9835_v12  ;;  %v9911_v1 = vld [vmem:[#allocation8 + $0xb40] ss:$16 sps:$4 sm:$0xff]   ;;  %v9914_v12 = vld [vmem:[#allocation8 + $0xb48] ss:$16 sps:$4 sm:$0xff]  }
 0x3b5   :  { %7910 = vmatprep.subr.bf16.mxu1 %v9838_v27  ;;  %v9919_v27 = vld [vmem:[#allocation8 + $0xb64] ss:$16 sps:$4 sm:$0xff]  }
 0x3b7   :  { %7567 = vmatpush1.bf16.msra.mxu0 %v9833_v34  ;;  %v9922_v34 = vld [vmem:[#allocation8 + $0xb6c] ss:$16 sps:$4 sm:$0xff]  }
 0x3b8   :  { %7911 = vmatpush1.bf16.msra.mxu1 %v9836_v45  ;;  %7568 = vmatprep.subr.bf16.mxu0 %v9841_v28  ;;  %v9917_v45 = vld [vmem:[#allocation8 + $0xb60] ss:$16 sps:$4 sm:$0xff]   ;;  %v9920_v28 = vld [vmem:[#allocation8 + $0xb68] ss:$16 sps:$4 sm:$0xff]  }
 0x3b9   :  { %7912 = vmatprep.subr.bf16.mxu1 %v9844_v35  ;;  %v9925_v35 = vld [vmem:[#allocation8 + $0xb84] ss:$16 sps:$4 sm:$0xff]  }
 0x3bb   :  { %7569 = vmatpush1.bf16.msra.mxu0 %v9839_v22  ;;  %v9928_v22 = vld [vmem:[#allocation8 + $0xb8c] ss:$16 sps:$4 sm:$0xff]  }
 0x3bc   :  { %7913 = vmatpush1.bf16.msra.mxu1 %v9842_v15  ;;  %7570 = vmatprep.subr.bf16.mxu0 %v9847_v62  ;;  %v9923_v15 = vld [vmem:[#allocation8 + $0xb80] ss:$16 sps:$4 sm:$0xff]   ;;  %v9926_v62 = vld [vmem:[#allocation8 + $0xb88] ss:$16 sps:$4 sm:$0xff]  }
 0x3bd   :  { %7914 = vmatprep.subr.bf16.mxu1 %v9850_v39  ;;  %v9931_v39 = vld [vmem:[#allocation8 + $0xba4] ss:$16 sps:$4 sm:$0xff]  }
 0x3bf   :  { %7571 = vmatpush1.bf16.msra.mxu0 %v9845_v50  ;;  %v9934_v50 = vld [vmem:[#allocation8 + $0xbac] ss:$16 sps:$4 sm:$0xff]  }
 0x3c0   :  { %7915 = vmatpush1.bf16.msra.mxu1 %v9848_v36  ;;  %7583 = vmatprep.subr.bf16.mxu0 %v9853_v40  ;;  %v9929_v36 = vld [vmem:[#allocation8 + $0xba0] ss:$16 sps:$4 sm:$0xff]   ;;  %v9932_v40 = vld [vmem:[#allocation8 + $0xba8] ss:$16 sps:$4 sm:$0xff]  }
 0x3c1   :  { %7927 = vmatprep.subr.bf16.mxu1 %v9856_v41  ;;  %v9937_v41 = vld [vmem:[#allocation8 + $0xbc4] ss:$16 sps:$4 sm:$0xff]  }
 0x3c2   :  { %7573 = vmatmul.mubr.bf16.vlgmr.msra.gmra.mrb[16].mxu0 %v10872_v32 }
 0x3c3   :  { %7917 = vmatmul.mubr.bf16.vlgmr.msra.gmra.mrb[16].mxu1 %v10872_v32  ;;  %7584 = vmatpush1.bf16.msra.mxu0 %v9851_v43  ;;  %v9874_v32 = vld [vmem:[#allocation8 + $0xa6c] ss:$16 sps:$4 sm:$0xff]  }
 0x3c4   :  { %7615 = vmatprep.mubr.bf16.mxu0 %v10882_v6  ;;  %7928 = vmatpush1.bf16.msra.mxu1 %v9854_v42  ;;  %v9940_v43 = vld [vmem:[#allocation8 + $0xbcc] ss:$16 sps:$4 sm:$0xff]   ;;  %v9935_v42 = vld [vmem:[#allocation8 + $0xbc0] ss:$16 sps:$4 sm:$0xff]  }
 0x3c5   :  { %7959 = vmatprep.mubr.bf16.mxu1 %v10882_v6  ;;  %7585 = vmatprep.subr.bf16.mxu0 %v9859_v44  ;;  %v9875_v6 = vld [vmem:[#allocation8 + $0xa80] ss:$16 sps:$4 sm:$0xff]   ;;  %v9938_v44 = vld [vmem:[#allocation8 + $0xbc8] ss:$16 sps:$4 sm:$0xff]  }
 0x3c6   :  { %7929 = vmatprep.subr.bf16.mxu1 %v9862_v5  ;;  %v9943_v5 = vld [vmem:[#allocation8 + $0xbe4] ss:$16 sps:$4 sm:$0xff]  }
 0x3c7   :  { %7586 = vmatpush1.bf16.msra.mxu0 %v9857_v58  ;;  %v9946_v58 = vld [vmem:[#allocation8 + $0xbec] ss:$16 sps:$4 sm:$0xff]  }
 0x3c8   :  { %7930 = vmatpush1.bf16.msra.mxu1 %v9860_v61  ;;  %7587 = vmatprep.subr.bf16.mxu0 %v9865_v46  ;;  %v9941_v61 = vld [vmem:[#allocation8 + $0xbe0] ss:$16 sps:$4 sm:$0xff]   ;;  %v9944_v46 = vld [vmem:[#allocation8 + $0xbe8] ss:$16 sps:$4 sm:$0xff]  }
 0x3c9   :  { %7931 = vmatprep.subr.bf16.mxu1 %v9868_v47  ;;  %v9949_v47 = vld [vmem:[#allocation8 + $0xc04] ss:$16 sps:$4 sm:$0xff]  }
 0x3cb   :  { %7588 = vmatpush1.bf16.msra.mxu0 %v9863_v26  ;;  %v9952_v26 = vld [vmem:[#allocation8 + $0xc0c] ss:$16 sps:$4 sm:$0xff]  }
 0x3cc   :  { %7932 = vmatpush1.bf16.msra.mxu1 %v9866_v48  ;;  %7589 = vmatprep.subr.bf16.mxu0 %v9871_v49  ;;  %v9947_v48 = vld [vmem:[#allocation8 + $0xc00] ss:$16 sps:$4 sm:$0xff]   ;;  %v9950_v49 = vld [vmem:[#allocation8 + $0xc08] ss:$16 sps:$4 sm:$0xff]  }
 0x3cd   :  { %7933 = vmatprep.subr.bf16.mxu1 %v9874_v32  ;;  %v9955_v32 = vld [vmem:[#allocation8 + $0xc24] ss:$16 sps:$4 sm:$0xff]  }
 0x3cf   :  { %7590 = vmatpush1.bf16.msra.mxu0 %v9869_v52  ;;  %v9958_v52 = vld [vmem:[#allocation8 + $0xc2c] ss:$16 sps:$4 sm:$0xff]  }
 0x3d0   :  { %7934 = vmatpush1.bf16.msra.mxu1 %v9872_v54  ;;  %7591 = vmatprep.subr.bf16.mxu0 %v9877_v7  ;;  %v9953_v54 = vld [vmem:[#allocation8 + $0xc20] ss:$16 sps:$4 sm:$0xff]   ;;  %v9956_v7 = vld [vmem:[#allocation8 + $0xc28] ss:$16 sps:$4 sm:$0xff]  }
 0x3d1   :  { %7935 = vmatprep.subr.bf16.mxu1 %v9880_v38  ;;  %v9961_v38 = vld [vmem:[#allocation8 + $0xc44] ss:$16 sps:$4 sm:$0xff]  }
 0x3d3   :  { %7592 = vmatpush1.bf16.msra.mxu0 %v9875_v6  ;;  %v9964_v6 = vld [vmem:[#allocation8 + $0xc4c] ss:$16 sps:$4 sm:$0xff]  }
 0x3d4   :  { %7936 = vmatpush1.bf16.msra.mxu1 %v9878_v57  ;;  %7593 = vmatprep.subr.bf16.mxu0 %v9883_v25  ;;  %v9959_v57 = vld [vmem:[#allocation8 + $0xc40] ss:$16 sps:$4 sm:$0xff]   ;;  %v9962_v25 = vld [vmem:[#allocation8 + $0xc48] ss:$16 sps:$4 sm:$0xff]  }
 0x3d5   :  { %7937 = vmatprep.subr.bf16.mxu1 %v9886_v53  ;;  %v9967_v53 = vld [vmem:[#allocation8 + $0xc64] ss:$16 sps:$4 sm:$0xff]  }
 0x3d7   :  { %7594 = vmatpush1.bf16.msra.mxu0 %v9881_v8  ;;  %v9965_v8 = vld [vmem:[#allocation8 + $0xc60] ss:$16 sps:$4 sm:$0xff]  }
 0x3d8   :  { %7938 = vmatpush1.bf16.msra.mxu1 %v9884_v11  ;;  %7595 = vmatprep.subr.bf16.mxu0 %v9889_v17  ;;  %v9968_v11 = vld [vmem:[#allocation8 + $0xc68] ss:$16 sps:$4 sm:$0xff]   ;;  %v9973_v17 = vld [vmem:[#allocation8 + $0xc84] ss:$16 sps:$4 sm:$0xff]  }
 0x3d9   :  { %7939 = vmatprep.subr.bf16.mxu1 %v9892_v4  ;;  %v9976_v4 = vld [vmem:[#allocation8 + $0xc8c] ss:$16 sps:$4 sm:$0xff]  }
 0x3db   :  { %7596 = vmatpush1.bf16.msra.mxu0 %v9887_v14  ;;  %v9974_v14 = vld [vmem:[#allocation8 + $0xc88] ss:$16 sps:$4 sm:$0xff]  }
 0x3dc   :  { %7940 = vmatpush1.bf16.msra.mxu1 %v9890_v2  ;;  %7597 = vmatprep.subr.bf16.mxu0 %v9895_v55  ;;  %v9979_v2 = vld [vmem:[#allocation8 + $0xca4] ss:$16 sps:$4 sm:$0xff]   ;;  %v9982_v55 = vld [vmem:[#allocation8 + $0xcac] ss:$16 sps:$4 sm:$0xff]  }
 0x3dd   :  { %7941 = vmatprep.subr.bf16.mxu1 %v9898_v16  ;;  %v9977_v16 = vld [vmem:[#allocation8 + $0xca0] ss:$16 sps:$4 sm:$0xff]  }
 0x3df   :  { %7598 = vmatpush1.bf16.msra.mxu0 %v9893_v21  ;;  %v9980_v21 = vld [vmem:[#allocation8 + $0xca8] ss:$16 sps:$4 sm:$0xff]  }
 0x3e0   :  { %7942 = vmatpush1.bf16.msra.mxu1 %v9896_v56  ;;  %7599 = vmatprep.subr.bf16.mxu0 %v9901_v10  ;;  %v9985_v56 = vld [vmem:[#allocation8 + $0xcc4] ss:$16 sps:$4 sm:$0xff]   ;;  %v9988_v10 = vld [vmem:[#allocation8 + $0xccc] ss:$16 sps:$4 sm:$0xff]  }
 0x3e1   :  { %7943 = vmatprep.subr.bf16.mxu1 %v9904_v18  ;;  %v9983_v18 = vld [vmem:[#allocation8 + $0xcc0] ss:$16 sps:$4 sm:$0xff]  }
 0x3e3   :  { %7600 = vmatpush1.bf16.msra.mxu0 %v9899_v20  ;;  %v9986_v20 = vld [vmem:[#allocation8 + $0xcc8] ss:$16 sps:$4 sm:$0xff]  }
 0x3e4   :  { %7944 = vmatpush1.bf16.msra.mxu1 %v9902_v63  ;;  %7601 = vmatprep.subr.bf16.mxu0 %v9907_v13  ;;  %v9991_v63 = vld [vmem:[#allocation8 + $0xce4] ss:$16 sps:$4 sm:$0xff]   ;;  %v9994_v13 = vld [vmem:[#allocation8 + $0xcec] ss:$16 sps:$4 sm:$0xff]  }
 0x3e5   :  { %7945 = vmatprep.subr.bf16.mxu1 %v9910_v29  ;;  %v9989_v29 = vld [vmem:[#allocation8 + $0xce0] ss:$16 sps:$4 sm:$0xff]  }
 0x3e7   :  { %7602 = vmatpush1.bf16.msra.mxu0 %v9905_v24  ;;  %v9992_v24 = vld [vmem:[#allocation8 + $0xce8] ss:$16 sps:$4 sm:$0xff]  }
 0x3e8   :  { %7946 = vmatpush1.bf16.msra.mxu1 %v9908_v59  ;;  %7603 = vmatprep.subr.bf16.mxu0 %v9913_v60  ;;  %v9997_v59 = vld [vmem:[#allocation8 + $0xd04] ss:$16 sps:$4 sm:$0xff]   ;;  %v10000_v60 = vld [vmem:[#allocation8 + $0xd0c] ss:$16 sps:$4 sm:$0xff]  }
 0x3e9   :  { %7947 = vmatprep.subr.bf16.mxu1 %v9916_v9  ;;  %v9995_v9 = vld [vmem:[#allocation8 + $0xd00] ss:$16 sps:$4 sm:$0xff]  }
 0x3eb   :  { %7604 = vmatpush1.bf16.msra.mxu0 %v9911_v1  ;;  %v9998_v1 = vld [vmem:[#allocation8 + $0xd08] ss:$16 sps:$4 sm:$0xff]  }
 0x3ec   :  { %7948 = vmatpush1.bf16.msra.mxu1 %v9914_v12  ;;  %7605 = vmatprep.subr.bf16.mxu0 %v9919_v27  ;;  %v10003_v12 = vld [vmem:[#allocation8 + $0xd24] ss:$16 sps:$4 sm:$0xff]   ;;  %v10006_v27 = vld [vmem:[#allocation8 + $0xd2c] ss:$16 sps:$4 sm:$0xff]  }
 0x3ed   :  { %7949 = vmatprep.subr.bf16.mxu1 %v9922_v34  ;;  %v10001_v34 = vld [vmem:[#allocation8 + $0xd20] ss:$16 sps:$4 sm:$0xff]  }
 0x3ef   :  { %7606 = vmatpush1.bf16.msra.mxu0 %v9917_v45  ;;  %v10004_v45 = vld [vmem:[#allocation8 + $0xd28] ss:$16 sps:$4 sm:$0xff]  }
 0x3f0   :  { %7950 = vmatpush1.bf16.msra.mxu1 %v9920_v28  ;;  %7607 = vmatprep.subr.bf16.mxu0 %v9925_v35  ;;  %v10009_v28 = vld [vmem:[#allocation8 + $0xd44] ss:$16 sps:$4 sm:$0xff]   ;;  %v10012_v35 = vld [vmem:[#allocation8 + $0xd4c] ss:$16 sps:$4 sm:$0xff]  }
 0x3f1   :  { %7951 = vmatprep.subr.bf16.mxu1 %v9928_v22  ;;  %v10007_v22 = vld [vmem:[#allocation8 + $0xd40] ss:$16 sps:$4 sm:$0xff]  }
 0x3f3   :  { %7608 = vmatpush1.bf16.msra.mxu0 %v9923_v15  ;;  %v10010_v15 = vld [vmem:[#allocation8 + $0xd48] ss:$16 sps:$4 sm:$0xff]  }
 0x3f4   :  { %7952 = vmatpush1.bf16.msra.mxu1 %v9926_v62  ;;  %7609 = vmatprep.subr.bf16.mxu0 %v9931_v39  ;;  %v10015_v62 = vld [vmem:[#allocation8 + $0xd64] ss:$16 sps:$4 sm:$0xff]   ;;  %v10018_v39 = vld [vmem:[#allocation8 + $0xd6c] ss:$16 sps:$4 sm:$0xff]  }
 0x3f5   :  { %7953 = vmatprep.subr.bf16.mxu1 %v9934_v50  ;;  %v10013_v50 = vld [vmem:[#allocation8 + $0xd60] ss:$16 sps:$4 sm:$0xff]  }
 0x3f7   :  { %7610 = vmatpush1.bf16.msra.mxu0 %v9929_v36  ;;  %v10016_v36 = vld [vmem:[#allocation8 + $0xd68] ss:$16 sps:$4 sm:$0xff]  }
 0x3f8   :  { %7954 = vmatpush1.bf16.msra.mxu1 %v9932_v40  ;;  %7611 = vmatprep.subr.bf16.mxu0 %v9937_v41  ;;  %v10021_v40 = vld [vmem:[#allocation8 + $0xd84] ss:$16 sps:$4 sm:$0xff]   ;;  %v10024_v41 = vld [vmem:[#allocation8 + $0xd8c] ss:$16 sps:$4 sm:$0xff]  }
 0x3f9   :  { %7955 = vmatprep.subr.bf16.mxu1 %v9940_v43  ;;  %v10019_v43 = vld [vmem:[#allocation8 + $0xd80] ss:$16 sps:$4 sm:$0xff]  }
 0x3fb   :  { %7612 = vmatpush1.bf16.msra.mxu0 %v9935_v42  ;;  %v10022_v42 = vld [vmem:[#allocation8 + $0xd88] ss:$16 sps:$4 sm:$0xff]  }
 0x3fc   :  { %7956 = vmatpush1.bf16.msra.mxu1 %v9938_v44  ;;  %7613 = vmatprep.subr.bf16.mxu0 %v9943_v5  ;;  %v10027_v44 = vld [vmem:[#allocation8 + $0xda4] ss:$16 sps:$4 sm:$0xff]   ;;  %v10030_v5 = vld [vmem:[#allocation8 + $0xdac] ss:$16 sps:$4 sm:$0xff]  }
 0x3fd   :  { %7957 = vmatprep.subr.bf16.mxu1 %v9946_v58  ;;  %v10025_v58 = vld [vmem:[#allocation8 + $0xda0] ss:$16 sps:$4 sm:$0xff]  }
 0x3ff   :  { %7614 = vmatpush1.bf16.msra.mxu0 %v9941_v61  ;;  %v10028_v61 = vld [vmem:[#allocation8 + $0xda8] ss:$16 sps:$4 sm:$0xff]  }
 0x400   :  { %7958 = vmatpush1.bf16.msra.mxu1 %v9944_v46  ;;  %7626 = vmatprep.subr.bf16.mxu0 %v9949_v47  ;;  %v10033_v46 = vld [vmem:[#allocation8 + $0xdc4] ss:$16 sps:$4 sm:$0xff]   ;;  %v10036_v47 = vld [vmem:[#allocation8 + $0xdcc] ss:$16 sps:$4 sm:$0xff]  }
 0x401   :  { %7970 = vmatprep.subr.bf16.mxu1 %v9952_v26  ;;  %v10031_v26 = vld [vmem:[#allocation8 + $0xdc0] ss:$16 sps:$4 sm:$0xff]  }
 0x402   :  { %7616 = vmatmul.mubr.bf16.vlgmr.msra.gmra.mrb[16].mxu0 %v10874_v37 }
 0x403   :  { %7960 = vmatmul.mubr.bf16.vlgmr.msra.gmra.mrb[16].mxu1 %v10874_v37  ;;  %7627 = vmatpush1.bf16.msra.mxu0 %v9947_v48  ;;  %v9970_v37 = vld [vmem:[#allocation8 + $0xc6c] ss:$16 sps:$4 sm:$0xff]   ;;  %v10034_v48 = vld [vmem:[#allocation8 + $0xdc8] ss:$16 sps:$4 sm:$0xff]  }
 0x404   :  { %7658 = vmatprep.mubr.bf16.mxu0 %v10964_v51  ;;  %7971 = vmatpush1.bf16.msra.mxu1 %v9950_v49  ;;  %v10039_v49 = vld [vmem:[#allocation8 + $0xde4] ss:$16 sps:$4 sm:$0xff]  }
 0x405   :  { %8002 = vmatprep.mubr.bf16.mxu1 %v10964_v51  ;;  %7628 = vmatprep.subr.bf16.mxu0 %v9955_v32  ;;  %v9971_v51 = vld [vmem:[#allocation8 + $0xc80] ss:$16 sps:$4 sm:$0xff]   ;;  %v10042_v32 = vld [vmem:[#allocation8 + $0xdec] ss:$16 sps:$4 sm:$0xff]  }
 0x406   :  { %7972 = vmatprep.subr.bf16.mxu1 %v9958_v52  ;;  %v10037_v52 = vld [vmem:[#allocation8 + $0xde0] ss:$16 sps:$4 sm:$0xff]  }
 0x407   :  { %7629 = vmatpush1.bf16.msra.mxu0 %v9953_v54  ;;  %v10040_v54 = vld [vmem:[#allocation8 + $0xde8] ss:$16 sps:$4 sm:$0xff]  }
 0x408   :  { %7973 = vmatpush1.bf16.msra.mxu1 %v9956_v7  ;;  %7630 = vmatprep.subr.bf16.mxu0 %v9961_v38  ;;  %v10045_v7 = vld [vmem:[#allocation8 + $0xe04] ss:$16 sps:$4 sm:$0xff]   ;;  %v10048_v38 = vld [vmem:[#allocation8 + $0xe0c] ss:$16 sps:$4 sm:$0xff]  }
 0x409   :  { %7974 = vmatprep.subr.bf16.mxu1 %v9964_v6  ;;  %v10043_v6 = vld [vmem:[#allocation8 + $0xe00] ss:$16 sps:$4 sm:$0xff]  }
 0x40b   :  { %7631 = vmatpush1.bf16.msra.mxu0 %v9959_v57  ;;  %v10046_v57 = vld [vmem:[#allocation8 + $0xe08] ss:$16 sps:$4 sm:$0xff]  }
 0x40c   :  { %7975 = vmatpush1.bf16.msra.mxu1 %v9962_v25  ;;  %7632 = vmatprep.subr.bf16.mxu0 %v9967_v53  ;;  %v10051_v25 = vld [vmem:[#allocation8 + $0xe24] ss:$16 sps:$4 sm:$0xff]   ;;  %v10054_v53 = vld [vmem:[#allocation8 + $0xe2c] ss:$16 sps:$4 sm:$0xff]  }
 0x40d   :  { %7976 = vmatprep.subr.bf16.mxu1 %v9970_v37  ;;  %v10049_v37 = vld [vmem:[#allocation8 + $0xe20] ss:$16 sps:$4 sm:$0xff]  }
 0x40f   :  { %7633 = vmatpush1.bf16.msra.mxu0 %v9965_v8  ;;  %v10052_v8 = vld [vmem:[#allocation8 + $0xe28] ss:$16 sps:$4 sm:$0xff]  }
 0x410   :  { %7977 = vmatpush1.bf16.msra.mxu1 %v9968_v11  ;;  %7634 = vmatprep.subr.bf16.mxu0 %v9973_v17  ;;  %v10057_v11 = vld [vmem:[#allocation8 + $0xe44] ss:$16 sps:$4 sm:$0xff]   ;;  %v10060_v17 = vld [vmem:[#allocation8 + $0xe4c] ss:$16 sps:$4 sm:$0xff]  }
 0x411   :  { %7978 = vmatprep.subr.bf16.mxu1 %v9976_v4  ;;  %v10055_v4 = vld [vmem:[#allocation8 + $0xe40] ss:$16 sps:$4 sm:$0xff]  }
 0x413   :  { %7635 = vmatpush1.bf16.msra.mxu0 %v9971_v51  ;;  %v10058_v51 = vld [vmem:[#allocation8 + $0xe48] ss:$16 sps:$4 sm:$0xff]  }
 0x414   :  { %7979 = vmatpush1.bf16.msra.mxu1 %v9974_v14  ;;  %7636 = vmatprep.subr.bf16.mxu0 %v9979_v2  ;;  %v10063_v14 = vld [vmem:[#allocation8 + $0xe64] ss:$16 sps:$4 sm:$0xff]   ;;  %v10061_v2 = vld [vmem:[#allocation8 + $0xe60] ss:$16 sps:$4 sm:$0xff]  }
 0x415   :  { %7980 = vmatprep.subr.bf16.mxu1 %v9982_v55  ;;  %v10064_v55 = vld [vmem:[#allocation8 + $0xe68] ss:$16 sps:$4 sm:$0xff]  }
 0x417   :  { %7637 = vmatpush1.bf16.msra.mxu0 %v9977_v16  ;;  %v10069_v16 = vld [vmem:[#allocation8 + $0xe84] ss:$16 sps:$4 sm:$0xff]  }
 0x418   :  { %7981 = vmatpush1.bf16.msra.mxu1 %v9980_v21  ;;  %7638 = vmatprep.subr.bf16.mxu0 %v9985_v56  ;;  %v10072_v21 = vld [vmem:[#allocation8 + $0xe8c] ss:$16 sps:$4 sm:$0xff]   ;;  %v10070_v56 = vld [vmem:[#allocation8 + $0xe88] ss:$16 sps:$4 sm:$0xff]  }
 0x419   :  { %7982 = vmatprep.subr.bf16.mxu1 %v9988_v10  ;;  %v10075_v10 = vld [vmem:[#allocation8 + $0xea4] ss:$16 sps:$4 sm:$0xff]  }
 0x41b   :  { %7639 = vmatpush1.bf16.msra.mxu0 %v9983_v18  ;;  %v10078_v18 = vld [vmem:[#allocation8 + $0xeac] ss:$16 sps:$4 sm:$0xff]  }
 0x41c   :  { %7983 = vmatpush1.bf16.msra.mxu1 %v9986_v20  ;;  %7640 = vmatprep.subr.bf16.mxu0 %v9991_v63  ;;  %v10073_v20 = vld [vmem:[#allocation8 + $0xea0] ss:$16 sps:$4 sm:$0xff]   ;;  %v10076_v63 = vld [vmem:[#allocation8 + $0xea8] ss:$16 sps:$4 sm:$0xff]  }
 0x41d   :  { %7984 = vmatprep.subr.bf16.mxu1 %v9994_v13  ;;  %v10081_v13 = vld [vmem:[#allocation8 + $0xec4] ss:$16 sps:$4 sm:$0xff]  }
 0x41f   :  { %7641 = vmatpush1.bf16.msra.mxu0 %v9989_v29  ;;  %v10084_v29 = vld [vmem:[#allocation8 + $0xecc] ss:$16 sps:$4 sm:$0xff]  }
 0x420   :  { %7985 = vmatpush1.bf16.msra.mxu1 %v9992_v24  ;;  %7642 = vmatprep.subr.bf16.mxu0 %v9997_v59  ;;  %v10079_v24 = vld [vmem:[#allocation8 + $0xec0] ss:$16 sps:$4 sm:$0xff]   ;;  %v10082_v59 = vld [vmem:[#allocation8 + $0xec8] ss:$16 sps:$4 sm:$0xff]  }
 0x421   :  { %7986 = vmatprep.subr.bf16.mxu1 %v10000_v60  ;;  %v10087_v60 = vld [vmem:[#allocation8 + $0xee4] ss:$16 sps:$4 sm:$0xff]  }
 0x423   :  { %7643 = vmatpush1.bf16.msra.mxu0 %v9995_v9  ;;  %v10090_v9 = vld [vmem:[#allocation8 + $0xeec] ss:$16 sps:$4 sm:$0xff]  }
 0x424   :  { %7987 = vmatpush1.bf16.msra.mxu1 %v9998_v1  ;;  %7644 = vmatprep.subr.bf16.mxu0 %v10003_v12  ;;  %v10085_v1 = vld [vmem:[#allocation8 + $0xee0] ss:$16 sps:$4 sm:$0xff]   ;;  %v10088_v12 = vld [vmem:[#allocation8 + $0xee8] ss:$16 sps:$4 sm:$0xff]  }
 0x425   :  { %7988 = vmatprep.subr.bf16.mxu1 %v10006_v27  ;;  %v10093_v27 = vld [vmem:[#allocation8 + $0xf04] ss:$16 sps:$4 sm:$0xff]  }
 0x427   :  { %7645 = vmatpush1.bf16.msra.mxu0 %v10001_v34  ;;  %v10096_v34 = vld [vmem:[#allocation8 + $0xf0c] ss:$16 sps:$4 sm:$0xff]  }
 0x428   :  { %7989 = vmatpush1.bf16.msra.mxu1 %v10004_v45  ;;  %7646 = vmatprep.subr.bf16.mxu0 %v10009_v28  ;;  %v10091_v45 = vld [vmem:[#allocation8 + $0xf00] ss:$16 sps:$4 sm:$0xff]   ;;  %v10094_v28 = vld [vmem:[#allocation8 + $0xf08] ss:$16 sps:$4 sm:$0xff]  }
 0x429   :  { %7990 = vmatprep.subr.bf16.mxu1 %v10012_v35  ;;  %v10099_v35 = vld [vmem:[#allocation8 + $0xf24] ss:$16 sps:$4 sm:$0xff]  }
 0x42b   :  { %7647 = vmatpush1.bf16.msra.mxu0 %v10007_v22  ;;  %v10102_v22 = vld [vmem:[#allocation8 + $0xf2c] ss:$16 sps:$4 sm:$0xff]  }
 0x42c   :  { %7991 = vmatpush1.bf16.msra.mxu1 %v10010_v15  ;;  %7648 = vmatprep.subr.bf16.mxu0 %v10015_v62  ;;  %v10097_v15 = vld [vmem:[#allocation8 + $0xf20] ss:$16 sps:$4 sm:$0xff]   ;;  %v10100_v62 = vld [vmem:[#allocation8 + $0xf28] ss:$16 sps:$4 sm:$0xff]  }
 0x42d   :  { %7992 = vmatprep.subr.bf16.mxu1 %v10018_v39  ;;  %v10105_v39 = vld [vmem:[#allocation8 + $0xf44] ss:$16 sps:$4 sm:$0xff]  }
 0x42f   :  { %7649 = vmatpush1.bf16.msra.mxu0 %v10013_v50  ;;  %v10108_v50 = vld [vmem:[#allocation8 + $0xf4c] ss:$16 sps:$4 sm:$0xff]  }
 0x430   :  { %7993 = vmatpush1.bf16.msra.mxu1 %v10016_v36  ;;  %7650 = vmatprep.subr.bf16.mxu0 %v10021_v40  ;;  %v10103_v36 = vld [vmem:[#allocation8 + $0xf40] ss:$16 sps:$4 sm:$0xff]   ;;  %v10106_v40 = vld [vmem:[#allocation8 + $0xf48] ss:$16 sps:$4 sm:$0xff]  }
 0x431   :  { %7994 = vmatprep.subr.bf16.mxu1 %v10024_v41  ;;  %v10111_v41 = vld [vmem:[#allocation8 + $0xf64] ss:$16 sps:$4 sm:$0xff]  }
 0x433   :  { %7651 = vmatpush1.bf16.msra.mxu0 %v10019_v43  ;;  %v10114_v43 = vld [vmem:[#allocation8 + $0xf6c] ss:$16 sps:$4 sm:$0xff]  }
 0x434   :  { %7995 = vmatpush1.bf16.msra.mxu1 %v10022_v42  ;;  %7652 = vmatprep.subr.bf16.mxu0 %v10027_v44  ;;  %v10109_v42 = vld [vmem:[#allocation8 + $0xf60] ss:$16 sps:$4 sm:$0xff]   ;;  %v10112_v44 = vld [vmem:[#allocation8 + $0xf68] ss:$16 sps:$4 sm:$0xff]  }
 0x435   :  { %7996 = vmatprep.subr.bf16.mxu1 %v10030_v5  ;;  %v10117_v5 = vld [vmem:[#allocation8 + $0xf84] ss:$16 sps:$4 sm:$0xff]  }
 0x437   :  { %7653 = vmatpush1.bf16.msra.mxu0 %v10025_v58  ;;  %v10120_v58 = vld [vmem:[#allocation8 + $0xf8c] ss:$16 sps:$4 sm:$0xff]  }
 0x438   :  { %7997 = vmatpush1.bf16.msra.mxu1 %v10028_v61  ;;  %7654 = vmatprep.subr.bf16.mxu0 %v10033_v46  ;;  %v10115_v61 = vld [vmem:[#allocation8 + $0xf80] ss:$16 sps:$4 sm:$0xff]   ;;  %v10118_v46 = vld [vmem:[#allocation8 + $0xf88] ss:$16 sps:$4 sm:$0xff]  }
 0x439   :  { %7998 = vmatprep.subr.bf16.mxu1 %v10036_v47  ;;  %v10123_v47 = vld [vmem:[#allocation8 + $0xfa4] ss:$16 sps:$4 sm:$0xff]  }
 0x43b   :  { %7655 = vmatpush1.bf16.msra.mxu0 %v10031_v26  ;;  %v10126_v26 = vld [vmem:[#allocation8 + $0xfac] ss:$16 sps:$4 sm:$0xff]  }
 0x43c   :  { %7999 = vmatpush1.bf16.msra.mxu1 %v10034_v48  ;;  %7656 = vmatprep.subr.bf16.mxu0 %v10039_v49  ;;  %v10121_v48 = vld [vmem:[#allocation8 + $0xfa0] ss:$16 sps:$4 sm:$0xff]   ;;  %v10124_v49 = vld [vmem:[#allocation8 + $0xfa8] ss:$16 sps:$4 sm:$0xff]  }
 0x43d   :  { %8000 = vmatprep.subr.bf16.mxu1 %v10042_v32  ;;  %v10129_v32 = vld [vmem:[#allocation8 + $0xfc4] ss:$16 sps:$4 sm:$0xff]  }
 0x43f   :  { %7657 = vmatpush1.bf16.msra.mxu0 %v10037_v52  ;;  %v10132_v52 = vld [vmem:[#allocation8 + $0xfcc] ss:$16 sps:$4 sm:$0xff]  }
 0x440   :  { %8001 = vmatpush1.bf16.msra.mxu1 %v10040_v54  ;;  %7669 = vmatprep.subr.bf16.mxu0 %v10045_v7  ;;  %v10127_v54 = vld [vmem:[#allocation8 + $0xfc0] ss:$16 sps:$4 sm:$0xff]   ;;  %v10130_v7 = vld [vmem:[#allocation8 + $0xfc8] ss:$16 sps:$4 sm:$0xff]  }
 0x441   :  { %8013 = vmatprep.subr.bf16.mxu1 %v10048_v38  ;;  %v10135_v38 = vld [vmem:[#allocation8 + $0xfe4] ss:$16 sps:$4 sm:$0xff]  }
 0x442   :  { %7659 = vmatmul.mubr.bf16.vlgmr.msra.gmra.mrb[16].mxu0 %v10958_v0 }
 0x443   :  { %8003 = vmatmul.mubr.bf16.vlgmr.msra.gmra.mrb[16].mxu1 %v10958_v0  ;;  %7670 = vmatpush1.bf16.msra.mxu0 %v10043_v6  ;;  %v10066_v0 = vld [vmem:[#allocation8 + $0xe6c] ss:$16 sps:$4 sm:$0xff]  }
 0x444   :  { %7701 = vmatprep.mubr.bf16.mxu0 %v10966_v3  ;;  %8014 = vmatpush1.bf16.msra.mxu1 %v10046_v57  ;;  %v10138_v6 = vld [vmem:[#allocation8 + $0xfec] ss:$16 sps:$4 sm:$0xff]   ;;  %v10133_v57 = vld [vmem:[#allocation8 + $0xfe0] ss:$16 sps:$4 sm:$0xff]  }
 0x445   :  { %8045 = vmatprep.mubr.bf16.mxu1 %v10966_v3  ;;  %7671 = vmatprep.subr.bf16.mxu0 %v10051_v25  ;;  %v10067_v3 = vld [vmem:[#allocation8 + $0xe80] ss:$16 sps:$4 sm:$0xff]   ;;  %v10136_v25 = vld [vmem:[#allocation8 + $0xfe8] ss:$16 sps:$4 sm:$0xff]  }
 0x446   :  { %8015 = vmatprep.subr.bf16.mxu1 %v10054_v53  ;;  %v4786_v53 = vld [vmem:[#allocation10] sm:$0xf] }
 0x447   :  { %7672 = vmatpush1.bf16.msra.mxu0 %v10049_v37  ;;  %v4791_v37 = vrot.slane %v4786_v53, %v10583_v23 }
 0x448   :  { %8016 = vmatpush1.bf16.msra.mxu1 %v10052_v8  ;;  %7673 = vmatprep.subr.bf16.mxu0 %v10057_v11  ;;  %v4799_v8 = vrot.slane %v4786_v53, %v10586_v30  ;;  %v4795_v11 = vrot.slane %v4786_v53, %v10589_v31 }
 0x449   :  { %8017 = vmatprep.subr.bf16.mxu1 %v10060_v17 }
 0x44b   :  { %7674 = vmatpush1.bf16.msra.mxu0 %v10055_v4  ;;  %v4803_v4 = vrot.slane %v4786_v53, %v10592_v33 }
 0x44c   :  { %8018 = vmatpush1.bf16.msra.mxu1 %v10058_v51  ;;  %7675 = vmatprep.subr.bf16.mxu0 %v10063_v14 }
 0x44d   :  { %8019 = vmatprep.subr.bf16.mxu1 %v10066_v0 }
 0x44f   :  { %7676 = vmatpush1.bf16.msra.mxu0 %v10061_v2 }
 0x450   :  { %8020 = vmatpush1.bf16.msra.mxu1 %v10064_v55  ;;  %7677 = vmatprep.subr.bf16.mxu0 %v10069_v16 }
 0x451   :  { %8021 = vmatprep.subr.bf16.mxu1 %v10072_v21 }
 0x453   :  { %7678 = vmatpush1.bf16.msra.mxu0 %v10067_v3  ;;  %v10208_v3 = vld [vmem:[#allocation2] sm:$0xff] }
 0x454   :  { %8022 = vmatpush1.bf16.msra.mxu1 %v10070_v56  ;;  %7679 = vmatprep.subr.bf16.mxu0 %v10075_v10 }
 0x455   :  { %8023 = vmatprep.subr.bf16.mxu1 %v10078_v18 }
 0x457   :  { %7680 = vmatpush1.bf16.msra.mxu0 %v10073_v20  ;;  %v10209_v20 = vld [vmem:[#allocation2 + $0x8] sm:$0xff] }
 0x458   :  { %8024 = vmatpush1.bf16.msra.mxu1 %v10076_v63  ;;  %7681 = vmatprep.subr.bf16.mxu0 %v10081_v13 }
 0x459   :  { %8025 = vmatprep.subr.bf16.mxu1 %v10084_v29 }
 0x45b   :  { %7682 = vmatpush1.bf16.msra.mxu0 %v10079_v24 }
 0x45c   :  { %8026 = vmatpush1.bf16.msra.mxu1 %v10082_v59  ;;  %7683 = vmatprep.subr.bf16.mxu0 %v10087_v60  ;;  %v10210_v60 = vld [vmem:[#allocation2 + $0x20] sm:$0xff] }
 0x45d   :  { %8027 = vmatprep.subr.bf16.mxu1 %v10090_v9 }
 0x45f   :  { %7684 = vmatpush1.bf16.msra.mxu0 %v10085_v1  ;;  %v10211_v1 = vld [vmem:[#allocation2 + $0x10] sm:$0xff] }
 0x460   :  { %8028 = vmatpush1.bf16.msra.mxu1 %v10088_v12  ;;  %7685 = vmatprep.subr.bf16.mxu0 %v10093_v27  ;;  %v10212_v27 = vld [vmem:[#allocation2 + $0x28] sm:$0xff] }
 0x461   :  { %8029 = vmatprep.subr.bf16.mxu1 %v10096_v34 }
 0x463   :  { %7686 = vmatpush1.bf16.msra.mxu0 %v10091_v45 }
 0x464   :  { %8030 = vmatpush1.bf16.msra.mxu1 %v10094_v28  ;;  %7687 = vmatprep.subr.bf16.mxu0 %v10099_v35  ;;  %v10213_v35 = vld [vmem:[#allocation2 + $0x30] sm:$0xff] }
 0x465   :  { %8031 = vmatprep.subr.bf16.mxu1 %v10102_v22 }
 0x467   :  { %7688 = vmatpush1.bf16.msra.mxu0 %v10097_v15 }
 0x468   :  { %8032 = vmatpush1.bf16.msra.mxu1 %v10100_v62  ;;  %7689 = vmatprep.subr.bf16.mxu0 %v10105_v39  ;;  %v10214_v62 = vld [vmem:[#allocation2 + $0x18] sm:$0xff] }
 0x469   :  { %8033 = vmatprep.subr.bf16.mxu1 %v10108_v50 }
 0x46b   :  { %7690 = vmatpush1.bf16.msra.mxu0 %v10103_v36 }
 0x46c   :  { %8034 = vmatpush1.bf16.msra.mxu1 %v10106_v40  ;;  %7691 = vmatprep.subr.bf16.mxu0 %v10111_v41  ;;  %v10215_v41 = vld [vmem:[#allocation2 + $0x38] sm:$0xff] }
 0x46d   :  { %8035 = vmatprep.subr.bf16.mxu1 %v10114_v43 }
 0x46f   :  { %7692 = vmatpush1.bf16.msra.mxu0 %v10109_v42 }
 0x470   :  { %8036 = vmatpush1.bf16.msra.mxu1 %v10112_v44  ;;  %7693 = vmatprep.subr.bf16.mxu0 %v10117_v5 }
 0x471   :  { %8037 = vmatprep.subr.bf16.mxu1 %v10120_v58 }
 0x473   :  { %7694 = vmatpush1.bf16.msra.mxu0 %v10115_v61 }
 0x474   :  { %8038 = vmatpush1.bf16.msra.mxu1 %v10118_v46  ;;  %7695 = vmatprep.subr.bf16.mxu0 %v10123_v47 }
 0x475   :  { %8039 = vmatprep.subr.bf16.mxu1 %v10126_v26 }
 0x477   :  { %7696 = vmatpush1.bf16.msra.mxu0 %v10121_v48 }
 0x478   :  { %8040 = vmatpush1.bf16.msra.mxu1 %v10124_v49  ;;  %7697 = vmatprep.subr.bf16.mxu0 %v10129_v32 }
 0x479   :  { %8041 = vmatprep.subr.bf16.mxu1 %v10132_v52 }
 0x47b   :  { %7698 = vmatpush1.bf16.msra.mxu0 %v10127_v54 }
 0x47c   :  { %8042 = vmatpush1.bf16.msra.mxu1 %v10130_v7  ;;  %7699 = vmatprep.subr.bf16.mxu0 %v10135_v38 }
 0x47d   :  { %8043 = vmatprep.subr.bf16.mxu1 %v10138_v6 }
 0x47f   :  { %7700 = vmatpush1.bf16.msra.mxu0 %v10133_v57 }
 0x480   :  { %8044 = vmatpush1.bf16.msra.mxu1 %v10136_v25 }
 0x482   :  { %7702 = vmatmul.mubr.bf16.vlgmr.msra.gmra.mrb[16].mxu0 %v10962_v19 }
 0x483   :  { %8046 = vmatmul.mubr.bf16.vlgmr.msra.gmra.mrb[16].mxu1 %v10962_v19 }
 0x555   :  { %v7703_v17 = vpop.f32.mrb[16].mxu0 }
 0x556   :  { %v9261_v51 = vadd.f32 %v7703_v17, %v4791_v37  ;;  %v8047_v14 = vpop.f32.mrb[16].mxu1  ;;  %v7705_v0 = vpop.f32.mrb[17].mxu0 }
 0x557   :  { %v9265_v2 = vadd.f32 %v8047_v14, %v4799_v8  ;;  %v9262_v55 = vadd.f32 %v7705_v0, %v4795_v11  ;;  %v8049_v16 = vpop.f32.mrb[17].mxu1  ;;  %v7707_v21 = vpop.f32.mrb[18].mxu0 }
 0x558   :  { %v8056_v56 = vadd.f32 %v10208_v3, %v9261_v51  ;;  %v9263_v19 = vadd.f32 %v7707_v21, %v4791_v37  ;;  %v8051_v10 = vpop.f32.mrb[18].mxu1  ;;  %v7709_v18 = vpop.f32.mrb[19].mxu0  ;;  %v9266_v13 = vadd.f32 %v8049_v16, %v4803_v4 }
 0x559   :  { %v8057_v63 = vadd.f32 %v10209_v20, %v9262_v55  ;;  %v9267_v29 = vadd.f32 %v8051_v10, %v4799_v8  ;;  %v9264_v24 = vadd.f32 %v7709_v18, %v4795_v11  ;;  %v8053_v59 = vpop.f32.mrb[19].mxu1  ;;  %v8058_v12 = vadd.f32 %v10211_v1, %v9265_v2  ;;  %v8065_v10 = vld [vmem:[#allocation13] sm:$0xf] }
 0x55a   :  { %v8060_v9 = vadd.f32 %v10210_v60, %v9263_v19  ;;  %v9268_v28 = vadd.f32 %v8053_v59, %v4803_v4  ;;  %v8059_v39 = vadd.f32 %v10214_v62, %v9266_v13  ;;  %v8064_v19 = vld [vmem:[#allocation11] sm:$0xf]  ;;  %v8152_v1 = vrot.slane %v8065_v10, %v10583_v23 }
 0x55b   :  { %v8061_v34 = vadd.f32 %v10212_v27, %v9264_v24  ;;  %v8066_v45 = vadd.f32 %v8057_v63, %v8056_v56  ;;  %v8062_v22 = vadd.f32 %v10213_v35, %v9267_v29  ;;  %v8123_v18 = vrot.slane %v8064_v19, %v10583_v23 }
 0x55c   :  { %v8063_v43 = vadd.f32 %v10215_v41, %v9268_v28  ;;  %v8131_v20 = vrot.slane %v8064_v19, %v10586_v30  ;;  %v8135_v13 = vrot.slane %v8064_v19, %v10592_v33  ;;  %v8156_v27 = vrot.slane %v8065_v10, %v10589_v31 }
 0x55d   :  { %v8071_v15 = vadd.f32 %v8061_v34, %v8060_v9  ;;  %v8067_v50 = vadd.f32 %v8066_v45, %v8058_v12 }
 0x55f   :  { %v8068_v36 = vadd.f32 %v8067_v50, %v8059_v39  ;;  %v8072_v40 = vadd.f32 %v8071_v15, %v8062_v22 }
 0x561   :  { %8069 = vadd.xlane.f32.xlu0 %v8068_v36  ;;  %v8073_v42 = vadd.f32 %v8072_v40, %v8063_v43 }
 0x565   :  { %8074 = vadd.xlane.f32.xlu0 %v8073_v42 }
 0x5ee   :  { %v8070_v44 = vpop.xlane.xlu0 %8069 }
 0x5ef   :  { %v8077_v5 = vmul.f32 0.001953125, %v8070_v44 }
 0x5f1   :  { %v8079_v58 = vsub.f32 %v8056_v56, %v8077_v5  ;;  %v8080_v61 = vsub.f32 %v8057_v63, %v8077_v5  ;;  %v8081_v46 = vsub.f32 %v8058_v12, %v8077_v5  ;;  %v8082_v26 = vsub.f32 %v8059_v39, %v8077_v5 }
 0x5f2   :  { %v8075_v47 = vpop.xlane.xlu0 %8074  ;;  %v8127_v63 = vrot.slane %v8064_v19, %v10589_v31  ;;  %v8160_v12 = vrot.slane %v8065_v10, %v10586_v30 }
 0x5f3   :  { %v8078_v48 = vmul.f32 0.001953125, %v8075_v47  ;;  %v8087_v49 = vmul.f32 %v8079_v58, %v8079_v58  ;;  %v8088_v32 = vmul.f32 %v8080_v61, %v8080_v61  ;;  %v8089_v52 = vmul.f32 %v8081_v46, %v8081_v46 }
 0x5f4   :  { %v8090_v57 = vmul.f32 %v8082_v26, %v8082_v26 }
 0x5f5   :  { %v8083_v54 = vsub.f32 %v8060_v9, %v8078_v48  ;;  %v8084_v7 = vsub.f32 %v8061_v34, %v8078_v48  ;;  %v8095_v38 = vadd.f32 %v8088_v32, %v8087_v49  ;;  %v8085_v6 = vsub.f32 %v8062_v22, %v8078_v48 }
 0x5f6   :  { %v8086_v53 = vsub.f32 %v8063_v43, %v8078_v48  ;;  %v8164_v34 = vrot.slane %v8065_v10, %v10592_v33 }
 0x5f7   :  { %v8096_v25 = vadd.f32 %v8095_v38, %v8089_v52  ;;  %v8091_v37 = vmul.f32 %v8083_v54, %v8083_v54  ;;  %v8092_v8 = vmul.f32 %v8084_v7, %v8084_v7  ;;  %v8093_v17 = vmul.f32 %v8085_v6, %v8085_v6 }
 0x5f8   :  { %v8094_v51 = vmul.f32 %v8086_v53, %v8086_v53 }
 0x5f9   :  { %v8097_v11 = vadd.f32 %v8096_v25, %v8090_v57  ;;  %v8100_v4 = vadd.f32 %v8092_v8, %v8091_v37 }
 0x5fb   :  { %8098 = vadd.xlane.f32.xlu1 %v8097_v11  ;;  %v8101_v14 = vadd.f32 %v8100_v4, %v8093_v17 }
 0x5fd   :  { %v8102_v0 = vadd.f32 %v8101_v14, %v8094_v51 }
 0x5ff   :  { %8103 = vadd.xlane.f32.xlu1 %v8102_v0 }
 0x688   :  { %v8099_v2 = vpop.xlane.xlu1 %8098 }
 0x689   :  { %v8105_v55 = vmul.f32 0.001953125, %v8099_v2 }
 0x68b   :  { %v8107_v16 = vadd.f32 1e-05, %v8105_v55 }
 0x68c   :  { %v8104_v21 = vpop.xlane.xlu1 %8103 }
 0x68d   :  { %10203 = vrsqrt.f32 %v8107_v16  ;;  %v8106_v3 = vmul.f32 0.001953125, %v8104_v21 }
 0x68f   :  { %v8108_v56 = vadd.f32 1e-05, %v8106_v3 }
 0x691   :  { %10205 = vrsqrt.f32 %v8108_v56 }
 0x697   :  { %v10204_v29 = vpop.eup %10203 }
 0x698   :  { %v8111_v24 = vmul.f32 %v10204_v29, %v8079_v58  ;;  %v8112_v59 = vmul.f32 %v10204_v29, %v8080_v61  ;;  %v8113_v60 = vmul.f32 %v10204_v29, %v8081_v46  ;;  %v8114_v9 = vmul.f32 %v10204_v29, %v8082_v26 }
 0x69a   :  { %v8140_v45 = vmul.f32 %v8123_v18, %v8111_v24  ;;  %v8141_v28 = vmul.f32 %v8127_v63, %v8112_v59  ;;  %v8142_v35 = vmul.f32 %v8131_v20, %v8113_v60  ;;  %v8143_v22 = vmul.f32 %v8135_v13, %v8114_v9 }
 0x69b   :  { %v10206_v15 = vpop.eup %10205 }
 0x69c   :  { %v8115_v62 = vmul.f32 %v10206_v15, %v8083_v54  ;;  %v8116_v39 = vmul.f32 %v10206_v15, %v8084_v7  ;;  %v8117_v50 = vmul.f32 %v10206_v15, %v8085_v6  ;;  %v8118_v36 = vmul.f32 %v10206_v15, %v8086_v53 }
 0x69d   :  { %v8169_v40 = vadd.f32 %v8152_v1, %v8140_v45  ;;  %v8170_v41 = vadd.f32 %v8156_v27, %v8141_v28  ;;  %v8171_v43 = vadd.f32 %v8160_v12, %v8142_v35  ;;  %v8172_v42 = vadd.f32 %v8164_v34, %v8143_v22 }
 0x69e   :  { %v8144_v23 = vmul.f32 %v8123_v18, %v8115_v62  ;;  %v8145_v30 = vmul.f32 %v8127_v63, %v8116_v39  ;;  %v8146_v31 = vmul.f32 %v8131_v20, %v8117_v50  ;;  %v8147_v44 = vmul.f32 %v8135_v13, %v8118_v36 }
 0x69f   :  { %8177 = vst [vmem:[#allocation14] sm:$0xff] %v8169_v40  ;;  %8178 = vst [vmem:[#allocation14 + $0x8] sm:$0xff] %v8170_v41 }
 0x6a0   :  { %8179 = vst [vmem:[#allocation14 + $0x10] sm:$0xff] %v8171_v43  ;;  %8180 = vst [vmem:[#allocation14 + $0x18] sm:$0xff] %v8172_v42  ;;  %v8173_v33 = vadd.f32 %v8152_v1, %v8144_v23  ;;  %v8174_v5 = vadd.f32 %v8156_v27, %v8145_v30  ;;  %v8175_v58 = vadd.f32 %v8160_v12, %v8146_v31 }
 0x6a1   :  { %v8176_v61 = vadd.f32 %v8164_v34, %v8147_v44 }
 0x6a2   :  { %8181 = vst [vmem:[#allocation14 + $0x20] sm:$0xff] %v8173_v33  ;;  %8182 = vst [vmem:[#allocation14 + $0x28] sm:$0xff] %v8174_v5 }
 0x6a3   :  { %8183 = vst [vmem:[#allocation14 + $0x30] sm:$0xff] %v8175_v58  ;;  %8184 = vst [vmem:[#allocation14 + $0x38] sm:$0xff] %v8176_v61 }
 0x6a4   :  { %10381 = shalt.err (!%p10378_p4)
}
 0x6a5   :  { %s10382_s16 = scalar_lea.hbm %s11020_s7, 1024 }
 0x6a6   :  { %p10383_p5 = scmp.ne.s32.totalorder %s11020_s7, %s10382_s16  ;;  %p10386_p6 = scmp.lt.u32.totalorder %s10382_s16, %s11020_s7 }
 0x6a8   :  { %p10388_p7 = pnand %p10386_p6, %p10383_p5 }
 0x6aa   :  { %10391 = shalt.err (!%p10388_p7)
}
 0x6ab   :  { %8196 = dma.vmem_to_hbm [thread:$0]  %s8191_s15, 1024, %s11020_s7, [#allocation4], %s10410_s5, %s10410_s5, %s10411_s25  }
 0x6ac   :  { %10400 = dma.done.wait [#allocation4], 1024  }
 0x6ad   :  { %10401 = vsyncadd [#allocation4], 4294966272 }
 0x6ae   :  { %8200 = vsyncpa [#allocation3], 1 }
 0x6af   :  { %8201 = vsyncpa [#allocation6], 1 }
 0x6b0   :  { %8202 = vsyncpa [#allocation9], 1 }
 0x6b1   :  { %8203 = vsyncpa [#allocation12], 1 }
 0x6b2   :  { %8204 = vsyncpa [#allocation4], 1 }

</bundles_post_ra>
